<compile_context>
chip_gen: v6e
topology: v6e:2x2x1
jax: 0.10.0
libtpu: 0.0.40
codegen_flags: <defaults>
</compile_context>

<pallas_src>
import functools
import math

import jax
import jax.numpy as jnp
import numpy as np
from jax.experimental import pallas as pl
from jax.experimental.pallas import tpu as pltpu


def hebbian_block_kernel(
    # inputs ------------------------------------------------------------
    x_col_ref,      # (BT, 1,  N)   spikes, lane-dense, all columns
    x_tile_ref,     # (BT, 1,  TM)  spikes, lane-dense column tile
    x_row_ref,      # (BT, TM, 1)   spikes, row orientation (tile rows)
    pre_ref,        # (BT, 1,  N)   pre-synaptic trace, all columns
    pre_tile_ref,   # (BT, 1,  TM)  pre-synaptic trace, lane-dense column tile
    post_col_ref,   # (BT, 1,  TM)  post-synaptic trace, lane-dense column tile
    post_row_ref,   # (BT, TM, 1)   post-synaptic trace, row orientation tile
    att_ref,        # (BT, TM, N)   Hebbian attention-state rows (f32)
    v_w_ref, v_b_ref,       # (N, E)   bf16, (1, E)   f32
    oh_w_ref, oh_b_ref,     # (E, E+H) bf16, (1, E+H) f32  = [o_proj | o_proj@ff1]
    f2_w_ref, f2_b_ref,     # (H, E)   bf16, (1, E)   f32
    # outputs -----------------------------------------------------------
    y_ref,          # (BT, TM, E)
    att_out_ref,    # (BT, TM, N)   aliased with att_ref's HBM buffer
    pre_out_ref,    # (BT, 1,  TM)  lane-dense
    post_out_ref,   # (BT, 1,  TM)  lane-dense, aliased with post_col buffer
    *, decay, w_pre, w_post, bt, tm, e,
):
    x_col = x_col_ref[...]                               # (BT, 1, N)
    x_row = x_row_ref[...]                               # (BT, TM, 1)
    x_t = x_tile_ref[...]                                # (BT, 1, TM)

    # ---- eligibility traces (decay + spike), f32 elementwise on the VPU ----
    pre_new = decay * pre_ref[...] + x_col               # (BT, 1, N)
    post_new_row = decay * post_row_ref[...] + x_row     # (BT, TM, 1)

    # ---- STDP-like Hebbian update: a_ij += w_pre*x_i*pre_j - w_post*post_i*x_j
    att_new = (att_ref[...]
               + w_pre * x_row * pre_new
               - w_post * post_new_row * x_col)          # (BT, TM, N) f32

    att_out_ref[...] = att_new
    # lane-dense trace writebacks (no masked partial stores, no dynamic slices)
    pre_out_ref[...] = decay * pre_tile_ref[...] + x_t
    post_out_ref[...] = decay * post_col_ref[...] + x_t

    # ---- batch-fused projections: one (BT*TM, .) slab, bf16 MXU, f32 acc ----
    n = att_new.shape[-1]
    slab = att_new.reshape(bt * tm, n).astype(jnp.bfloat16)   # layout-free collapse
    attn = jnp.dot(slab, v_w_ref[...],
                   preferred_element_type=jnp.float32) + v_b_ref[...]
    # fused [o | pre-GELU h] in one wide MXU pass (o_proj + FF1)
    oh = jnp.dot(attn.astype(jnp.bfloat16), oh_w_ref[...],
                 preferred_element_type=jnp.float32) + oh_b_ref[...]
    o = oh[:, :e]                                             # (BT*TM, E)
    h = jax.nn.gelu(oh[:, e:], approximate=True)              # (BT*TM, H)
    ff = jnp.dot(h.astype(jnp.bfloat16), f2_w_ref[...],
                 preferred_element_type=jnp.float32) + f2_b_ref[...]
    y = ff + o                                                # (BT*TM, E) f32
    y_ref[...] = y.reshape(bt, tm, e).astype(y_ref.dtype)     # single lane-dense store


def _vmem_capacity_bytes():
    """Physical VMEM per core; generation-aware (64 MiB v7x, 128 MiB v5e/v6e)."""
    try:
        cap = getattr(pltpu.get_tpu_info(), "vmem_capacity_bytes", 0)
        if cap:
            return int(cap)
    except Exception:
        pass
    try:
        kind = jax.devices()[0].device_kind.lower()
        if "v7" in kind:
            return 64 * 2**20
    except Exception:
        pass
    return 128 * 2**20


def _pick_tiles(b, n, att_budget_bytes):
    """Batch-fusion factor BT and attention-row tile TM; grid = (B//BT, N//TM)."""
    tm_cands = [c for c in (512, 256, 128) if n % c == 0] or [n]
    bt_cands = [c for c in (8, 4, 2, 1) if b % c == 0]

    def att_blk_bytes(bt_, tm_):
        # double-buffered att input + output row blocks, f32
        return 2 * 2 * bt_ * tm_ * n * 4

    bt, tm = bt_cands[-1], tm_cands[-1]
    found = False
    for tm_ in tm_cands:                       # prefer the widest row tile
        for bt_ in bt_cands:                   # then the largest batch fusion
            if att_blk_bytes(bt_, tm_) <= att_budget_bytes:
                bt, tm = bt_, tm_
                found = True
                break
        if found:
            break
    # megacore (v7x has 2 TCs): keep >= 2 grid steps on a parallel axis
    while bt > 1 and (b // bt) * (n // tm) < 2:
        bt //= 2
    return bt, tm


def prepare_params(params):
    """One-time weight preparation (hoisted out of the per-timestep loop):
       fuse o_proj with the first FeedForward linear and cast matmul weights
       to bf16 (half DMA, bf16 MXU rate); biases stay f32."""
    f32, bf16 = jnp.float32, jnp.bfloat16
    o_w = params["o_w"].astype(f32)
    o_b = params["o_b"].astype(f32).reshape(1, -1)
    f1_w = params["f1_w"].astype(f32)
    f1_b = params["f1_b"].astype(f32).reshape(1, -1)
    return dict(
        v_w=params["v_w"].astype(bf16),
        v_b=params["v_b"].astype(f32).reshape(1, -1),
        oh_w=jnp.concatenate([o_w, o_w @ f1_w], axis=1).astype(bf16),
        oh_b=jnp.concatenate([o_b, o_b @ f1_w + f1_b], axis=1).astype(f32),
        f2_w=params["f2_w"].astype(bf16),
        f2_b=params["f2_b"].astype(f32).reshape(1, -1),
    )


def hebbian_transformer_block(x, state, prepared, *, tau_s=0.5, dt=1,
                              w_pre=1.0, w_post=0.5):
    """x: [B, N] spikes.  state: (pre [B,N], post [B,N], attention [B,N,N]).
       prepared: output of prepare_params().  Returns y [B,N,E] + new state."""
    B, N = x.shape
    E = prepared["v_w"].shape[1]
    EH = prepared["oh_w"].shape[1]
    H = EH - E
    pre, post, att = state
    decay = math.exp(-dt / tau_s)

    assert N % 128 == 0, "n_total_neurons must be a multiple of 128 (pad input)"
    assert E % 128 == 0 and H % 128 == 0, "embed/FF dims must be lane multiples"

    cap = _vmem_capacity_bytes()
    # ~1/4 of VMEM for the double-buffered attention blocks on 64 MiB parts
    # (v7x), up to ~48 MiB on 128 MiB parts (v5e/v6e).
    att_budget = cap // 4 if cap <= 64 * 2**20 else min(3 * cap // 8, 64 * 2**20)
    BT, TM = _pick_tiles(B, N, att_budget)
    grid = (B // BT, N // TM)

    f32 = jnp.float32
    x32 = x.astype(f32)
    # lane-dense layouts for the stateful tensors (last dim = neurons)
    x_col = x32[:, None, :]                 # [B, 1, N]
    pre_c = pre.astype(f32)[:, None, :]     # [B, 1, N]
    post_c = post.astype(f32)[:, None, :]   # [B, 1, N]
    att32 = att.astype(f32)                 # [B, N, N]
    # tiny read-only row-orientation helpers for the outer products
    x_row = x32[:, :, None]                 # [B, N, 1]
    post_r = post.astype(f32)[:, :, None]   # [B, N, 1]

    kernel = functools.partial(hebbian_block_kernel, decay=decay, w_pre=w_pre,
                               w_post=w_post, bt=BT, tm=TM, e=E)

    wmap = lambda b, r: (0, 0)
    resident = dict(pipeline_mode=pl.Buffered(1))   # constant blocks: single copy
    in_specs = [
        pl.BlockSpec((BT, 1, N), lambda b, r: (b, 0, 0)),    # x, all columns
        pl.BlockSpec((BT, 1, TM), lambda b, r: (b, 0, r)),   # x, column tile
        pl.BlockSpec((BT, TM, 1), lambda b, r: (b, r, 0)),   # x, row tile
        pl.BlockSpec((BT, 1, N), lambda b, r: (b, 0, 0)),    # pre, all columns
        pl.BlockSpec((BT, 1, TM), lambda b, r: (b, 0, r)),   # pre, column tile
        pl.BlockSpec((BT, 1, TM), lambda b, r: (b, 0, r)),   # post, column tile
        pl.BlockSpec((BT, TM, 1), lambda b, r: (b, r, 0)),   # post, row tile
        pl.BlockSpec((BT, TM, N), lambda b, r: (b, r, 0)),   # attention rows
        pl.BlockSpec((N, E), wmap, **resident),              # v_w
        pl.BlockSpec((1, E), wmap, **resident),              # v_b
        pl.BlockSpec((E, EH), wmap, **resident),             # [o_w | o_w@f1_w]
        pl.BlockSpec((1, EH), wmap, **resident),             # [o_b | o_b@f1_w+f1_b]
        pl.BlockSpec((H, E), wmap, **resident),              # f2_w
        pl.BlockSpec((1, E), wmap, **resident),              # f2_b
    ]
    out_specs = [
        pl.BlockSpec((BT, TM, E), lambda b, r: (b, r, 0)),   # y
        pl.BlockSpec((BT, TM, N), lambda b, r: (b, r, 0)),   # new attention
        pl.BlockSpec((BT, 1, TM), lambda b, r: (b, 0, r)),   # new pre (lane-dense)
        pl.BlockSpec((BT, 1, TM), lambda b, r: (b, 0, r)),   # new post (lane-dense)
    ]
    out_shape = [
        jax.ShapeDtypeStruct((B, N, E), f32),
        jax.ShapeDtypeStruct((B, N, N), f32),
        jax.ShapeDtypeStruct((B, 1, N), f32),
        jax.ShapeDtypeStruct((B, 1, N), f32),
    ]

    flops = 2 * B * N * (N * E + E * EH + H * E) + 10 * B * N * N
    bytes_accessed = (8 * B * N * N                      # att state read+write
                      + 2 * (N * E + E * EH + H * E)     # bf16 weights
                      + 4 * B * N * E + 32 * B * N)
    cost = pl.CostEstimate(flops=flops, transcendentals=B * N * H,
                           bytes_accessed=bytes_accessed)

    # VMEM: double-buffered pipelined blocks + resident weights + in-kernel temps.
    blk_bytes = 2 * 4 * (
        BT * 8 * N * 2                 # x_col + pre (sublane pad to 8)
        + BT * 8 * TM * 3              # x/pre/post column tiles
        + BT * TM * 128 * 2            # x_row + post_row (lane pad to 128)
        + BT * TM * N * 2              # att in + att out
        + BT * TM * E                  # y
        + BT * 8 * TM * 2)             # pre_out + post_out
    wt_bytes = 2 * (N * E + E * EH + H * E) + 4 * 8 * (2 * E + EH)
    tmp_bytes = BT * TM * (2 * N + 4 * N + 4 * E + 4 * EH + 4 * E)
    vmem_limit = int(min(max(blk_bytes + wt_bytes + tmp_bytes + (8 << 20),
                             32 * 2**20),
                         int(0.85 * cap)))

    y, att_new, pre_new, post_new = pl.pallas_call(
        kernel,
        grid=grid,
        in_specs=in_specs,
        out_specs=out_specs,
        out_shape=out_shape,
        # The N^2 attention state and the lane-dense post trace are rewritten
        # in place.  pre is NOT aliased: its input block spans all N columns
        # and is re-read by every row tile -> RAW hazard if aliased.
        input_output_aliases={7: 1, 5: 3},
        compiler_params=pltpu.CompilerParams(
            dimension_semantics=("parallel", "parallel"),
            vmem_limit_bytes=vmem_limit),
        cost_estimate=cost,
    )(x_col, x_col, x_row, pre_c, pre_c, post_c, post_r, att32,
      prepared["v_w"], prepared["v_b"], prepared["oh_w"], prepared["oh_b"],
      prepared["f2_w"], prepared["f2_b"])

    return y, (pre_new[:, 0, :], post_new[:, 0, :], att_new)


# ----------------------------- reference & demo -----------------------------

def _linear_params(key, fan_in, fan_out):
    """PyTorch-default-style Linear init (uniform +/- 1/sqrt(fan_in))."""
    kw, kb = jax.random.split(key)
    bound = 1.0 / math.sqrt(fan_in)
    w = jax.random.uniform(kw, (fan_in, fan_out), jnp.float32, -bound, bound)
    b = jax.random.uniform(kb, (1, fan_out), jnp.float32, -bound, bound)
    return w, b


def init_params(key, n_neurons, embed_dim, ff_hidden):
    kv, ko, k1, k2 = jax.random.split(key, 4)
    v_w, v_b = _linear_params(kv, n_neurons, embed_dim)
    o_w, o_b = _linear_params(ko, embed_dim, embed_dim)
    f1_w, f1_b = _linear_params(k1, embed_dim, ff_hidden)
    f2_w, f2_b = _linear_params(k2, ff_hidden, embed_dim)
    return dict(v_w=v_w, v_b=v_b, o_w=o_w, o_b=o_b,
                f1_w=f1_w, f1_b=f1_b, f2_w=f2_w, f2_b=f2_b)


def reference_block(x, state, params, *, tau_s=0.5, dt=1, w_pre=1.0, w_post=0.5):
    """Pure-JAX f32 reference of one forward step (unfused weights)."""
    decay = math.exp(-dt / tau_s)
    pre, post, att = state
    x = x.astype(jnp.float32)
    pre_n = decay * pre + x
    post_n = decay * post + x
    att_n = (att + w_pre * x[:, :, None] * pre_n[:, None, :]
             - w_post * post_n[:, :, None] * x[:, None, :])
    attn = att_n @ params["v_w"] + params["v_b"]
    o = attn @ params["o_w"] + params["o_b"]
    h = jax.nn.gelu(o @ params["f1_w"] + params["f1_b"], approximate=True)
    y = h @ params["f2_w"] + params["f2_b"] + o
    return y, (pre_n, post_n, att_n)


if __name__ == "__main__":
    B = 2            # batch
    N = 128          # n_total_neurons
    E = 128          # embed_dim (lane multiple -> lane-dense y stores)
    H = 4 * E        # FeedForward hidden width

    key = jax.random.PRNGKey(0)
    k_x, k_p = jax.random.split(key)
    # binary spike input [batch, n_neurons]
    x = (jax.random.uniform(k_x, (B, N)) < 0.3).astype(jnp.float32)
    params = init_params(k_p, N, E, H)
    prepared = prepare_params(params)   # weight cast + o/FF1 fusion, done once

    # zero_() equivalent: fresh Hebbian state
    state = (jnp.zeros((B, N), jnp.float32),
             jnp.zeros((B, N), jnp.float32),
             jnp.zeros((B, N, N), jnp.float32))
    ref_state = state

    # two consecutive time steps exercise the stateful Hebbian update
    for _ in range(2):
        y, state = hebbian_transformer_block(x, state, prepared)
        y_ref, ref_state = reference_block(x, ref_state, params)

    y = jax.block_until_ready(y)
    assert y.shape == (B, N, E) and y.dtype == jnp.float32
    assert state[0].shape == (B, N) and state[1].shape == (B, N)
    assert state[2].shape == (B, N, N)

    # Hebbian state / traces are computed in f32 in-kernel -> tight match.
    np.testing.assert_allclose(np.asarray(state[0]), np.asarray(ref_state[0]),
                               rtol=1e-5, atol=1e-5)
    np.testing.assert_allclose(np.asarray(state[1]), np.asarray(ref_state[1]),
                               rtol=1e-5, atol=1e-5)
    np.testing.assert_allclose(np.asarray(state[2]), np.asarray(ref_state[2]),
                               rtol=1e-5, atol=1e-5)
    # Projections run on the bf16 MXU -> loose tolerance vs the f32 reference.
    np.testing.assert_allclose(np.asarray(y), np.asarray(y_ref),
                               rtol=1e-1, atol=1e-1)
    print("KERNEL_OK")
</pallas_src>

<mosaic_0001>
module attributes {stable_mosaic.version = 11 : i64} {
  func.func @hebbian_block_kernel(%arg0: i32, %arg1: i32, %arg2: memref<1x1x128xf32, #tpu.memory_space<vmem>>, %arg3: memref<1x1x128xf32, #tpu.memory_space<vmem>>, %arg4: memref<1x128x1xf32, #tpu.memory_space<vmem>>, %arg5: memref<1x1x128xf32, #tpu.memory_space<vmem>>, %arg6: memref<1x1x128xf32, #tpu.memory_space<vmem>>, %arg7: memref<1x1x128xf32, #tpu.memory_space<vmem>>, %arg8: memref<1x128x1xf32, #tpu.memory_space<vmem>>, %arg9: memref<1x128x128xf32, #tpu.memory_space<vmem>>, %arg10: memref<128x128xbf16, #tpu.memory_space<vmem>>, %arg11: memref<1x128xf32, #tpu.memory_space<vmem>>, %arg12: memref<128x640xbf16, #tpu.memory_space<vmem>>, %arg13: memref<1x640xf32, #tpu.memory_space<vmem>>, %arg14: memref<512x128xbf16, #tpu.memory_space<vmem>>, %arg15: memref<1x128xf32, #tpu.memory_space<vmem>>, %arg16: memref<1x128x128xf32, #tpu.memory_space<vmem>>, %arg17: memref<1x128x128xf32, #tpu.memory_space<vmem>>, %arg18: memref<1x1x128xf32, #tpu.memory_space<vmem>>, %arg19: memref<1x1x128xf32, #tpu.memory_space<vmem>>) attributes {dimension_semantics = [#tpu.dimension_semantics<parallel>, #tpu.dimension_semantics<parallel>], iteration_bounds = array<i64: 2, 1>, scalar_prefetch = 0 : i64, scratch_operands = 0 : i64, tpu.core_type = #tpu.core_type<tc>, window_params = [{transform_indices = @transform_0, window_bounds = array<i64: 1, 1, 128>}, {transform_indices = @transform_1, window_bounds = array<i64: 1, 1, 128>}, {transform_indices = @transform_2, window_bounds = array<i64: 1, 128, 1>}, {transform_indices = @transform_3, window_bounds = array<i64: 1, 1, 128>}, {transform_indices = @transform_4, window_bounds = array<i64: 1, 1, 128>}, {transform_indices = @transform_5, window_bounds = array<i64: 1, 1, 128>}, {transform_indices = @transform_6, window_bounds = array<i64: 1, 128, 1>}, {transform_indices = @transform_7, window_bounds = array<i64: 1, 128, 128>}, {pipeline_mode = #tpu.pipeline_mode<synchronous>, transform_indices = @transform_8, window_bounds = array<i64: 128, 128>}, {pipeline_mode = #tpu.pipeline_mode<synchronous>, transform_indices = @transform_9, window_bounds = array<i64: 1, 128>}, {pipeline_mode = #tpu.pipeline_mode<synchronous>, transform_indices = @transform_10, window_bounds = array<i64: 128, 640>}, {pipeline_mode = #tpu.pipeline_mode<synchronous>, transform_indices = @transform_11, window_bounds = array<i64: 1, 640>}, {pipeline_mode = #tpu.pipeline_mode<synchronous>, transform_indices = @transform_12, window_bounds = array<i64: 512, 128>}, {pipeline_mode = #tpu.pipeline_mode<synchronous>, transform_indices = @transform_13, window_bounds = array<i64: 1, 128>}, {transform_indices = @transform_14, window_bounds = array<i64: 1, 128, 128>}, {transform_indices = @transform_15, window_bounds = array<i64: 1, 128, 128>}, {transform_indices = @transform_16, window_bounds = array<i64: 1, 1, 128>}, {transform_indices = @transform_17, window_bounds = array<i64: 1, 1, 128>}]} {
    %c0 = arith.constant 0 : index
    %c0_0 = arith.constant 0 : index
    %c0_1 = arith.constant 0 : index
    %0 = vector.load %arg2[%c0, %c0_0, %c0_1] : memref<1x1x128xf32, #tpu.memory_space<vmem>>, vector<1x1x128xf32>
    %c0_2 = arith.constant 0 : index
    %c0_3 = arith.constant 0 : index
    %c0_4 = arith.constant 0 : index
    %1 = vector.load %arg4[%c0_2, %c0_3, %c0_4] : memref<1x128x1xf32, #tpu.memory_space<vmem>>, vector<1x128x1xf32>
    %c0_5 = arith.constant 0 : index
    %c0_6 = arith.constant 0 : index
    %c0_7 = arith.constant 0 : index
    %2 = vector.load %arg3[%c0_5, %c0_6, %c0_7] : memref<1x1x128xf32, #tpu.memory_space<vmem>>, vector<1x1x128xf32>
    %c0_8 = arith.constant 0 : index
    %c0_9 = arith.constant 0 : index
    %c0_10 = arith.constant 0 : index
    %3 = vector.load %arg5[%c0_8, %c0_9, %c0_10] : memref<1x1x128xf32, #tpu.memory_space<vmem>>, vector<1x1x128xf32>
    %cst = arith.constant 0.135335281 : f32
    %4 = vector.broadcast %cst : f32 to vector<1x1x128xf32>
    %5 = arith.mulf %4, %3 : vector<1x1x128xf32>
    %6 = arith.addf %5, %0 : vector<1x1x128xf32>
    %c0_11 = arith.constant 0 : index
    %c0_12 = arith.constant 0 : index
    %c0_13 = arith.constant 0 : index
    %7 = vector.load %arg8[%c0_11, %c0_12, %c0_13] : memref<1x128x1xf32, #tpu.memory_space<vmem>>, vector<1x128x1xf32>
    %cst_14 = arith.constant 0.135335281 : f32
    %8 = vector.broadcast %cst_14 : f32 to vector<1x128x1xf32>
    %9 = arith.mulf %8, %7 : vector<1x128x1xf32>
    %10 = arith.addf %9, %1 : vector<1x128x1xf32>
    %c0_15 = arith.constant 0 : index
    %c0_16 = arith.constant 0 : index
    %c0_17 = arith.constant 0 : index
    %11 = vector.load %arg9[%c0_15, %c0_16, %c0_17] : memref<1x128x128xf32, #tpu.memory_space<vmem>>, vector<1x128x128xf32>
    %cst_18 = arith.constant 1.000000e+00 : f32
    %12 = vector.broadcast %cst_18 : f32 to vector<1x128x1xf32>
    %13 = arith.mulf %12, %1 : vector<1x128x1xf32>
    %14 = vector.broadcast %13 : vector<1x128x1xf32> to vector<1x128x128xf32>
    %15 = vector.broadcast %6 : vector<1x1x128xf32> to vector<1x128x128xf32>
    %16 = arith.mulf %14, %15 : vector<1x128x128xf32>
    %17 = arith.addf %11, %16 : vector<1x128x128xf32>
    %cst_19 = arith.constant 5.000000e-01 : f32
    %18 = vector.broadcast %cst_19 : f32 to vector<1x128x1xf32>
    %19 = arith.mulf %18, %10 : vector<1x128x1xf32>
    %20 = vector.broadcast %19 : vector<1x128x1xf32> to vector<1x128x128xf32>
    %21 = vector.broadcast %0 : vector<1x1x128xf32> to vector<1x128x128xf32>
    %22 = arith.mulf %20, %21 : vector<1x128x128xf32>
    %23 = arith.subf %17, %22 : vector<1x128x128xf32>
    %c0_20 = arith.constant 0 : index
    %c0_21 = arith.constant 0 : index
    %c0_22 = arith.constant 0 : index
    %24 = vector.load %arg17[%c0_20, %c0_21, %c0_22] : memref<1x128x128xf32, #tpu.memory_space<vmem>>, vector<1x128x128xf32>
    tpu.vector_store %arg17[%c0_20, %c0_21, %c0_22], %23 {strides = array<i32>} : memref<1x128x128xf32, #tpu.memory_space<vmem>>, vector<1x128x128xf32>,
    %c0_23 = arith.constant 0 : index
    %c0_24 = arith.constant 0 : index
    %c0_25 = arith.constant 0 : index
    %25 = vector.load %arg6[%c0_23, %c0_24, %c0_25] : memref<1x1x128xf32, #tpu.memory_space<vmem>>, vector<1x1x128xf32>
    %cst_26 = arith.constant 0.135335281 : f32
    %26 = vector.broadcast %cst_26 : f32 to vector<1x1x128xf32>
    %27 = arith.mulf %26, %25 : vector<1x1x128xf32>
    %28 = arith.addf %27, %2 : vector<1x1x128xf32>
    %c0_27 = arith.constant 0 : index
    %c0_28 = arith.constant 0 : index
    %c0_29 = arith.constant 0 : index
    %29 = vector.load %arg18[%c0_27, %c0_28, %c0_29] : memref<1x1x128xf32, #tpu.memory_space<vmem>>, vector<1x1x128xf32>
    tpu.vector_store %arg18[%c0_27, %c0_28, %c0_29], %28 {strides = array<i32>} : memref<1x1x128xf32, #tpu.memory_space<vmem>>, vector<1x1x128xf32>,
    %c0_30 = arith.constant 0 : index
    %c0_31 = arith.constant 0 : index
    %c0_32 = arith.constant 0 : index
    %30 = vector.load %arg7[%c0_30, %c0_31, %c0_32] : memref<1x1x128xf32, #tpu.memory_space<vmem>>, vector<1x1x128xf32>
    %cst_33 = arith.constant 0.135335281 : f32
    %31 = vector.broadcast %cst_33 : f32 to vector<1x1x128xf32>
    %32 = arith.mulf %31, %30 : vector<1x1x128xf32>
    %33 = arith.addf %32, %2 : vector<1x1x128xf32>
    %c0_34 = arith.constant 0 : index
    %c0_35 = arith.constant 0 : index
    %c0_36 = arith.constant 0 : index
    %34 = vector.load %arg19[%c0_34, %c0_35, %c0_36] : memref<1x1x128xf32, #tpu.memory_space<vmem>>, vector<1x1x128xf32>
    tpu.vector_store %arg19[%c0_34, %c0_35, %c0_36], %33 {strides = array<i32>} : memref<1x1x128xf32, #tpu.memory_space<vmem>>, vector<1x1x128xf32>,
    %35 = vector.shape_cast %23 : vector<1x128x128xf32> to vector<128x128xf32>
    %36 = arith.truncf %35 : vector<128x128xf32> to vector<128x128xbf16>
    %c0_37 = arith.constant 0 : index
    %c0_38 = arith.constant 0 : index
    %37 = vector.load %arg10[%c0_37, %c0_38] : memref<128x128xbf16, #tpu.memory_space<vmem>>, vector<128x128xbf16>
    %cst_39 = arith.constant dense<0.000000e+00> : vector<128x128xf32>
    %38 = tpu.matmul %36, %37, %cst_39 {dimension_numbers = #tpu.dot_dimension_numbers<[1], [0], [0], [1], [0, 0, 1, 1], [], []>} : vector<128x128xbf16>, vector<128x128xbf16>, vector<128x128xf32> -> vector<128x128xf32>
    %c0_40 = arith.constant 0 : index
    %c0_41 = arith.constant 0 : index
    %39 = vector.load %arg11[%c0_40, %c0_41] : memref<1x128xf32, #tpu.memory_space<vmem>>, vector<1x128xf32>
    %40 = vector.broadcast %39 : vector<1x128xf32> to vector<128x128xf32>
    %41 = arith.addf %38, %40 : vector<128x128xf32>
    %42 = arith.truncf %41 : vector<128x128xf32> to vector<128x128xbf16>
    %c0_42 = arith.constant 0 : index
    %c0_43 = arith.constant 0 : index
    %43 = vector.load %arg12[%c0_42, %c0_43] : memref<128x640xbf16, #tpu.memory_space<vmem>>, vector<128x640xbf16>
    %cst_44 = arith.constant dense<0.000000e+00> : vector<128x640xf32>
    %44 = tpu.matmul %42, %43, %cst_44 {dimension_numbers = #tpu.dot_dimension_numbers<[1], [0], [0], [1], [0, 0, 1, 1], [], []>} : vector<128x128xbf16>, vector<128x640xbf16>, vector<128x640xf32> -> vector<128x640xf32>
    %c0_45 = arith.constant 0 : index
    %c0_46 = arith.constant 0 : index
    %45 = vector.load %arg13[%c0_45, %c0_46] : memref<1x640xf32, #tpu.memory_space<vmem>>, vector<1x640xf32>
    %46 = vector.broadcast %45 : vector<1x640xf32> to vector<128x640xf32>
    %47 = arith.addf %44, %46 : vector<128x640xf32>
    %48 = vector.extract_strided_slice %47 {offsets = [0, 0], sizes = [128, 128], strides = [1, 1]} : vector<128x640xf32> to vector<128x128xf32>
    %49 = vector.extract_strided_slice %47 {offsets = [0, 128], sizes = [128, 512], strides = [1, 1]} : vector<128x640xf32> to vector<128x512xf32>
    %50 = arith.mulf %49, %49 : vector<128x512xf32>
    %51 = arith.mulf %49, %50 : vector<128x512xf32>
    %cst_47 = arith.constant 4.471500e-02 : f32
    %52 = vector.broadcast %cst_47 : f32 to vector<128x512xf32>
    %53 = arith.mulf %52, %51 : vector<128x512xf32>
    %54 = arith.addf %49, %53 : vector<128x512xf32>
    %cst_48 = arith.constant 0.797884583 : f32
    %55 = vector.broadcast %cst_48 : f32 to vector<128x512xf32>
    %56 = arith.mulf %55, %54 : vector<128x512xf32>
    %57 = math.tanh %56 : vector<128x512xf32>
    %cst_49 = arith.constant 1.000000e+00 : f32
    %58 = vector.broadcast %cst_49 : f32 to vector<128x512xf32>
    %59 = arith.addf %58, %57 : vector<128x512xf32>
    %cst_50 = arith.constant 5.000000e-01 : f32
    %60 = vector.broadcast %cst_50 : f32 to vector<128x512xf32>
    %61 = arith.mulf %60, %59 : vector<128x512xf32>
    %62 = arith.mulf %49, %61 : vector<128x512xf32>
    %63 = arith.truncf %62 : vector<128x512xf32> to vector<128x512xbf16>
    %c0_51 = arith.constant 0 : index
    %c0_52 = arith.constant 0 : index
    %64 = vector.load %arg14[%c0_51, %c0_52] : memref<512x128xbf16, #tpu.memory_space<vmem>>, vector<512x128xbf16>
    %cst_53 = arith.constant dense<0.000000e+00> : vector<128x128xf32>
    %65 = tpu.matmul %63, %64, %cst_53 {dimension_numbers = #tpu.dot_dimension_numbers<[1], [0], [0], [1], [0, 0, 1, 1], [], []>} : vector<128x512xbf16>, vector<512x128xbf16>, vector<128x128xf32> -> vector<128x128xf32>
    %c0_54 = arith.constant 0 : index
    %c0_55 = arith.constant 0 : index
    %66 = vector.load %arg15[%c0_54, %c0_55] : memref<1x128xf32, #tpu.memory_space<vmem>>, vector<1x128xf32>
    %67 = vector.broadcast %66 : vector<1x128xf32> to vector<128x128xf32>
    %68 = arith.addf %65, %67 : vector<128x128xf32>
    %69 = arith.addf %68, %48 : vector<128x128xf32>
    %70 = vector.shape_cast %69 : vector<128x128xf32> to vector<1x128x128xf32>
    %c0_56 = arith.constant 0 : index
    %c0_57 = arith.constant 0 : index
    %c0_58 = arith.constant 0 : index
    %71 = vector.load %arg16[%c0_56, %c0_57, %c0_58] : memref<1x128x128xf32, #tpu.memory_space<vmem>>, vector<1x128x128xf32>
    tpu.vector_store %arg16[%c0_56, %c0_57, %c0_58], %70 {strides = array<i32>} : memref<1x128x128xf32, #tpu.memory_space<vmem>>, vector<1x128x128xf32>,
    return
  }
  func.func @transform_0(%arg0: i32, %arg1: i32) -> (i32, i32, i32) {
    %c0_i32 = arith.constant 0 : i32
    %c0_i32_0 = arith.constant 0 : i32
    %c0_i32_1 = arith.constant 0 : i32
    return %arg0, %c0_i32, %c0_i32_0 : i32, i32, i32
  }
  func.func @transform_1(%arg0: i32, %arg1: i32) -> (i32, i32, i32) {
    %c0_i32 = arith.constant 0 : i32
    %c0_i32_0 = arith.constant 0 : i32
    return %arg0, %c0_i32, %arg1 : i32, i32, i32
  }
  func.func @transform_2(%arg0: i32, %arg1: i32) -> (i32, i32, i32) {
    %c0_i32 = arith.constant 0 : i32
    %c0_i32_0 = arith.constant 0 : i32
    return %arg0, %arg1, %c0_i32 : i32, i32, i32
  }
  func.func @transform_3(%arg0: i32, %arg1: i32) -> (i32, i32, i32) {
    %c0_i32 = arith.constant 0 : i32
    %c0_i32_0 = arith.constant 0 : i32
    %c0_i32_1 = arith.constant 0 : i32
    return %arg0, %c0_i32, %c0_i32_0 : i32, i32, i32
  }
  func.func @transform_4(%arg0: i32, %arg1: i32) -> (i32, i32, i32) {
    %c0_i32 = arith.constant 0 : i32
    %c0_i32_0 = arith.constant 0 : i32
    return %arg0, %c0_i32, %arg1 : i32, i32, i32
  }
  func.func @transform_5(%arg0: i32, %arg1: i32) -> (i32, i32, i32) {
    %c0_i32 = arith.constant 0 : i32
    %c0_i32_0 = arith.constant 0 : i32
    return %arg0, %c0_i32, %arg1 : i32, i32, i32
  }
  func.func @transform_6(%arg0: i32, %arg1: i32) -> (i32, i32, i32) {
    %c0_i32 = arith.constant 0 : i32
    %c0_i32_0 = arith.constant 0 : i32
    return %arg0, %arg1, %c0_i32 : i32, i32, i32
  }
  func.func @transform_7(%arg0: i32, %arg1: i32) -> (i32, i32, i32) {
    %c0_i32 = arith.constant 0 : i32
    %c0_i32_0 = arith.constant 0 : i32
    return %arg0, %arg1, %c0_i32 : i32, i32, i32
  }
  func.func @transform_8(%arg0: i32, %arg1: i32) -> (i32, i32) {
    %c0_i32 = arith.constant 0 : i32
    %c0_i32_0 = arith.constant 0 : i32
    %c0_i32_1 = arith.constant 0 : i32
    return %c0_i32, %c0_i32_0 : i32, i32
  }
  func.func @transform_9(%arg0: i32, %arg1: i32) -> (i32, i32) {
    %c0_i32 = arith.constant 0 : i32
    %c0_i32_0 = arith.constant 0 : i32
    %c0_i32_1 = arith.constant 0 : i32
    return %c0_i32, %c0_i32_0 : i32, i32
  }
  func.func @transform_10(%arg0: i32, %arg1: i32) -> (i32, i32) {
    %c0_i32 = arith.constant 0 : i32
    %c0_i32_0 = arith.constant 0 : i32
    %c0_i32_1 = arith.constant 0 : i32
    return %c0_i32, %c0_i32_0 : i32, i32
  }
  func.func @transform_11(%arg0: i32, %arg1: i32) -> (i32, i32) {
    %c0_i32 = arith.constant 0 : i32
    %c0_i32_0 = arith.constant 0 : i32
    %c0_i32_1 = arith.constant 0 : i32
    return %c0_i32, %c0_i32_0 : i32, i32
  }
  func.func @transform_12(%arg0: i32, %arg1: i32) -> (i32, i32) {
    %c0_i32 = arith.constant 0 : i32
    %c0_i32_0 = arith.constant 0 : i32
    %c0_i32_1 = arith.constant 0 : i32
    return %c0_i32, %c0_i32_0 : i32, i32
  }
  func.func @transform_13(%arg0: i32, %arg1: i32) -> (i32, i32) {
    %c0_i32 = arith.constant 0 : i32
    %c0_i32_0 = arith.constant 0 : i32
    %c0_i32_1 = arith.constant 0 : i32
    return %c0_i32, %c0_i32_0 : i32, i32
  }
  func.func @transform_14(%arg0: i32, %arg1: i32) -> (i32, i32, i32) {
    %c0_i32 = arith.constant 0 : i32
    %c0_i32_0 = arith.constant 0 : i32
    return %arg0, %arg1, %c0_i32 : i32, i32, i32
  }
  func.func @transform_15(%arg0: i32, %arg1: i32) -> (i32, i32, i32) {
    %c0_i32 = arith.constant 0 : i32
    %c0_i32_0 = arith.constant 0 : i32
    return %arg0, %arg1, %c0_i32 : i32, i32, i32
  }
  func.func @transform_16(%arg0: i32, %arg1: i32) -> (i32, i32, i32) {
    %c0_i32 = arith.constant 0 : i32
    %c0_i32_0 = arith.constant 0 : i32
    return %arg0, %c0_i32, %arg1 : i32, i32, i32
  }
  func.func @transform_17(%arg0: i32, %arg1: i32) -> (i32, i32, i32) {
    %c0_i32 = arith.constant 0 : i32
    %c0_i32_0 = arith.constant 0 : i32
    return %arg0, %c0_i32, %arg1 : i32, i32, i32
  }
}

</mosaic_0001>

<bundles_post_ra>
// kernel: tpu_custom_call.1
= control target key start
LH: loop header
LB: loop body
LE: loop exit
PB: predicated region body
PF: predicated region fallthrough
CT: control target
= control target key end

     0   :  { %s6023_s0 = inlined_call_operand.vmem [shape: f32[2,1,128], index: 0, kind: input, shape index: {}]   ;;  %s6024_s1 = inlined_call_operand.vmem [shape: f32[2,1,128], index: 1, kind: input, shape index: {}]   ;;  %s6025_s2 = inlined_call_operand.vmem [shape: f32[2,128,1], index: 2, kind: input, shape index: {}]   ;;  %s6026_s3 = inlined_call_operand.vmem [shape: f32[2,1,128], index: 3, kind: input, shape index: {}]   ;;  %s6027_s4 = inlined_call_operand.vmem [shape: f32[2,1,128], index: 4, kind: input, shape index: {}]   ;;  %s6028_s5 = inlined_call_operand.hbm [shape: f32[2,1,128], index: 5, kind: input, shape index: {}, may-alias: {5,17}]   ;;  %s6029_s6 = inlined_call_operand.vmem [shape: f32[2,128,1], index: 6, kind: input, shape index: {}]   ;;  %s6030_s7 = inlined_call_operand.hbm [shape: f32[2,128,128], index: 7, kind: input, shape index: {}, may-alias: {7,15}]   ;;  %s6031_s8 = inlined_call_operand.vmem [shape: bf16[128,128], index: 8, kind: input, shape index: {}]   ;;  %s6032_s9 = inlined_call_operand.vmem [shape: f32[1,128], index: 9, kind: input, shape index: {}]   ;;  %s6033_s10 = inlined_call_operand.vmem [shape: bf16[128,640], index: 10, kind: input, shape index: {}]   ;;  %s6034_s11 = inlined_call_operand.vmem [shape: f32[1,640], index: 11, kind: input, shape index: {}]   ;;  %s6035_s12 = inlined_call_operand.vmem [shape: bf16[512,128], index: 12, kind: input, shape index: {}]   ;;  %s6036_s13 = inlined_call_operand.vmem [shape: f32[1,128], index: 13, kind: input, shape index: {}]   ;;  %s6037_s14 = inlined_call_operand.hbm [shape: f32[2,128,128], index: 14, kind: output, shape index: {0}]   ;;  %s6038_s15 = inlined_call_operand.hbm [shape: f32[2,128,128], index: 15, kind: output, shape index: {1}, may-alias: {7,15}]   ;;  %s6039_s16 = inlined_call_operand.hbm [shape: f32[2,1,128], index: 16, kind: output, shape index: {2}]   ;;  %s6040_s17 = inlined_call_operand.hbm [shape: f32[2,1,128], index: 17, kind: output, shape index: {3}, may-alias: {5,17}]  }
   0x1   :  { %6067 = sst [smem:[#allocation60_spill]] %s6023_s0 }
   0x2   :  { %6068 = sst [smem:[#allocation61_spill]] %s6024_s1 }
   0x3   :  { %6069 = sst [smem:[#allocation62_spill]] %s6025_s2 }
   0x4   :  { %6070 = sst [smem:[#allocation63_spill]] %s6026_s3 }
   0x5   :  { %6071 = sst [smem:[#allocation64_spill]] %s6027_s4 }
   0x6   :  { %6072 = sst [smem:[#allocation65_spill]] %s6028_s5 }
   0x7   :  { %6073 = sst [smem:[#allocation66_spill]] %s6036_s13 }
   0x8   :  { %6074 = sst [smem:[#allocation67_spill]] %s6037_s14 }
   0x9   :  { %6075 = sst [smem:[#allocation68_spill]] %s6038_s15 }
   0xa   :  { %6076 = sst [smem:[#allocation69_spill]] %s6039_s16 }
   0xb   :  { %6077 = sst [smem:[#allocation70_spill]] %s6040_s17 }
   0xc   :  { %23 = vsyncpa [#allocation3], 0 }
   0xd   :  { %25 = vsyncpa [#allocation3 + $0x1], 0 }
   0xe   :  { %26 = vsyncpa [#allocation6], 0 }
   0xf   :  { %28 = vsyncpa [#allocation6 + $0x1], 0 }
  0x10   :  { %29 = vsyncpa [#allocation4], 0 }
  0x11   :  { %31 = vsyncpa [#allocation4 + $0x1], 0 }
  0x12   :  { %32 = vsyncpa [#allocation9], 0 }
  0x13   :  { %34 = vsyncpa [#allocation9 + $0x1], 0 }
  0x14   :  { %35 = vsyncpa [#allocation12], 0 }
  0x15   :  { %37 = vsyncpa [#allocation12 + $0x1], 0  ;;  %s4387_s24 = smov 0   ;;  %s4389_s25 = smov 0  }
  0x16   :  { %s4391_s26 = smov 0   ;;  %s4393_s27 = smov 0  }
  0x17   :  { %s4395_s28 = smov 0   ;;  %s4397_s29 = smov 0  }
  0x18 LB: > { %6078 = sst [smem:[#allocation18_spill]] %s4264_s24  ;;  %s4418_s0 = sadd.s32 4294967295, %s4284_s29   ;;  %s4284_s29 = sphi %s4397_s29, %s43_s29   ;;  %s4280_s28 = sphi %s4395_s28, %s6188_s28   ;;  %s4276_s27 = sphi %s4393_s27, %s6187_s27   ;;  %s4272_s26 = sphi %s4391_s26, %s6183_s26   ;;  %s4268_s25 = sphi %s4389_s25, %s6186_s25   ;;  %s4264_s24 = sphi %s4387_s24, %s6185_s24  }
  0x19   : > { %6079 = sst [smem:[#allocation19_spill]] %s4272_s26  ;;  %s6046_s30 = sadd.s32 4294967294, %s4284_s29  }
  0x1a   : > { %s55_s18 = sadd.s32 1, %s4280_s28  ;;  %s200_s19 = sadd.s32 1, %s4272_s26 }
  0x1b   : > { %p57_p0 = scmp.ge.s32.totalorder %s55_s18, 2  ;;  %p207_p1 = scmp.ne.s32.totalorder %s4272_s26, %s4268_s25 }
  0x1c   : > { %p208_p2 = scmp.eq.s32.totalorder %s4284_s29, 0  ;;  %p213_p3 = scmp.ne.s32.totalorder %s4268_s25, %s4264_s24 }
  0x1d   : > { %s6190_s18 = smov (%p57_p0, %s55_s18), 0  ;;  %p214_p5 = scmp.eq.s32.totalorder %s4418_s0, 0 }
  0x1e   : > { %6080 = sst [smem:[#allocation20_spill]] %s6190_s18  ;;  %p4430_p4 = por %p208_p2, %p207_p1 }
  0x1f   : > { %s195_s20 = ssub.s32 %s4280_s28, %s6190_s18  ;;  %p421_p6 = scmp.eq.s32.totalorder %s4418_s0, 1 }
  0x20   : > { %p198_p7 = scmp.eq.s32.totalorder %s195_s20, 0  ;;  %p4438_p8 = por %p214_p5, %p213_p3 }
  0x21   : > { %p4442_p9 = por %p421_p6, %p207_p1  ;;  %p427_p10 = scmp.eq.s32.totalorder %s6046_s30, 1 }
  0x22   : > { %s4449_s23 = scalar_select %p198_p7, %s4272_s26, %s200_s19  }
  0x23   : > { %p4451_p11 = por %p427_p10, %p213_p3  ;;  %p3776_p13 = scmp.lt.s32.totalorder %s4284_s29, 2 }
  0x24   : > { %6084 = sst [smem:[#allocation21_spill]] %s4449_s23  ;;  %s4458_s20 = sand.u32 1, %s4272_s26  }
  0x25   : > { %s6085_s24 = scalar_select %p4451_p11, 1, 0 }
  0x26   : > { %s3411_s18 = sshll.u32 %s4280_s28, 4  ;;  %s595_s14 = scalar_lea.vmem [#allocation2], %s4458_s20 }
  0x27   : > { %6086 = sst [smem:[#allocation22_spill]] %s6085_s24  ;;  %s603_s13 = sshll.u32 %s595_s14, 4  ;;  %s604_s13 = int_to_ptr.vmem [resolvable:$true] %s603_s13 }
  0x28   : > { %s6087_s5 = sld [smem:[#allocation65_spill]]  ;;  %p4467_p0 = pnand %p3776_p13, %p4430_p4 }
  0x29   : > { %p3415_p1 = scmp.ge.s32.totalorder %s4284_s29, 1  ;;  %p644_p2 = scmp.lt.s32.totalorder %s4284_s29, 3 }
  0x2a   : > { %s3412_s23 = sshll.u32 %s4458_s20, 7  ;;  %s593_s26 = scalar_lea.sflag [#allocation3], %s4458_s20 }
  0x2b   : > { %p4060_p3 = pneg %p4467_p0  ;;  %s4071_s24 = scalar_lea.vmem %s604_s13, 16 }
  0x2c   : > { %p4072_p5 = scmp.ne.s32.totalorder %s604_s13, %s4071_s24  ;;  %s4286_s14 = smov [#allocation2]  }
  0x2d   : > { %s4076_s16 = sshll.u32 %s4286_s14, 4  ;;  %s4077_s16 = int_to_ptr.vmem [resolvable:$false] %s4076_s16 }
  0x2e   : > { %s601_s30 = scalar_lea.hbm %s6087_s5, %s3411_s18  ;;  %p4074_p6 = pnand %p4072_p5, %p4060_p3 }
  0x2f   : > { %s4078_s17 = scalar_lea.vmem %s4077_s16, 32  ;;  %p4079_p4 = scmp.lt.s32.totalorder %s604_s13, %s4077_s16 }
  0x30   : > { %p4075_p7 = pneg %p4074_p6  ;;  %p4080_p10 = scmp.lt.s32.totalorder %s4078_s17, %s4071_s24 }
  0x32   : > { %p4081_p13 = por %p4080_p10, %p4079_p4 }
  0x34   : > { %p4082_p12 = pnand %p4081_p13, %p4075_p7 }
  0x36   : > { %4085 = shalt.err (!%p4082_p12)
}
  0x37   : > { %3759 = dma.hbm_to_vmem [thread:$0]  (!%p4467_p0), %s601_s30, 16, %s604_s13, %s593_s26  }
  0x38   : > { %p4486_p5 = pnand %p3415_p1, %p644_p2  ;;  %s3515_s1 = sshll.u32 %s4280_s28, 11 }
  0x39   : > { %s627_s14 = scalar_lea.vmem [#allocation5], %s3412_s23  ;;  %s635_s5 = scalar_lea.hbm %s6030_s7, %s3515_s1 }
  0x3a   : > { %s636_s24 = sshll.u32 %s627_s14, 4  ;;  %s624_s4 = scalar_lea.sflag [#allocation6], %s4458_s20  ;;  %s637_s24 = int_to_ptr.vmem [resolvable:$true] %s636_s24 }
  0x3b   : > { %s4099_s15 = scalar_lea.vmem %s637_s24, 2048  ;;  %s4287_s13 = smov [#allocation5]  }
  0x3c   : > { %p4100_p12 = scmp.ne.s32.totalorder %s637_s24, %s4099_s15  ;;  %s4104_s26 = sshll.u32 %s4287_s13, 4  ;;  %s4105_s26 = int_to_ptr.vmem [resolvable:$false] %s4104_s26 }
  0x3d   : > { %s4106_s30 = scalar_lea.vmem %s4105_s26, 4096  ;;  %p4107_p1 = scmp.lt.s32.totalorder %s637_s24, %s4105_s26 }
  0x3e   : > { %p4102_p6 = pnand %p4100_p12, %p4060_p3  ;;  %p4108_p2 = scmp.lt.s32.totalorder %s4106_s30, %s4099_s15 }
  0x40   : > { %p4103_p7 = pneg %p4102_p6  ;;  %p4109_p4 = por %p4108_p2, %p4107_p1 }
  0x42   : > { %p4110_p10 = pnand %p4109_p4, %p4103_p7 }
  0x44   : > { %4113 = shalt.err (!%p4110_p10)
}
  0x45   : > { %s4288_s23 = smov 128   ;;  %s4289_s1 = smov 8  }
  0x46   : > { %3762 = dma.hbm_to_vmem [thread:$0]  (!%p4467_p0), %s635_s5, 2048, %s637_s24, %s624_s4, %s4288_s23, %s4288_s23, %s4289_s1  }
  0x47   : > { %648 = sbr.rel (%p4486_p5) target bundleno = 1052 (0x41c), region = 76 }
  0x4c   : > { %s4503_s20 = sand.u32 1, %s4268_s25  }
  0x4d   : > { %s651_s14 = scalar_lea.sflag [#allocation3], %s4503_s20  ;;  %s653_s16 = scalar_lea.vmem [#allocation2], %s4503_s20 }
  0x4e   : > { %4243 = dma.done.wait (%p4438_p8), %s651_s14, 16  }
  0x4f   : > { %4245 = vsyncadd (%p4438_p8), %s651_s14, 4294967280  ;;  %s4512_s4 = sshll.u32 %s4503_s20, 7  ;;  %s659_s5 = scalar_lea.sflag [#allocation6], %s4503_s20 }
  0x50   : > { %s4516_s15 = scalar_lea.vmem [#allocation5], %s4512_s4 }
  0x51   : > { %4247 = dma.done.wait (%p4438_p8), %s659_s5, 2048  }
  0x52   : > { %4249 = vsyncadd (%p4438_p8), %s659_s5, 4294965248  ;;  %p766_p0 = scmp.lt.s32.totalorder %s4276_s27, 1  ;;  %v4290_v0 = vmov 0   ;;  %s6090_s2 = sld [smem:[#allocation62_spill]]  ;;  %v3833_v29 = vld [vmem:[%s6031_s8 + $0x38] sm:$0xff]   ;;  %v3834_v30 = vld [vmem:[%s6031_s8 + $0x30] sm:$0xff]  }
  0x53   : > { %3832 = vset.pattern.permute.xlu1 %v4290_v0  ;;  %3831 = vset.pattern.permute.xlu0 %v4290_v0  ;;  %v3835_v36 = vld [vmem:[%s6031_s8 + $0x28] sm:$0xff]   ;;  %v3836_v44 = vld [vmem:[%s6031_s8 + $0x20] sm:$0xff]   ;;  %v3837_v48 = vld [vmem:[%s6031_s8 + $0x18] sm:$0xff]   ;;  %s6091_s3 = sld [smem:[#allocation63_spill]]  ;;  %s4666_s17 = scalar_lea.vmem [#allocation8], %s4512_s4 }
  0x54   : > { %s4526_s19 = scalar_select %p766_p0, %s4276_s27, 1  ;;  %1668 = vmatprep.mubr.bf16.mxu1 %v4290_v0  ;;  %3680 = vmatprep.subr.bf16.mxu0 %v3833_v29  ;;  %v3838_v63 = vld [vmem:[%s6031_s8 + $0x10] sm:$0xff]  }
  0x55   : > { %3681 = vmatpush3.bf16.msra.mxu0 %v3833_v29  ;;  %v3847_v29 = vld [vmem:[%s6033_s10 + $0xf4] ss:$20 sps:$4 sm:$0xff]   ;;  %s6063_s23 = sshll.u32 %s4276_s27, 11  ;;  %s6151_s5 = sld [smem:[#allocation68_spill]] }
  0x56   : > { %s3516_s18 = sshll.u32 %s4526_s19, 7  ;;  %3682 = vmatprep.subr.bf16.mxu0 %v3834_v30  ;;  %s4291_s21 = smov [#allocation8]  }
  0x57   : > { %s4538_s30 = scalar_lea.vmem %s6029_s6, %s3516_s18  ;;  %s4118_s26 = sshll.u32 %s4291_s21, 4  ;;  %s4119_s26 = int_to_ptr.vmem [resolvable:$false] %s4118_s26 }
  0x58   : > { %s4533_s13 = scalar_lea.vmem %s6090_s2, %s3516_s18  ;;  %v831_v2 = vld [vmem:[%s4538_s30 + $0x10] sm:$0xff]  ;;  %v829_v5 = vld [vmem:[%s4538_s30] sm:$0xff]  ;;  %v832_v8 = vld [vmem:[%s4538_s30 + $0x18] sm:$0xff] }
  0x59   : > { %v811_v1 = vld [vmem:[%s4533_s13 + $0x10] sm:$0xff]  ;;  %v847_v3 = vmul.f32 0.13533528, %v831_v2  ;;  %v809_v4 = vld [vmem:[%s4533_s13] sm:$0xff]  ;;  %v812_v6 = vld [vmem:[%s4533_s13 + $0x18] sm:$0xff]  ;;  %3683 = vmatpush3.bf16.msra.mxu0 %v3834_v30  ;;  %s787_s14 = scalar_lea.vmem %s6091_s3, %s4526_s19 }
  0x5a   : > { %905 = vperm.xlu1 %3832, %v811_v1   ;;  %v845_v7 = vmul.f32 0.13533528, %v829_v5  ;;  %895 = vperm.xlu0 %3831, %v809_v4   ;;  %v810_v9 = vld [vmem:[%s4533_s13 + $0x8] sm:$0xff]  ;;  %v848_v11 = vmul.f32 0.13533528, %v832_v8  ;;  %v833_v22 = vld [vmem:[%s4538_s30 + $0x20] sm:$0xff] }
  0x5b   : > { %v830_v10 = vld [vmem:[%s4538_s30 + $0x8] sm:$0xff]  ;;  %v863_v16 = vadd.f32 %v847_v3, %v811_v1  ;;  %v813_v25 = vld [vmem:[%s4533_s13 + $0x20] sm:$0xff]  ;;  %v836_v26 = vld [vmem:[%s4538_s30 + $0x38] sm:$0xff]  ;;  %v849_v27 = vmul.f32 0.13533528, %v833_v22  ;;  %3684 = vmatprep.subr.bf16.mxu0 %v3835_v36  ;;  %s5759_s18 = scalar_lea.hbm %s6151_s5, %s6063_s23 }
  0x5c   : > { %v846_v12 = vmul.f32 0.13533528, %v830_v10  ;;  %v861_v13 = vadd.f32 %v845_v7, %v809_v4  ;;  %v864_v14 = vadd.f32 %v848_v11, %v812_v6  ;;  %v834_v21 = vld [vmem:[%s4538_s30 + $0x28] sm:$0xff]  ;;  %v835_v28 = vld [vmem:[%s4538_s30 + $0x30] sm:$0xff]  ;;  %v852_v32 = vmul.f32 0.13533528, %v836_v26 }
  0x5d   : > { %v1013_v20 = vmul.f32 0.5, %v863_v16  ;;  %v814_v23 = vld [vmem:[%s4533_s13 + $0x28] sm:$0xff]  ;;  %v850_v24 = vmul.f32 0.13533528, %v834_v21  ;;  %v865_v33 = vadd.f32 %v849_v27, %v813_v25  ;;  %v816_v34 = vld [vmem:[%s4533_s13 + $0x38] sm:$0xff]  ;;  %v815_v37 = vld [vmem:[%s4533_s13 + $0x30] sm:$0xff]  ;;  %3685 = vmatpush3.bf16.msra.mxu0 %v3835_v36 }
  0x5e   : > { %910 = vperm.xlu1 %3832, %v812_v6   ;;  %v862_v15 = vadd.f32 %v846_v12, %v810_v9  ;;  %v1011_v17 = vmul.f32 0.5, %v861_v13  ;;  %900 = vperm.xlu0 %3831, %v810_v9   ;;  %v1014_v19 = vmul.f32 0.5, %v864_v14  ;;  %v851_v35 = vmul.f32 0.13533528, %v835_v28  ;;  %v838_v38 = vld [vmem:[%s4538_s30 + $0x48] sm:$0xff]  ;;  %v837_v41 = vld [vmem:[%s4538_s30 + $0x40] sm:$0xff] }
  0x5f   : > { %v866_v31 = vadd.f32 %v850_v24, %v814_v23  ;;  %v868_v40 = vadd.f32 %v852_v32, %v816_v34  ;;  %v1015_v42 = vmul.f32 0.5, %v865_v33  ;;  %v840_v45 = vld [vmem:[%s4538_s30 + $0x58] sm:$0xff]  ;;  %v854_v46 = vmul.f32 0.13533528, %v838_v38  ;;  %v839_v47 = vld [vmem:[%s4538_s30 + $0x50] sm:$0xff]  ;;  %v818_v52 = vld [vmem:[%s4533_s13 + $0x48] sm:$0xff]  ;;  %3686 = vmatprep.subr.bf16.mxu0 %v3836_v44 }
  0x60   : > { %v1012_v18 = vmul.f32 0.5, %v862_v15  ;;  %v867_v43 = vadd.f32 %v851_v35, %v815_v37  ;;  %v853_v50 = vmul.f32 0.13533528, %v837_v41  ;;  %v856_v53 = vmul.f32 0.13533528, %v840_v45  ;;  %v817_v54 = vld [vmem:[%s4533_s13 + $0x40] sm:$0xff] }
  0x61   : > { %v1016_v39 = vmul.f32 0.5, %v866_v31  ;;  %v1018_v49 = vmul.f32 0.5, %v868_v40  ;;  %v855_v55 = vmul.f32 0.13533528, %v839_v47  ;;  %v820_v56 = vld [vmem:[%s4533_s13 + $0x58] sm:$0xff]  ;;  %v819_v57 = vld [vmem:[%s4533_s13 + $0x50] sm:$0xff]  ;;  %v870_v59 = vadd.f32 %v854_v46, %v818_v52  ;;  %3687 = vmatpush3.bf16.msra.mxu0 %v3836_v44 }
  0x62   : > { %1034 = vperm.xlu1 %3832, %v1012_v18   ;;  %1029 = vperm.xlu0 %3831, %v1011_v17   ;;  %v1017_v51 = vmul.f32 0.5, %v867_v43  ;;  %v842_v58 = vld [vmem:[%s4538_s30 + $0x68] sm:$0xff]  ;;  %v841_v60 = vld [vmem:[%s4538_s30 + $0x60] sm:$0xff]  ;;  %v869_v61 = vadd.f32 %v853_v50, %v817_v54  ;;  %v844_v62 = vld [vmem:[%s4538_s30 + $0x78] sm:$0xff]  ;;  %v872_v1 = vadd.f32 %v856_v53, %v820_v56 }
  0x63   : > { %3688 = vmatprep.subr.bf16.mxu0 %v3837_v48  ;;  %v871_v2 = vadd.f32 %v855_v55, %v819_v57  ;;  %v843_v3 = vld [vmem:[%s4538_s30 + $0x70] sm:$0xff]  ;;  %v3839_v4 = vld [vmem:[%s6031_s8 + $0x8] sm:$0xff]   ;;  %v1020_v5 = vmul.f32 0.5, %v870_v59  ;;  %v858_v6 = vmul.f32 0.13533528, %v842_v58  ;;  %v3840_v13 = vld [vmem:[%s6031_s8] sm:$0xff]  }
  0x64   : > { %v1019_v7 = vmul.f32 0.5, %v869_v61  ;;  %v857_v8 = vmul.f32 0.13533528, %v841_v60  ;;  %v1022_v9 = vmul.f32 0.5, %v872_v1  ;;  %v860_v11 = vmul.f32 0.13533528, %v844_v62 }
  0x65   : > { %3689 = vmatpush3.bf16.msra.mxu0 %v3837_v48  ;;  %v1021_v10 = vmul.f32 0.5, %v871_v2  ;;  %v859_v12 = vmul.f32 0.13533528, %v843_v3  ;;  %v822_v14 = vld [vmem:[%s4533_s13 + $0x68] sm:$0xff]  ;;  %v821_v15 = vld [vmem:[%s4533_s13 + $0x60] sm:$0xff]  ;;  %v824_v18 = vld [vmem:[%s4533_s13 + $0x78] sm:$0xff] }
  0x66   : > { %1044 = vperm.xlu1 %3832, %v1014_v19   ;;  %1039 = vperm.xlu0 %3831, %v1013_v20   ;;  %v874_v16 = vadd.f32 %v858_v6, %v822_v14  ;;  %v873_v17 = vadd.f32 %v857_v8, %v821_v15  ;;  %v823_v19 = vld [vmem:[%s4533_s13 + $0x70] sm:$0xff]  ;;  %v876_v20 = vadd.f32 %v860_v11, %v824_v18  ;;  %v3843_v27 = vld [vmem:[%s6033_s10 + $0x118] ss:$20 sps:$4 sm:$0xff]   ;;  %v3855_v32 = vld [vmem:[%s6033_s10 + $0xc8] ss:$20 sps:$4 sm:$0xff]   ;;  %s6092_s30 = sld [smem:[#allocation60_spill]] }
  0x67   : > { %3690 = vmatprep.subr.bf16.mxu0 %v3838_v63  ;;  %v875_v21 = vadd.f32 %v859_v12, %v823_v19  ;;  %v3841_v26 = vld [vmem:[%s6033_s10 + $0x11c] ss:$20 sps:$4 sm:$0xff]   ;;  %v3846_v28 = vld [vmem:[%s6033_s10 + $0x124] ss:$20 sps:$4 sm:$0xff]   ;;  %v3853_v31 = vld [vmem:[%s6033_s10 + $0xcc] ss:$20 sps:$4 sm:$0xff]  }
  0x68   : > { %v1024_v22 = vmul.f32 0.5, %v874_v16  ;;  %v1026_v24 = vmul.f32 0.5, %v876_v20  ;;  %1636 = vmatprep.subr.bf16.mxu1 %v3841_v26  ;;  %v3849_v30 = vld [vmem:[%s6033_s10 + $0xf0] ss:$20 sps:$4 sm:$0xff]   ;;  %v3867_v36 = vld [vmem:[%s6033_s10 + $0x78] ss:$20 sps:$4 sm:$0xff]  }
  0x69   : > { %3691 = vmatpush3.bf16.msra.mxu0 %v3838_v63  ;;  %1637 = vmatpush1.bf16.msra.mxu1 %v3843_v27  ;;  %v3859_v33 = vld [vmem:[%s6033_s10 + $0xa4] ss:$20 sps:$4 sm:$0xff]   ;;  %v3865_v35 = vld [vmem:[%s6033_s10 + $0x7c] ss:$20 sps:$4 sm:$0xff]   ;;  %v826_v40 = vld [vmem:[%s787_s14] sm:$0x1] }
  0x6a   : > { %920 = vperm.xlu1 %3832, %v814_v23   ;;  %915 = vperm.xlu0 %3831, %v813_v25   ;;  %v1023_v23 = vmul.f32 0.5, %v873_v17  ;;  %v1025_v25 = vmul.f32 0.5, %v875_v21  ;;  %v3873_v38 = vld [vmem:[%s6033_s10 + $0x50] ss:$20 sps:$4 sm:$0xff]   ;;  %v827_v41 = vmul.f32 0.13533528, %v826_v40 }
  0x6b   : > { %3692 = vmatprep.subr.bf16.mxu0 %v3839_v4  ;;  %1638 = vmatprep.subr.bf16.mxu1 %v3847_v29  ;;  %v878_v53 = vld [vmem:[%s4516_s15 + $0x8] sm:$0xff]  ;;  %v877_v55 = vld [vmem:[%s4516_s15] sm:$0xff]  ;;  %v880_v63 = vld [vmem:[%s4516_s15 + $0x18] sm:$0xff]  ;;  %s3061_s13 = sand.u32 1, %s4418_s0  }
  0x6c   : > { %s768_s24 = scalar_lea.vmem %s6092_s30, %s4526_s19  ;;  %v879_v2 = vld [vmem:[%s4516_s15 + $0x10] sm:$0xff]  ;;  %v881_v26 = vld [vmem:[%s4516_s15 + $0x20] sm:$0xff]  ;;  %s3103_s30 = sshll.u32 %s4666_s17, 4  ;;  %s5766_s30 = int_to_ptr.vmem [resolvable:$true] %s3103_s30 }
  0x6d   : > { %3693 = vmatpush3.bf16.msra.mxu0 %v3839_v4  ;;  %1639 = vmatpush1.bf16.msra.mxu1 %v3849_v30  ;;  %v808_v43 = vld [vmem:[%s768_s24] sm:$0x1]  ;;  %s5768_s24 = scalar_lea.sflag [#allocation9], %s3061_s13  ;;  %s4114_s0 = scalar_lea.vmem %s5766_s30, 2048 }
  0x6e   : > { %930 = vperm.xlu1 %3832, %v816_v34   ;;  %925 = vperm.xlu0 %3831, %v815_v37   ;;  %v3861_v34 = vld [vmem:[%s6033_s10 + $0xa0] ss:$20 sps:$4 sm:$0xff]   ;;  %v828_v45 = vadd.f32 %v827_v41, %v808_v43  ;;  %p4115_p8 = scmp.ne.s32.totalorder %s5766_s30, %s4114_s0  ;;  %p4121_p5 = scmp.lt.s32.totalorder %s5766_s30, %s4119_s26 }
  0x6f   : > { %3694 = vmatprep.subr.bf16.mxu0 %v3840_v13  ;;  %1640 = vmatprep.subr.bf16.mxu1 %v3853_v31  ;;  %v3871_v37 = vld [vmem:[%s6033_s10 + $0x54] ss:$20 sps:$4 sm:$0xff]  }
  0x70   : > { %v3844_v16 = vld [vmem:[%s6033_s10 + $0x120] ss:$20 sps:$4 sm:$0xff]   ;;  %p4116_p3 = pnand %p4115_p8, %p4442_p9 }
  0x71   : > { %3695 = vmatpush3.bf16.msra.mxu0 %v3840_v13  ;;  %1641 = vmatpush1.bf16.msra.mxu1 %v3855_v32  ;;  %v3856_v32 = vld [vmem:[%s6033_s10 + $0xd0] ss:$20 sps:$4 sm:$0xff]  }
  0x72   : > { %1054 = vperm.xlu1 %3832, %v1016_v39   ;;  %1049 = vperm.xlu0 %3831, %v1015_v42   ;;  %v974_v39 = vlaneseq  ;;  %p4117_p13 = pneg %p4116_p3 }
  0x73   : > { %1749 = vmatprep.subr.bf16.mxu0 %v3846_v28  ;;  %1642 = vmatprep.subr.bf16.mxu1 %v3859_v33 }
  0x74   : > { %v4643_v42 = vshrl.u32 %v974_v39, 7 }
  0x75   : > { %1643 = vmatpush1.bf16.msra.mxu1 %v3861_v34  ;;  %v884_v34 = vld [vmem:[%s4516_s15 + $0x38] sm:$0xff] }
  0x76   : > { %1064 = vperm.xlu1 %3832, %v1018_v49   ;;  %1059 = vperm.xlu0 %3831, %v1017_v51   ;;  %v4646_v44 = vsub.s32 0, %v4643_v42 }
  0x77   : > { %1644 = vmatprep.subr.bf16.mxu1 %v3865_v35 }
  0x78   : > { %6093 = vst [vmem:[#allocation23_spill] sm:$0xff] %v4646_v44  ;;  %v4649_v48 = vrot.slane %v828_v45, %v4646_v44  ;;  %v4652_v50 = vrot.slane %v808_v43, %v4646_v44 }
  0x79   : > { %1645 = vmatpush1.bf16.msra.mxu1 %v3867_v36 }
  0x7a   : > { %940 = vperm.xlu1 %3832, %v818_v52   ;;  %935 = vperm.xlu0 %3831, %v817_v54  }
  0x7b   : > { %1646 = vmatprep.subr.bf16.mxu1 %v3871_v37  ;;  %v3864_v37 = vld [vmem:[%s6033_s10 + $0xac] ss:$20 sps:$4 sm:$0xff]  }
  0x7d   : > { %1647 = vmatpush1.bf16.msra.mxu1 %v3873_v38  ;;  %v883_v38 = vld [vmem:[%s4516_s15 + $0x30] sm:$0xff] }
  0x7e   : > { %950 = vperm.xlu1 %3832, %v820_v56   ;;  %945 = vperm.xlu0 %3831, %v819_v57  }
  0x82   : > { %1074 = vperm.xlu1 %3832, %v1020_v5   ;;  %1069 = vperm.xlu0 %3831, %v1019_v7  }
  0x86   : > { %1084 = vperm.xlu1 %3832, %v1022_v9   ;;  %1079 = vperm.xlu0 %3831, %v1021_v10  }
  0x8a   : > { %960 = vperm.xlu1 %3832, %v822_v14   ;;  %955 = vperm.xlu0 %3831, %v821_v15  }
  0x8e   : > { %970 = vperm.xlu1 %3832, %v824_v18   ;;  %965 = vperm.xlu0 %3831, %v823_v19   ;;  %v3852_v18 = vld [vmem:[%s6033_s10 + $0xfc] ss:$20 sps:$4 sm:$0xff]  }
  0x92   : > { %1094 = vperm.xlu1 %3832, %v1024_v22   ;;  %1089 = vperm.xlu0 %3831, %v1023_v23   ;;  %v3850_v22 = vld [vmem:[%s6033_s10 + $0xf8] ss:$20 sps:$4 sm:$0xff]  }
  0x93   : > { %v882_v23 = vld [vmem:[%s4516_s15 + $0x28] sm:$0xff] }
  0x96   : > { %1104 = vperm.xlu1 %3832, %v1026_v24   ;;  %1099 = vperm.xlu0 %3831, %v1025_v25   ;;  %v3858_v25 = vld [vmem:[%s6033_s10 + $0xd4] ss:$20 sps:$4 sm:$0xff]  }
  0xd5   : > { %v906_v46 = vpop.permute.xlu1 %905  ;;  %v896_v47 = vpop.permute.xlu0 %895 }
  0xd6   : > { %v979_v52 = vmul.f32 %v4649_v48, %v896_v47  ;;  %v981_v61 = vmul.f32 %v4649_v48, %v906_v46  ;;  %v3862_v47 = vld [vmem:[%s6033_s10 + $0xa8] ss:$20 sps:$4 sm:$0xff]  }
  0xd8   : > { %v995_v62 = vadd.f32 %v979_v52, %v877_v55  ;;  %v997_v9 = vadd.f32 %v981_v61, %v879_v2  ;;  %v886_v2 = vld [vmem:[%s4516_s15 + $0x48] sm:$0xff] }
  0xd9   : > { %v911_v49 = vpop.permute.xlu1 %910  ;;  %v901_v51 = vpop.permute.xlu0 %900 }
  0xda   : > { %v980_v54 = vmul.f32 %v4649_v48, %v901_v51  ;;  %v982_v57 = vmul.f32 %v4649_v48, %v911_v49 }
  0xdc   : > { %v996_v58 = vadd.f32 %v980_v54, %v878_v53  ;;  %v998_v6 = vadd.f32 %v982_v57, %v880_v63  ;;  %v3870_v53 = vld [vmem:[%s6033_s10 + $0x84] ss:$20 sps:$4 sm:$0xff]  }
  0xdd   : > { %v1035_v56 = vpop.permute.xlu1 %1034  ;;  %v1030_v60 = vpop.permute.xlu0 %1029 }
  0xde   : > { %v1114_v59 = vmul.f32 %v4652_v50, %v1035_v56  ;;  %v1113_v1 = vmul.f32 %v4652_v50, %v1030_v60  ;;  %v3876_v60 = vld [vmem:[%s6033_s10 + $0x5c] ss:$20 sps:$4 sm:$0xff]  }
  0xe0   : > { %v1130_v3 = vsub.f32 %v996_v58, %v1114_v59  ;;  %v1129_v5 = vsub.f32 %v995_v62, %v1113_v1  ;;  %v3868_v58 = vld [vmem:[%s6033_s10 + $0x80] ss:$20 sps:$4 sm:$0xff]   ;;  %v3874_v1 = vld [vmem:[%s6033_s10 + $0x58] ss:$20 sps:$4 sm:$0xff]  }
  0xe1   : > { %v1045_v4 = vpop.permute.xlu1 %1044  ;;  %v1040_v8 = vpop.permute.xlu0 %1039 }
  0xe2   : > { %v1116_v7 = vmul.f32 %v4652_v50, %v1045_v4  ;;  %1146 = vst [vmem:[%s4666_s17 + $0x8] sm:$0xff] %v1130_v3  ;;  %v1115_v10 = vmul.f32 %v4652_v50, %v1040_v8  ;;  %1145 = vst [vmem:[%s4666_s17] sm:$0xff] %v1129_v5  ;;  %v1169_v11 = vpack.c.bf16 %v1130_v3, %v1129_v5  ;;  %v885_v4 = vld [vmem:[%s4516_s15 + $0x40] sm:$0xff] }
  0xe4   : > { %v1132_v12 = vsub.f32 %v998_v6, %v1116_v7  ;;  %v1131_v13 = vsub.f32 %v997_v9, %v1115_v10  ;;  %3696 = vmatprep.mubr.bf16.mxu0 %v1169_v11  ;;  %v888_v11 = vld [vmem:[%s4516_s15 + $0x58] sm:$0xff] }
  0xe5   : > { %v921_v14 = vpop.permute.xlu1 %920  ;;  %v916_v15 = vpop.permute.xlu0 %915 }
  0xe6   : > { %1148 = vst [vmem:[%s4666_s17 + $0x18] sm:$0xff] %v1132_v12  ;;  %1147 = vst [vmem:[%s4666_s17 + $0x10] sm:$0xff] %v1131_v13  ;;  %v1170_v17 = vpack.c.bf16 %v1132_v12, %v1131_v13  ;;  %v984_v20 = vmul.f32 %v4649_v48, %v921_v14  ;;  %v983_v24 = vmul.f32 %v4649_v48, %v916_v15  ;;  %v887_v14 = vld [vmem:[%s4516_s15 + $0x50] sm:$0xff] }
  0xe8   : > { %3697 = vmatmul.mubr.bf16.vlgmr.msra.gmra.mxu0 %v1170_v17  ;;  %v1000_v28 = vadd.f32 %v984_v20, %v882_v23  ;;  %v999_v33 = vadd.f32 %v983_v24, %v881_v26 }
  0xe9   : > { %v931_v19 = vpop.permute.xlu1 %930  ;;  %v926_v21 = vpop.permute.xlu0 %925  ;;  %1750 = vmatpush1.bf16.msra.mxu0 %v3844_v16 }
  0xea   : > { %1751 = vmatprep.subr.bf16.mxu0 %v3852_v18  ;;  %v986_v29 = vmul.f32 %v4649_v48, %v931_v19  ;;  %v985_v35 = vmul.f32 %v4649_v48, %v926_v21 }
  0xec   : > { %v1002_v43 = vadd.f32 %v986_v29, %v884_v34  ;;  %v1001_v49 = vadd.f32 %v985_v35, %v883_v38  ;;  %v889_v34 = vld [vmem:[%s4516_s15 + $0x60] sm:$0xff] }
  0xed   : > { %v1055_v27 = vpop.permute.xlu1 %1054  ;;  %v1050_v31 = vpop.permute.xlu0 %1049  ;;  %1752 = vmatpush1.bf16.msra.mxu0 %v3850_v22 }
  0xee   : > { %v1118_v30 = vmul.f32 %v4652_v50, %v1055_v27  ;;  %v1117_v36 = vmul.f32 %v4652_v50, %v1050_v31  ;;  %1753 = vmatprep.subr.bf16.mxu0 %v3858_v25 }
  0xf0   : > { %v1134_v39 = vsub.f32 %v1000_v28, %v1118_v30  ;;  %v1133_v40 = vsub.f32 %v999_v33, %v1117_v36 }
  0xf1   : > { %v1065_v41 = vpop.permute.xlu1 %1064  ;;  %v1060_v46 = vpop.permute.xlu0 %1059  ;;  %1754 = vmatpush1.bf16.msra.mxu0 %v3856_v32  ;;  %v890_v32 = vld [vmem:[%s4516_s15 + $0x68] sm:$0xff] }
  0xf2   : > { %1150 = vst [vmem:[%s4666_s17 + $0x28] sm:$0xff] %v1134_v39  ;;  %v1120_v45 = vmul.f32 %v4652_v50, %v1065_v41  ;;  %1149 = vst [vmem:[%s4666_s17 + $0x20] sm:$0xff] %v1133_v40  ;;  %v1119_v51 = vmul.f32 %v4652_v50, %v1060_v46  ;;  %v1171_v52 = vpack.c.bf16 %v1134_v39, %v1133_v40  ;;  %1755 = vmatprep.subr.bf16.mxu0 %v3864_v37  ;;  %v892_v41 = vld [vmem:[%s4516_s15 + $0x78] sm:$0xff]  ;;  %v891_v46 = vld [vmem:[%s4516_s15 + $0x70] sm:$0xff]  ;;  %s4120_s15 = scalar_lea.vmem %s4119_s26, 4096 }
  0xf3   : > { %p4122_p12 = scmp.lt.s32.totalorder %s4120_s15, %s4114_s0 }
  0xf4   : > { %v1136_v54 = vsub.f32 %v1002_v43, %v1120_v45  ;;  %v1135_v55 = vsub.f32 %v1001_v49, %v1119_v51  ;;  %3700 = vmatprep.mubr.bf16.mxu0 %v1171_v52 }
  0xf5   : > { %v941_v56 = vpop.permute.xlu1 %940  ;;  %v936_v57 = vpop.permute.xlu0 %935  ;;  %1756 = vmatpush1.bf16.msra.mxu0 %v3862_v47  ;;  %p4123_p6 = por %p4122_p12, %p4121_p5 }
  0xf6   : > { %1152 = vst [vmem:[%s4666_s17 + $0x38] sm:$0xff] %v1136_v54  ;;  %1151 = vst [vmem:[%s4666_s17 + $0x30] sm:$0xff] %v1135_v55  ;;  %v1172_v59 = vpack.c.bf16 %v1136_v54, %v1135_v55  ;;  %1757 = vmatprep.subr.bf16.mxu0 %v3870_v53  ;;  %v988_v62 = vmul.f32 %v4649_v48, %v941_v56  ;;  %v987_v3 = vmul.f32 %v4649_v48, %v936_v57 }
  0xf7   : > { %p4124_p7 = pnand %p4123_p6, %p4117_p13 }
  0xf8   : > { %3701 = vmatmul.mubr.bf16.gmra.mxu0 %v1172_v59  ;;  %v1004_v6 = vadd.f32 %v988_v62, %v886_v2  ;;  %v1003_v10 = vadd.f32 %v987_v3, %v885_v4  ;;  %v3880_v62 = vld [vmem:[%s6033_s10 + $0x30] ss:$20 sps:$4 sm:$0xff]   ;;  %v3885_v2 = vld [vmem:[%s6033_s10] ss:$20 sps:$4 sm:$0xff]   ;;  %v3886_v3 = vld [vmem:[%s6033_s10 + $0x8] ss:$20 sps:$4 sm:$0xff]  }
  0xf9   : > { %v951_v61 = vpop.permute.xlu1 %950  ;;  %v946_v63 = vpop.permute.xlu0 %945  ;;  %1758 = vmatpush1.bf16.msra.mxu0 %v3868_v58  ;;  %v3889_v4 = vld [vmem:[%s6033_s10 + $0x128] ss:$20 sps:$4 sm:$0xff]  }
  0xfa   : > { %1759 = vmatprep.subr.bf16.mxu0 %v3876_v60  ;;  %v990_v7 = vmul.f32 %v4649_v48, %v951_v61  ;;  %v989_v12 = vmul.f32 %v4649_v48, %v946_v63  ;;  %v3877_v60 = vld [vmem:[%s6033_s10 + $0x2c] ss:$20 sps:$4 sm:$0xff]   ;;  %v3882_v61 = vld [vmem:[%s6033_s10 + $0x34] ss:$20 sps:$4 sm:$0xff]   ;;  %v3883_v63 = vld [vmem:[%s6033_s10 + $0x4] ss:$20 sps:$4 sm:$0xff]  }
  0xfb   : > { %1648 = vmatprep.subr.bf16.mxu1 %v3877_v60  ;;  %v3902_v60 = vld [vmem:[%s6035_s12 + $0x28] sm:$0xff]  }
  0xfc   : > { %v1006_v18 = vadd.f32 %v990_v7, %v888_v11  ;;  %v1005_v21 = vadd.f32 %v989_v12, %v887_v14 }
  0xfd   : > { %v1075_v5 = vpop.permute.xlu1 %1074  ;;  %v1070_v9 = vpop.permute.xlu0 %1069  ;;  %1760 = vmatpush1.bf16.msra.mxu0 %v3874_v1  ;;  %v3888_v1 = vld [vmem:[%s6033_s10 + $0xc] ss:$20 sps:$4 sm:$0xff]  }
  0xfe   : > { %v1122_v8 = vmul.f32 %v4652_v50, %v1075_v5  ;;  %v1121_v13 = vmul.f32 %v4652_v50, %v1070_v9  ;;  %1761 = vmatprep.subr.bf16.mxu0 %v3882_v61  ;;  %v3903_v61 = vld [vmem:[%s6035_s12 + $0x60] sm:$0xff]  }
 0x100   : > { %v1138_v15 = vsub.f32 %v1004_v6, %v1122_v8  ;;  %v1137_v16 = vsub.f32 %v1003_v10, %v1121_v13  ;;  %v4785_v8 = vld [vmem:[%s6032_s9] ss:$0 sm:$0xff] }
 0x101   : > { %v1085_v17 = vpop.permute.xlu1 %1084  ;;  %v1080_v20 = vpop.permute.xlu0 %1079  ;;  %1762 = vmatpush1.bf16.msra.mxu0 %v3880_v62  ;;  %v3890_v13 = vld [vmem:[%s6033_s10 + $0x100] ss:$20 sps:$4 sm:$0xff]   ;;  %v3905_v62 = vld [vmem:[%s6035_s12 + $0x58] sm:$0xff]  }
 0x102   : > { %1154 = vst [vmem:[%s4666_s17 + $0x48] sm:$0xff] %v1138_v15  ;;  %v1124_v19 = vmul.f32 %v4652_v50, %v1085_v17  ;;  %1153 = vst [vmem:[%s4666_s17 + $0x40] sm:$0xff] %v1137_v16  ;;  %v1123_v22 = vmul.f32 %v4652_v50, %v1080_v20  ;;  %v1173_v23 = vpack.c.bf16 %v1138_v15, %v1137_v16  ;;  %1763 = vmatprep.subr.bf16.mxu0 %v3888_v1  ;;  %v3891_v15 = vld [vmem:[%s6033_s10 + $0xd8] ss:$20 sps:$4 sm:$0xff]   ;;  %v3892_v20 = vld [vmem:[%s6033_s10 + $0xb0] ss:$20 sps:$4 sm:$0xff]  }
 0x103   : > { %v3907_v1 = vld [vmem:[%s6035_s12 + $0x50] sm:$0xff]  }
 0x104   : > { %v1140_v24 = vsub.f32 %v1006_v18, %v1124_v19  ;;  %v1139_v25 = vsub.f32 %v1005_v21, %v1123_v22  ;;  %3704 = vmatprep.mubr.bf16.mxu0 %v1173_v23  ;;  %v3893_v23 = vld [vmem:[%s6033_s10 + $0x88] ss:$20 sps:$4 sm:$0xff]  }
 0x105   : > { %v961_v26 = vpop.permute.xlu1 %960  ;;  %v956_v27 = vpop.permute.xlu0 %955  ;;  %1764 = vmatpush1.bf16.msra.mxu0 %v3886_v3  ;;  %v3909_v3 = vld [vmem:[%s6035_s12 + $0x48] sm:$0xff]  }
 0x106   : > { %1156 = vst [vmem:[%s4666_s17 + $0x58] sm:$0xff] %v1140_v24  ;;  %1155 = vst [vmem:[%s4666_s17 + $0x50] sm:$0xff] %v1139_v25  ;;  %v1174_v28 = vpack.c.bf16 %v1140_v24, %v1139_v25  ;;  %v992_v30 = vmul.f32 %v4649_v48, %v961_v26  ;;  %v991_v33 = vmul.f32 %v4649_v48, %v956_v27  ;;  %v3894_v27 = vld [vmem:[%s6033_s10 + $0x60] ss:$20 sps:$4 sm:$0xff]  }
 0x108   : > { %3705 = vmatmul.mubr.bf16.gmra.mxu0 %v1174_v28  ;;  %v1008_v36 = vadd.f32 %v992_v30, %v890_v32  ;;  %v1007_v40 = vadd.f32 %v991_v33, %v889_v34  ;;  %v3896_v34 = vld [vmem:[%s6033_s10 + $0x10] ss:$20 sps:$4 sm:$0xff]  }
 0x109   : > { %v971_v29 = vpop.permute.xlu1 %970  ;;  %v966_v31 = vpop.permute.xlu0 %965 }
 0x10a   : > { %v994_v37 = vmul.f32 %v4649_v48, %v971_v29  ;;  %v993_v43 = vmul.f32 %v4649_v48, %v966_v31  ;;  %v3895_v29 = vld [vmem:[%s6033_s10 + $0x38] ss:$20 sps:$4 sm:$0xff]  }
 0x10c   : > { %v1010_v52 = vadd.f32 %v994_v37, %v892_v41  ;;  %v1009_v55 = vadd.f32 %v993_v43, %v891_v46 }
 0x10d   : > { %v1095_v35 = vpop.permute.xlu1 %1094  ;;  %v1090_v39 = vpop.permute.xlu0 %1089 }
 0x10e   : > { %v1126_v38 = vmul.f32 %v4652_v50, %v1095_v35  ;;  %v1125_v45 = vmul.f32 %v4652_v50, %v1090_v39 }
 0x110   : > { %v1142_v47 = vsub.f32 %v1008_v36, %v1126_v38  ;;  %v1141_v49 = vsub.f32 %v1007_v40, %v1125_v45 }
 0x111   : > { %v1105_v51 = vpop.permute.xlu1 %1104  ;;  %v1100_v54 = vpop.permute.xlu0 %1099 }
 0x112   : > { %1158 = vst [vmem:[%s4666_s17 + $0x68] sm:$0xff] %v1142_v47  ;;  %v1128_v53 = vmul.f32 %v4652_v50, %v1105_v51  ;;  %1157 = vst [vmem:[%s4666_s17 + $0x60] sm:$0xff] %v1141_v49  ;;  %v1127_v56 = vmul.f32 %v4652_v50, %v1100_v54  ;;  %v1175_v57 = vpack.c.bf16 %v1142_v47, %v1141_v49  ;;  %v3879_v50 = vld [vmem:[%s6033_s10 + $0x28] ss:$20 sps:$4 sm:$0xff]  }
 0x113   : > { %1649 = vmatpush1.bf16.msra.mxu1 %v3879_v50  ;;  %v3904_v50 = vld [vmem:[%s6035_s12 + $0x20] sm:$0xff]  }
 0x114   : > { %v1144_v58 = vsub.f32 %v1010_v52, %v1128_v53  ;;  %v1143_v48 = vsub.f32 %v1009_v55, %v1127_v56  ;;  %3708 = vmatprep.mubr.bf16.mxu0 %v1175_v57  ;;  %1650 = vmatprep.subr.bf16.mxu1 %v3883_v63  ;;  %v3897_v57 = vld [vmem:[%s6035_s12 + $0x78] sm:$0xff]  }
 0x115   : > { %3552 = vmatprep.subr.bf16.mxu0 %v3897_v57  ;;  %v3906_v63 = vld [vmem:[%s6035_s12 + $0x18] sm:$0xff]  }
 0x116   : > { %1160 = vst [vmem:[%s4666_s17 + $0x78] sm:$0xff] %v1144_v58  ;;  %1159 = vst [vmem:[%s4666_s17 + $0x70] sm:$0xff] %v1143_v48  ;;  %v1176_v59 = vpack.c.bf16 %v1144_v58, %v1143_v48  ;;  %v3899_v58 = vld [vmem:[%s6035_s12 + $0x70] sm:$0xff]  }
 0x117   : > { %1651 = vmatpush1.bf16.msra.mxu1 %v3885_v2  ;;  %v3900_v48 = vld [vmem:[%s6035_s12 + $0x30] sm:$0xff]  }
 0x118   : > { %3709 = vmatmul.mubr.bf16.gmra.mxu0 %v1176_v59  ;;  %3712 = vmatprep.subr.bf16.mxu1 %v3889_v4  ;;  %v3901_v59 = vld [vmem:[%s6035_s12 + $0x68] sm:$0xff]   ;;  %v3908_v2 = vld [vmem:[%s6035_s12 + $0x10] sm:$0xff]  }
 0x119   : > { %1781 = vmatprep.mubr.bf16.mxu0 %v4290_v0 }
 0x1a8   : > { %v3698_v5 = vpop.f32.mrf.mxu0 }
 0x1a9   : > { %v1291_v16 = vadd.f32 %v3698_v5, %v4785_v8  ;;  %v3911_v5 = vld [vmem:[%s6035_s12 + $0x40] sm:$0xff]  }
 0x1aa   : > { %v1282_v6 = vpop.f32.mrf.mxu0 }
 0x1ab   : > { %v1283_v10 = vadd.f32 %v4785_v8, %v1282_v6  ;;  %v3912_v6 = vld [vmem:[%s6035_s12] sm:$0xff]  }
 0x1ac   : > { %v3699_v7 = vpop.f32.mrf.mxu0 }
 0x1ad   : > { %v1294_v14 = vadd.f32 %v3699_v7, %v4785_v8  ;;  %v1409_v7 = vsub.s32 1, %v4643_v42 }
 0x1ae   : > { %v1285_v9 = vpop.f32.mrf.mxu0 }
 0x1af   : > { %v1286_v11 = vadd.f32 %v4785_v8, %v1285_v9  ;;  %v4803_v18 = vpack.c.bf16 %v1294_v14, %v1291_v16  ;;  %v3913_v9 = vld [vmem:[%s6035_s12 + $0xf8] sm:$0xff]   ;;  %v3915_v16 = vld [vmem:[%s6035_s12 + $0xf0] sm:$0xff]  }
 0x1b1   : > { %v4789_v12 = vpack.c.bf16 %v1286_v11, %v1283_v10  ;;  %v4904_v10 = vld [vmem:[%s6034_s11] sm:$0x1f]  ;;  %v3914_v11 = vld [vmem:[%s6035_s12 + $0xb8] sm:$0xff]  }
 0x1b3   : > { %1669 = vmatmul.mubr.bf16.vlgmr.msra.gmra.mxu1 %v4789_v12  ;;  %1782 = vmatmul.mubr.bf16.vlgmr.msra.gmra.mxu0 %v4789_v12 }
 0x1b4   : > { %3713 = vmatpush3.bf16.msra.mxu1 %v3889_v4  ;;  %1678 = vmatprep.mubr.bf16.mxu1 %v4290_v0  ;;  %v3910_v4 = vld [vmem:[%s6035_s12 + $0x8] sm:$0xff]  }
 0x1b5   : > { %1791 = vmatprep.mubr.bf16.mxu0 %v4290_v0  ;;  %3714 = vmatprep.subr.bf16.mxu1 %v3890_v13 }
 0x1b8   : > { %v3702_v17 = vpop.f32.mrf.mxu0  ;;  %3715 = vmatpush3.bf16.msra.mxu1 %v3890_v13 }
 0x1b9   : > { %3716 = vmatprep.subr.bf16.mxu1 %v3891_v15  ;;  %v1307_v30 = vadd.f32 %v3702_v17, %v4785_v8 }
 0x1ba   : > { %v1298_v19 = vpop.f32.mrf.mxu0 }
 0x1bb   : > { %1679 = vmatmul.mubr.bf16.gmra.mxu1 %v4803_v18  ;;  %1792 = vmatmul.mubr.bf16.gmra.mxu0 %v4803_v18  ;;  %v1299_v24 = vadd.f32 %v4785_v8, %v1298_v19  ;;  %v3916_v19 = vld [vmem:[%s6035_s12 + $0xb0] sm:$0xff]  }
 0x1bc   : > { %v3703_v21 = vpop.f32.mrf.mxu0  ;;  %1688 = vmatprep.mubr.bf16.mxu1 %v4290_v0  ;;  %1801 = vmatprep.mubr.bf16.mxu0 %v4290_v0 }
 0x1bd   : > { %3717 = vmatpush3.bf16.msra.mxu1 %v3891_v15  ;;  %v1310_v28 = vadd.f32 %v3703_v21, %v4785_v8 }
 0x1be   : > { %v1301_v22 = vpop.f32.mrf.mxu0  ;;  %3718 = vmatprep.subr.bf16.mxu1 %v3892_v20 }
 0x1bf   : > { %v1302_v25 = vadd.f32 %v4785_v8, %v1301_v22  ;;  %v1348_v32 = vpack.c.bf16 %v1310_v28, %v1307_v30 }
 0x1c1   : > { %v1347_v26 = vpack.c.bf16 %v1302_v25, %v1299_v24  ;;  %3719 = vmatpush3.bf16.msra.mxu1 %v3892_v20 }
 0x1c2   : > { %3720 = vmatprep.subr.bf16.mxu1 %v3893_v23 }
 0x1c3   : > { %1689 = vmatmul.mubr.bf16.gmra.mxu1 %v1347_v26  ;;  %1802 = vmatmul.mubr.bf16.gmra.mxu0 %v1347_v26 }
 0x1c4   : > { %1698 = vmatprep.mubr.bf16.mxu1 %v4290_v0  ;;  %1811 = vmatprep.mubr.bf16.mxu0 %v4290_v0 }
 0x1c5   : > { %3721 = vmatpush3.bf16.msra.mxu1 %v3893_v23 }
 0x1c6   : > { %3722 = vmatprep.subr.bf16.mxu1 %v3894_v27 }
 0x1c8   : > { %v3706_v31 = vpop.f32.mrf.mxu0 }
 0x1c9   : > { %3723 = vmatpush3.bf16.msra.mxu1 %v3894_v27  ;;  %v1323_v41 = vadd.f32 %v3706_v31, %v4785_v8  ;;  %v1413_v27 = vsub.s32 2, %v4643_v42  ;;  %v3917_v31 = vld [vmem:[%s6035_s12 + $0xe8] sm:$0xff]  }
 0x1ca   : > { %v1314_v33 = vpop.f32.mrf.mxu0  ;;  %3724 = vmatprep.subr.bf16.mxu1 %v3895_v29 }
 0x1cb   : > { %1699 = vmatmul.mubr.bf16.gmra.mxu1 %v1348_v32  ;;  %1812 = vmatmul.mubr.bf16.gmra.mxu0 %v1348_v32  ;;  %v1315_v37 = vadd.f32 %v4785_v8, %v1314_v33 }
 0x1cc   : > { %v3707_v35 = vpop.f32.mrf.mxu0  ;;  %1708 = vmatprep.mubr.bf16.mxu1 %v4290_v0  ;;  %1821 = vmatprep.mubr.bf16.mxu0 %v4290_v0 }
 0x1cd   : > { %3725 = vmatpush3.bf16.msra.mxu1 %v3895_v29  ;;  %v1326_v40 = vadd.f32 %v3707_v35, %v4785_v8  ;;  %v3918_v35 = vld [vmem:[%s6035_s12 + $0xa8] sm:$0xff]  }
 0x1ce   : > { %v1317_v36 = vpop.f32.mrf.mxu0  ;;  %3726 = vmatprep.subr.bf16.mxu1 %v3896_v34 }
 0x1cf   : > { %v1318_v38 = vadd.f32 %v4785_v8, %v1317_v36  ;;  %v1350_v45 = vpack.c.bf16 %v1326_v40, %v1323_v41  ;;  %v4956_v41 = vrot.slane %v4904_v10, %v1413_v27 }
 0x1d1   : > { %v1349_v39 = vpack.c.bf16 %v1318_v38, %v1315_v37  ;;  %3727 = vmatpush3.bf16.msra.mxu1 %v3896_v34 }
 0x1d2   : > { %3616 = vmatprep.subr.bf16.mxu1 %v3913_v9 }
 0x1d3   : > { %1709 = vmatmul.mubr.bf16.gmra.mxu1 %v1349_v39  ;;  %1822 = vmatmul.mubr.bf16.gmra.mxu0 %v1349_v39 }
 0x1d4   : > { %1718 = vmatprep.mubr.bf16.mxu1 %v4290_v0  ;;  %1831 = vmatprep.mubr.bf16.mxu0 %v4290_v0 }
 0x1d8   : > { %v3710_v43 = vpop.f32.mrf.mxu0 }
 0x1d9   : > { %v1339_v55 = vadd.f32 %v3710_v43, %v4785_v8 }
 0x1da   : > { %v1330_v46 = vpop.f32.mrf.mxu0 }
 0x1db   : > { %1719 = vmatmul.mubr.bf16.gmra.mxu1 %v1350_v45  ;;  %1832 = vmatmul.mubr.bf16.gmra.mxu0 %v1350_v45  ;;  %v1331_v51 = vadd.f32 %v4785_v8, %v1330_v46  ;;  %v3919_v46 = vld [vmem:[%s6035_s12 + $0xe0] sm:$0xff]  }
 0x1dc   : > { %v3711_v47 = vpop.f32.mrf.mxu0  ;;  %1728 = vmatprep.mubr.bf16.mxu1 %v4290_v0  ;;  %1841 = vmatprep.mubr.bf16.mxu0 %v4290_v0 }
 0x1dd   : > { %v1342_v54 = vadd.f32 %v3711_v47, %v4785_v8 }
 0x1de   : > { %v1333_v49 = vpop.f32.mrf.mxu0 }
 0x1df   : > { %v1334_v52 = vadd.f32 %v4785_v8, %v1333_v49  ;;  %v1352_v56 = vpack.c.bf16 %v1342_v54, %v1339_v55  ;;  %v1417_v8 = vsub.s32 3, %v4643_v42 }
 0x1e1   : > { %v1351_v53 = vpack.c.bf16 %v1334_v52, %v1331_v51  ;;  %v4913_v13 = vrot.slane %v4904_v10, %v1417_v8  ;;  %v3922_v8 = vld [vmem:[%s6035_s12 + $0x98] sm:$0xff]  }
 0x1e3   : > { %1729 = vmatmul.mubr.bf16.gmra.mxu1 %v1351_v53  ;;  %1842 = vmatmul.mubr.bf16.gmra.mxu0 %v1351_v53 }
 0x1e4   : > { %1738 = vmatprep.mubr.bf16.mxu1 %v4290_v0  ;;  %1851 = vmatprep.mubr.bf16.mxu0 %v4290_v0  ;;  %v3898_v0 = vld [vmem:[%s6035_s12 + $0x38] sm:$0xff]  }
 0x1e5   : > { %3553 = vmatpush3.bf16.msra.mxu0 %v3898_v0 }
 0x1e6   : > { %3554 = vmatprep.subr.bf16.mxu0 %v3899_v58 }
 0x1e9   : > { %3555 = vmatpush3.bf16.msra.mxu0 %v3900_v48 }
 0x1ea   : > { %3556 = vmatprep.subr.bf16.mxu0 %v3901_v59 }
 0x1eb   : > { %1739 = vmatmul.mubr.bf16.gmra.mxu1 %v1352_v56  ;;  %1852 = vmatmul.mubr.bf16.gmra.mxu0 %v1352_v56 }
 0x1ec   : > { %3728 = vmatprep.mubr.bf16.mxu1 %v4789_v12  ;;  %v4910_v12 = vrot.slane %v4904_v10, %v1409_v7 }
 0x1ed   : > { %3557 = vmatpush3.bf16.msra.mxu0 %v3902_v60 }
 0x1ee   : > { %3558 = vmatprep.subr.bf16.mxu0 %v3903_v61 }
 0x1f1   : > { %3559 = vmatpush3.bf16.msra.mxu0 %v3904_v50 }
 0x1f2   : > { %3560 = vmatprep.subr.bf16.mxu0 %v3905_v62 }
 0x1f3   : > { %3729 = vmatmul.mubr.bf16.vlgmr.msra.gmra.mxu1 %v4803_v18 }
 0x1f4   : > { %3732 = vmatprep.mubr.bf16.mxu1 %v1347_v26  ;;  %3617 = vmatpush3.bf16.msra.mxu1 %v3914_v11 }
 0x1f5   : > { %3561 = vmatpush3.bf16.msra.mxu0 %v3906_v63  ;;  %3618 = vmatprep.subr.bf16.mxu1 %v3915_v16  ;;  %v3921_v63 = vld [vmem:[%s6035_s12 + $0xd8] sm:$0xff]  }
 0x1f6   : > { %3562 = vmatprep.subr.bf16.mxu0 %v3907_v1 }
 0x1f8   : > { %3619 = vmatpush3.bf16.msra.mxu1 %v3916_v19 }
 0x1f9   : > { %3563 = vmatpush3.bf16.msra.mxu0 %v3908_v2  ;;  %3620 = vmatprep.subr.bf16.mxu1 %v3917_v31 }
 0x1fa   : > { %3564 = vmatprep.subr.bf16.mxu0 %v3909_v3 }
 0x1fb   : > { %3733 = vmatmul.mubr.bf16.gmra.mxu1 %v1348_v32 }
 0x1fc   : > { %3736 = vmatprep.mubr.bf16.mxu1 %v1349_v39  ;;  %3621 = vmatpush3.bf16.msra.mxu1 %v3918_v35 }
 0x1fd   : > { %3565 = vmatpush3.bf16.msra.mxu0 %v3910_v4  ;;  %3622 = vmatprep.subr.bf16.mxu1 %v3919_v46  ;;  %v3925_v46 = vld [vmem:[%s6035_s12 + $0xc8] sm:$0xff]  }
 0x1fe   : > { %3566 = vmatprep.subr.bf16.mxu0 %v3911_v5 }
 0x201   : > { %3567 = vmatpush3.bf16.msra.mxu0 %v3912_v6 }
 0x203   : > { %3737 = vmatmul.mubr.bf16.gmra.mxu1 %v1350_v45 }
 0x204   : > { %3740 = vmatprep.mubr.bf16.mxu1 %v1351_v53  ;;  %v3920_v53 = vld [vmem:[%s6035_s12 + $0xa0] sm:$0xff]  }
 0x205   : > { %3623 = vmatpush3.bf16.msra.mxu1 %v3920_v53 }
 0x206   : > { %3624 = vmatprep.subr.bf16.mxu1 %v3921_v63 }
 0x209   : > { %3625 = vmatpush3.bf16.msra.mxu1 %v3922_v8 }
 0x20b   : > { %3741 = vmatmul.mubr.bf16.gmra.mxu1 %v1352_v56 }
 0x273   : > { %v4915_v14 = vpop.f32.mrf.mxu1  ;;  %v1783_v15 = vpop.f32.mrf.mxu0 }
 0x274   : > { %6094 = vst [vmem:[#allocation24_spill] sm:$0xff] %v4915_v14  ;;  %v4971_v0 = vadd.f32 %v1783_v15, %v4956_v41 }
 0x275   : > { %v1672_v17 = vpop.f32.mrf.mxu1  ;;  %v1785_v18 = vpop.f32.mrf.mxu0 }
 0x276   : > { %v4924_v20 = vadd.f32 %v1672_v17, %v4910_v12  ;;  %v4927_v21 = vadd.f32 %v1785_v18, %v4913_v13  ;;  %v1960_v4 = vmul.f32 %v4971_v0, %v4971_v0 }
 0x277   : > { %v4929_v22 = vpop.f32.mrf.mxu1  ;;  %v1787_v23 = vpop.f32.mrf.mxu0 }
 0x278   : > { %6095 = vst [vmem:[#allocation25_spill] sm:$0xff] %v4929_v22  ;;  %v1961_v24 = vmul.f32 %v4927_v21, %v4927_v21  ;;  %v1959_v28 = vmul.f32 %v4924_v20, %v4924_v20  ;;  %v4974_v48 = vadd.f32 %v1787_v23, %v4956_v41 }
 0x279   : > { %v1676_v25 = vpop.f32.mrf.mxu1  ;;  %v1789_v26 = vpop.f32.mrf.mxu0 }
 0x27a   : > { %v2025_v29 = vmul.f32 %v1961_v24, %v4927_v21  ;;  %v4938_v30 = vadd.f32 %v1676_v25, %v4910_v12  ;;  %v4944_v32 = vadd.f32 %v1789_v26, %v4913_v13  ;;  %v2023_v43 = vmul.f32 %v1959_v28, %v4924_v20  ;;  %v3923_v24 = vld [vmem:[%s6035_s12 + $0xd0] sm:$0xff]  }
 0x27b   : > { %v4946_v33 = vpop.f32.mrf.mxu1  ;;  %v1793_v34 = vpop.f32.mrf.mxu0  ;;  %v1964_v6 = vmul.f32 %v4974_v48, %v4974_v48  ;;  %v2024_v25 = vmul.f32 %v1960_v4, %v4971_v0  ;;  %3626 = vmatprep.subr.bf16.mxu1 %v3923_v24 }
 0x27c   : > { %6096 = vst [vmem:[#allocation26_spill] sm:$0xff] %v4946_v33  ;;  %v2089_v36 = vmul.f32 0.044715, %v2025_v29  ;;  %v1963_v37 = vmul.f32 %v4938_v30, %v4938_v30  ;;  %v1965_v38 = vmul.f32 %v4944_v32, %v4944_v32  ;;  %v2087_v58 = vmul.f32 0.044715, %v2023_v43  ;;  %v3924_v29 = vld [vmem:[%s6035_s12 + $0x90] sm:$0xff]  }
 0x27d   : > { %v1682_v39 = vpop.f32.mrf.mxu1  ;;  %v1795_v40 = vpop.f32.mrf.mxu0  ;;  %v4978_v61 = vadd.f32 %v1793_v34, %v4956_v41  ;;  %v2028_v31 = vmul.f32 %v1964_v6, %v4974_v48  ;;  %3627 = vmatpush3.bf16.msra.mxu1 %v3924_v29 }
 0x27e   : > { %v2153_v45 = vadd.f32 %v2089_v36, %v4927_v21  ;;  %v2027_v47 = vmul.f32 %v1963_v37, %v4938_v30  ;;  %v2029_v49 = vmul.f32 %v1965_v38, %v4944_v32  ;;  %v2151_v5 = vadd.f32 %v2087_v58, %v4924_v20  ;;  %3628 = vmatprep.subr.bf16.mxu1 %v3925_v46 }
 0x27f   : > { %v4965_v51 = vpop.f32.mrf.mxu1  ;;  %v1797_v52 = vpop.f32.mrf.mxu0  ;;  %v4991_v7 = vadd.f32 %v1682_v39, %v4910_v12  ;;  %v1968_v11 = vmul.f32 %v4978_v61, %v4978_v61  ;;  %v5000_v15 = vadd.f32 %v1795_v40, %v4913_v13 }
 0x280   : > { %6097 = vst [vmem:[#allocation27_spill] sm:$0xff] %v4965_v51  ;;  %v2217_v54 = vmul.f32 0.7978846, %v2153_v45  ;;  %v2093_v55 = vmul.f32 0.044715, %v2029_v49  ;;  %v5007_v18 = vadd.f32 %v1797_v52, %v4956_v41  ;;  %v3927_v49 = vld [vmem:[%s6035_s12 + $0xc0] sm:$0xff]  }
 0x281   : > { %v1686_v56 = vpop.f32.mrf.mxu1  ;;  %v1799_v57 = vpop.f32.mrf.mxu0  ;;  %v2091_v59 = vmul.f32 0.044715, %v2027_v47  ;;  %6099 = vst [vmem:[#allocation29_spill] sm:$0xff] %v5000_v15  ;;  %v2215_v26 = vmul.f32 0.7978846, %v2151_v5  ;;  %v1967_v27 = vmul.f32 %v4991_v7, %v4991_v7  ;;  %v2032_v35 = vmul.f32 %v1968_v11, %v4978_v61  ;;  %v3926_v47 = vld [vmem:[%s6035_s12 + $0x88] sm:$0xff]  }
 0x282   : > { %3929 = vtanh.f32 %v2217_v54  ;;  %v2157_v60 = vadd.f32 %v2093_v55, %v4944_v32  ;;  %v5020_v28 = vadd.f32 %v1686_v56, %v4910_v12  ;;  %v1969_v36 = vmul.f32 %v5000_v15, %v5000_v15  ;;  %3629 = vmatpush3.bf16.msra.mxu1 %v3926_v47  ;;  %v3928_v5 = vld [vmem:[%s6035_s12 + $0x80] sm:$0xff]  }
 0x283   : > { %v4980_v50 = vpop.f32.mrf.mxu1  ;;  %v1803_v62 = vpop.f32.mrf.mxu0  ;;  %v2155_v9 = vadd.f32 %v2091_v59, %v4938_v30  ;;  %v1972_v39 = vmul.f32 %v5007_v18, %v5007_v18  ;;  %v5036_v40 = vadd.f32 %v1799_v57, %v4913_v13  ;;  %v2088_v52 = vmul.f32 0.044715, %v2024_v25  ;;  %3630 = vmatprep.subr.bf16.mxu1 %v3927_v49 }
 0x284   : > { %6098 = vst [vmem:[#allocation28_spill] sm:$0xff] %v4980_v50  ;;  %v2221_v1 = vmul.f32 0.7978846, %v2157_v60  ;;  %v2031_v53 = vmul.f32 %v1967_v27, %v4991_v7  ;;  %v1971_v54 = vmul.f32 %v5020_v28, %v5020_v28  ;;  %v2092_v55 = vmul.f32 0.044715, %v2028_v31 }
 0x285   : > { %v1692_v2 = vpop.f32.mrf.mxu1  ;;  %v1805_v3 = vpop.f32.mrf.mxu0  ;;  %v2219_v34 = vmul.f32 0.7978846, %v2155_v9  ;;  %6102 = vst [vmem:[#allocation32_spill] sm:$0xff] %v5036_v40  ;;  %v2096_v56 = vmul.f32 0.044715, %v2032_v35  ;;  %v2033_v57 = vmul.f32 %v1969_v36, %v5000_v15  ;;  %v2036_v63 = vmul.f32 %v1972_v39, %v5007_v18 }
 0x286   : > { %3931 = vtanh.f32 %v2221_v1  ;;  %v1973_v1 = vmul.f32 %v5036_v40, %v5036_v40  ;;  %v5063_v4 = vadd.f32 %v1803_v62, %v4956_v41  ;;  %v5069_v8 = vadd.f32 %v1692_v2, %v4910_v12  ;;  %3631 = vmatpush3.bf16.msra.mxu1 %v3928_v5 }
 0x287   : > { %v5002_v16 = vpop.f32.mrf.mxu1  ;;  %v5004_v17 = vpop.f32.mrf.mxu0  ;;  %3933 = vtanh.f32 %v2215_v26  ;;  %v2152_v11 = vadd.f32 %v2088_v52, %v4971_v0  ;;  %v2095_v24 = vmul.f32 0.044715, %v2031_v53  ;;  %v2035_v25 = vmul.f32 %v1971_v54, %v5020_v28 }
 0x288   : > { %6100 = vst [vmem:[#allocation30_spill] sm:$0xff] %v5002_v16  ;;  %3935 = vtanh.f32 %v2219_v34  ;;  %v5076_v62 = vadd.f32 %v1805_v3, %v4913_v13  ;;  %v2156_v26 = vadd.f32 %v2092_v55, %v4974_v48  ;;  %v2160_v27 = vadd.f32 %v2096_v56, %v4978_v61 }
 0x289   : > { %v5009_v19 = vpop.f32.mrf.mxu1  ;;  %v5011_v23 = vpop.f32.mrf.mxu0  ;;  %v2097_v29 = vmul.f32 0.044715, %v2033_v57  ;;  %v2100_v35 = vmul.f32 0.044715, %v2036_v63  ;;  %v2037_v36 = vmul.f32 %v1973_v1, %v5036_v40  ;;  %v1976_v39 = vmul.f32 %v5063_v4, %v5063_v4 }
 0x28a   : > { %6104 = vst [vmem:[#allocation34_spill] sm:$0xff] %v5076_v62  ;;  %v1975_v47 = vmul.f32 %v5069_v8, %v5069_v8  ;;  %v5091_v49 = vadd.f32 %v5004_v17, %v4956_v41  ;;  %v2216_v53 = vmul.f32 0.7978846, %v2152_v11  ;;  %v2159_v54 = vadd.f32 %v2095_v24, %v4991_v7 }
 0x28b   : > { %v5029_v37 = vpop.f32.mrf.mxu1  ;;  %v5031_v38 = vpop.f32.mrf.mxu0  ;;  %v2099_v55 = vmul.f32 0.044715, %v2035_v25  ;;  %v1977_v56 = vmul.f32 %v5076_v62, %v5076_v62  ;;  %v2220_v57 = vmul.f32 0.7978846, %v2156_v26  ;;  %v2224_v63 = vmul.f32 0.7978846, %v2160_v27 }
 0x28c   : > { %6101 = vst [vmem:[#allocation31_spill] sm:$0xff] %v5029_v37  ;;  %v2161_v1 = vadd.f32 %v2097_v29, %v5000_v15  ;;  %v2164_v17 = vadd.f32 %v2100_v35, %v5007_v18  ;;  %v2040_v11 = vmul.f32 %v1976_v39, %v5063_v4  ;;  %v5107_v24 = vadd.f32 %v5009_v19, %v4910_v12 }
 0x28d   : > { %v5038_v43 = vpop.f32.mrf.mxu1  ;;  %v5040_v45 = vpop.f32.mrf.mxu0  ;;  %v2039_v27 = vmul.f32 %v1975_v47, %v5069_v8  ;;  %v1980_v29 = vmul.f32 %v5091_v49, %v5091_v49  ;;  %3937 = vtanh.f32 %v2216_v53  ;;  %v2223_v35 = vmul.f32 0.7978846, %v2159_v54 }
 0x28e   : > { %v2041_v19 = vmul.f32 %v1977_v56, %v5076_v62  ;;  %3939 = vtanh.f32 %v2220_v57  ;;  %v2228_v54 = vmul.f32 0.7978846, %v2164_v17  ;;  %v1979_v56 = vmul.f32 %v5107_v24, %v5107_v24 }
 0x28f   : > { %v5055_v58 = vpop.f32.mrf.mxu1  ;;  %v5057_v59 = vpop.f32.mrf.mxu0  ;;  %3941 = vtanh.f32 %v2224_v63  ;;  %v2103_v57 = vmul.f32 0.044715, %v2039_v27  ;;  %v5146_v63 = vadd.f32 %v5038_v43, %v4910_v12  ;;  %v5159_v43 = vadd.f32 %v5040_v45, %v4913_v13 }
 0x290   : > { %6103 = vst [vmem:[#allocation33_spill] sm:$0xff] %v5055_v58  ;;  %v3930_v60 = vpop.eup %3929  ;;  %3943 = vtanh.f32 %v2223_v35  ;;  %v2105_v17 = vmul.f32 0.044715, %v2041_v19  ;;  %v2043_v35 = vmul.f32 %v1979_v56, %v5107_v24 }
 0x291   : > { %v2345_v6 = vadd.f32 1.0, %v3930_v60  ;;  %v5071_v9 = vpop.f32.mrf.mxu1  ;;  %v5080_v31 = vpop.f32.mrf.mxu0  ;;  %6112 = vst [vmem:[#allocation42_spill] sm:$0xff] %v5159_v43 }
 0x292   : > { %v5173_v45 = vadd.f32 %v5071_v9, %v4910_v12  ;;  %v1985_v9 = vmul.f32 %v5159_v43, %v5159_v43 }
 0x293   : > { %v5082_v2 = vpop.f32.mrf.mxu1  ;;  %v3932_v34 = vpop.eup %3931  ;;  %v2409_v46 = vmul.f32 0.5, %v2345_v6 }
 0x294   : > { %6105 = vst [vmem:[#allocation35_spill] sm:$0xff] %v5082_v2  ;;  %v2349_v3 = vadd.f32 1.0, %v3932_v34  ;;  %v5099_v5 = vpop.f32.mrf.mxu0  ;;  %v2101_v34 = vmul.f32 0.044715, %v2037_v36  ;;  %v2163_v36 = vadd.f32 %v2099_v55, %v5020_v28  ;;  %v3934_v39 = vpop.eup %3933 }
 0x295   : > { %v5093_v52 = vpop.f32.mrf.mxu1  ;;  %v5110_v25 = vmul.f32 %v2409_v46, %v4927_v21  ;;  %v5126_v46 = vadd.f32 %v5011_v23, %v4913_v13  ;;  %v3936_v53 = vpop.eup %3935  ;;  %v5138_v23 = vadd.f32 %v5031_v38, %v4956_v41  ;;  %v2343_v2 = vadd.f32 1.0, %v3934_v39 }
 0x296   : > { %v2413_v60 = vmul.f32 0.5, %v2349_v3  ;;  %v5128_v47 = vpop.f32.mrf.mxu0  ;;  %v2165_v55 = vadd.f32 %v2101_v34, %v5036_v40  ;;  %v2347_v58 = vadd.f32 1.0, %v3936_v53 }
 0x297   : > { %v5101_v6 = vpop.f32.mrf.mxu1  ;;  %6107 = vst [vmem:[#allocation37_spill] sm:$0xff] %v5110_v25  ;;  %6109 = vst [vmem:[#allocation39_spill] sm:$0xff] %v5126_v46  ;;  %v1981_v34 = vmul.f32 %v5126_v46, %v5126_v46  ;;  %v1984_v39 = vmul.f32 %v5138_v23, %v5138_v23  ;;  %v2407_v53 = vmul.f32 0.5, %v2343_v2 }
 0x298   : > { %6106 = vst [vmem:[#allocation36_spill] sm:$0xff] %v5101_v6  ;;  %v5113_v26 = vmul.f32 %v2413_v60, %v4944_v32  ;;  %v2225_v32 = vmul.f32 0.7978846, %v2161_v1  ;;  %v2104_v6 = vmul.f32 0.044715, %v2040_v11  ;;  %v2044_v1 = vmul.f32 %v1980_v29, %v5091_v49  ;;  %v5148_v11 = vpop.f32.mrf.mxu0 }
 0x299   : > { %v5118_v3 = vpop.f32.mrf.mxu1  ;;  %v2229_v38 = vmul.f32 0.7978846, %v2165_v55  ;;  %v2411_v55 = vmul.f32 0.5, %v2347_v58  ;;  %v2045_v56 = vmul.f32 %v1981_v34, %v5126_v46  ;;  %v5188_v37 = vmul.f32 %v2407_v53, %v4924_v20 }
 0x29a   : > { %6108 = vst [vmem:[#allocation38_spill] sm:$0xff] %v5113_v26  ;;  %3945 = vtanh.f32 %v2225_v32  ;;  %v2168_v29 = vadd.f32 %v2104_v6, %v5063_v4  ;;  %v2108_v19 = vmul.f32 0.044715, %v2044_v1  ;;  %v5166_v6 = vadd.f32 %v5057_v59, %v4956_v41  ;;  %v5175_v1 = vpop.f32.mrf.mxu0 }
 0x29b   : > { %v5130_v60 = vpop.f32.mrf.mxu1  ;;  %3947 = vtanh.f32 %v2228_v54  ;;  %v2169_v54 = vadd.f32 %v2105_v17, %v5076_v62  ;;  %v2107_v17 = vmul.f32 0.044715, %v2043_v35  ;;  %v5181_v59 = vadd.f32 %v5080_v31, %v4913_v13  ;;  %v3938_v31 = vpop.eup %3937 }
 0x29c   : > { %6110 = vst [vmem:[#allocation40_spill] sm:$0xff] %v5130_v60  ;;  %v2227_v60 = vmul.f32 0.7978846, %v2163_v36  ;;  %v2167_v36 = vadd.f32 %v2103_v57, %v5069_v8  ;;  %v1983_v57 = vmul.f32 %v5146_v63, %v5146_v63  ;;  %v2172_v34 = vadd.f32 %v2108_v19, %v5091_v49  ;;  %v5202_v20 = vpop.f32.mrf.mxu0 }
 0x29d   : > { %v5140_v21 = vpop.f32.mrf.mxu1  ;;  %6114 = vst [vmem:[#allocation44_spill] sm:$0xff] %v5181_v59  ;;  %v2233_v16 = vmul.f32 0.7978846, %v2169_v54  ;;  %v5197_v35 = vmul.f32 %v2411_v55, %v4938_v30  ;;  %v3940_v54 = vpop.eup %3939  ;;  %v5211_v30 = vadd.f32 %v5093_v52, %v4910_v12  ;;  %v2344_v44 = vadd.f32 1.0, %v3938_v31 }
 0x29e   : > { %3949 = vtanh.f32 %v2227_v60  ;;  %v2232_v60 = vmul.f32 0.7978846, %v2168_v29  ;;  %v2231_v58 = vmul.f32 0.7978846, %v2167_v36  ;;  %v5194_v29 = vadd.f32 %v5099_v5, %v4956_v41  ;;  %v5214_v50 = vpop.eup %3941 }
 0x29f   : > { %v5150_v27 = vpop.f32.mrf.mxu1  ;;  %3951 = vtanh.f32 %v2229_v38  ;;  %v1988_v38 = vmul.f32 %v5166_v6, %v5166_v6  ;;  %v2109_v36 = vmul.f32 0.044715, %v2045_v56  ;;  %v2047_v19 = vmul.f32 %v1983_v57, %v5146_v63  ;;  %v5223_v33 = vpop.eup %3943 }
 0x2a0   : > { %6111 = vst [vmem:[#allocation41_spill] sm:$0xff] %v5150_v27  ;;  %v2048_v27 = vmul.f32 %v1984_v39, %v5138_v23  ;;  %v1987_v39 = vmul.f32 %v5173_v45, %v5173_v45  ;;  %3953 = vtanh.f32 %v2232_v60  ;;  %v1989_v5 = vmul.f32 %v5181_v59, %v5181_v59 }
 0x2a1   : > { %v5161_v32 = vpop.f32.mrf.mxu1  ;;  %3955 = vtanh.f32 %v2231_v58  ;;  %v2236_v55 = vmul.f32 0.7978846, %v2172_v34  ;;  %v2049_v57 = vmul.f32 %v1985_v9, %v5159_v43  ;;  %v2052_v51 = vmul.f32 %v1988_v38, %v5166_v6 }
 0x2a2   : > { %v2112_v56 = vmul.f32 0.044715, %v2048_v27  ;;  %3957 = vtanh.f32 %v2233_v16  ;;  %v1992_v60 = vmul.f32 %v5194_v29, %v5194_v29  ;;  %v2535_v52 = vpack.c.bf16 %v5197_v35, %v5188_v37  ;;  %v5229_v16 = vpop.f32.mrf.mxu0 }
 0x2a3   : > { %v5177_v2 = vpop.f32.mrf.mxu1  ;;  %v2173_v27 = vadd.f32 %v2109_v36, %v5126_v46  ;;  %v2111_v58 = vmul.f32 0.044715, %v2047_v19  ;;  %v2051_v34 = vmul.f32 %v1987_v39, %v5173_v45  ;;  %v1991_v14 = vmul.f32 %v5211_v30, %v5211_v30 }
 0x2a4   : > { %6113 = vst [vmem:[#allocation43_spill] sm:$0xff] %v5177_v2  ;;  %v2171_v2 = vadd.f32 %v2107_v17, %v5107_v24  ;;  %v5221_v17 = vadd.f32 %v5128_v47, %v4913_v13  ;;  %v2053_v47 = vmul.f32 %v1989_v5, %v5181_v59  ;;  %3959 = vtanh.f32 %v2236_v55  ;;  %v5245_v25 = vpop.f32.mrf.mxu0 }
 0x2a5   : > { %v5204_v53 = vpop.f32.mrf.mxu1  ;;  %v2176_v37 = vadd.f32 %v2112_v56, %v5138_v23  ;;  %v2113_v35 = vmul.f32 0.044715, %v2049_v57  ;;  %v2348_v36 = vadd.f32 1.0, %v3940_v54  ;;  %v2116_v19 = vmul.f32 0.044715, %v2052_v51 }
 0x2a6   : > { %6115 = vst [vmem:[#allocation45_spill] sm:$0xff] %v5221_v17  ;;  %v2235_v22 = vmul.f32 0.7978846, %v2171_v2  ;;  %v2056_v39 = vmul.f32 %v1992_v60, %v5194_v29  ;;  %v2408_v46 = vmul.f32 0.5, %v2344_v44  ;;  %v2237_v5 = vmul.f32 0.7978846, %v2173_v27  ;;  %v5266_v26 = vpop.f32.mrf.mxu0 }
 0x2a7   : > { %v5231_v9 = vpop.f32.mrf.mxu1  ;;  %v5233_v38 = vpop.eup %3945  ;;  %v2175_v40 = vadd.f32 %v2111_v58, %v5146_v63  ;;  %v2115_v15 = vmul.f32 0.044715, %v2051_v34  ;;  %v2412_v31 = vmul.f32 0.5, %v2348_v36  ;;  %v2117_v54 = vmul.f32 0.044715, %v2053_v47 }
 0x2a8   : > { %6116 = vst [vmem:[#allocation46_spill] sm:$0xff] %v5231_v9  ;;  %6117 = vst [vmem:[#allocation47_spill] sm:$0xff] %v5233_v38  ;;  %v3948_v62 = vpop.eup %3947  ;;  %v1993_v9 = vmul.f32 %v5221_v17, %v5221_v17  ;;  %3961 = vtanh.f32 %v2235_v22  ;;  %v2055_v51 = vmul.f32 %v1991_v14, %v5211_v30  ;;  %v5252_v56 = vadd.f32 %v5148_v11, %v4956_v41 }
 0x2a9   : > { %v5247_v55 = vpop.f32.mrf.mxu1  ;;  %v2240_v57 = vmul.f32 0.7978846, %v2176_v37  ;;  %v2177_v60 = vadd.f32 %v2113_v35, %v5159_v43  ;;  %v2472_v27 = vmul.f32 %v2408_v46, %v4971_v0  ;;  %v2476_v58 = vmul.f32 %v2412_v31, %v4974_v48 }
 0x2aa   : > { %v2180_v34 = vadd.f32 %v2116_v19, %v5166_v6  ;;  %v2120_v36 = vmul.f32 0.044715, %v2056_v39  ;;  %v2057_v22 = vmul.f32 %v1993_v9, %v5221_v17  ;;  %v5263_v14 = vadd.f32 %v5118_v3, %v4910_v12 }
 0x2ab   : > { %v5242_v2 = vpop.eup %3949  ;;  %3963 = vtanh.f32 %v2237_v5  ;;  %v2239_v11 = vmul.f32 0.7978846, %v2175_v40  ;;  %v2179_v47 = vadd.f32 %v2115_v15, %v5173_v45  ;;  %v2536_v37 = vpack.c.bf16 %v2476_v58, %v2472_v27  ;;  %v5268_v35 = vpop.f32.mrf.mxu1 }
 0x2ac   : > { %v5254_v44 = vpop.eup %3951  ;;  %6119 = vst [vmem:[#allocation49_spill] sm:$0xff] %v5268_v35  ;;  %v2181_v0 = vadd.f32 %v2117_v54, %v5181_v59  ;;  %v2119_v48 = vmul.f32 0.044715, %v2055_v51  ;;  %v1996_v46 = vmul.f32 %v5252_v56, %v5252_v56  ;;  %v5275_v9 = vadd.f32 %v5175_v1, %v4913_v13  ;;  %v1843_v27 = vpop.f32.mrf.mxu0 }
 0x2ad   : > { %6118 = vst [vmem:[#allocation48_spill] sm:$0xff] %v5254_v44  ;;  %v5277_v3 = vpop.eup %3953  ;;  %3965 = vtanh.f32 %v2240_v57  ;;  %v2241_v40 = vmul.f32 0.7978846, %v2177_v60  ;;  %2862 = vmatprep.mubr.bf16.mxu0 %v2536_v37  ;;  %v2244_v19 = vmul.f32 0.7978846, %v2180_v34  ;;  %v2184_v39 = vadd.f32 %v2120_v36, %v5194_v29  ;;  %v5287_v57 = vpop.f32.mrf.mxu1 }
 0x2ae   : > { %6120 = vst [vmem:[#allocation50_spill] sm:$0xff] %v5275_v9  ;;  %v5279_v15 = vpop.eup %3955  ;;  %v2121_v5 = vmul.f32 0.044715, %v2057_v22  ;;  %v1995_v31 = vmul.f32 %v5263_v14, %v5263_v14  ;;  %2863 = vmatmul.mubr.bf16.vlgmr.msra.gmra.mxu0 %v2535_v52  ;;  %3967 = vtanh.f32 %v2239_v11  ;;  %v2243_v1 = vmul.f32 0.7978846, %v2179_v47 }
 0x2af   : > { %v5284_v54 = vpop.eup %3957  ;;  %v2352_v51 = vadd.f32 1.0, %v5214_v50  ;;  %v1421_v60 = vsub.s32 4, %v4643_v42  ;;  %v2245_v58 = vmul.f32 0.7978846, %v2181_v0  ;;  %v2183_v34 = vadd.f32 %v2119_v48, %v5211_v30 }
 0x2b0   : > { %6121 = vst [vmem:[#allocation51_spill] sm:$0xff] %v5284_v54  ;;  %v2060_v36 = vmul.f32 %v1996_v46, %v5252_v56  ;;  %v1997_v22 = vmul.f32 %v5275_v9, %v5275_v9  ;;  %3969 = vtanh.f32 %v2241_v40  ;;  %v5296_v52 = vadd.f32 %v5202_v20, %v4956_v41  ;;  %v5306_v40 = vpop.f32.mrf.mxu0  ;;  %v5308_v20 = vpop.f32.mrf.mxu1 }
 0x2b1   : > { %v2356_v11 = vadd.f32 1.0, %v3948_v62  ;;  %v2416_v50 = vmul.f32 0.5, %v2352_v51  ;;  %v5298_v47 = vpop.eup %3959  ;;  %3971 = vtanh.f32 %v2244_v19  ;;  %v2248_v37 = vmul.f32 0.7978846, %v2184_v39  ;;  %6122 = vst [vmem:[#allocation52_spill] sm:$0xff] %v5308_v20 }
 0x2b2   : > { %v2185_v42 = vadd.f32 %v2121_v5, %v5221_v17  ;;  %v2059_v0 = vmul.f32 %v1995_v31, %v5263_v14  ;;  %3973 = vtanh.f32 %v2243_v1  ;;  %v5304_v48 = vadd.f32 %v5140_v21, %v4910_v12 }
 0x2b3   : > { %v2420_v46 = vmul.f32 0.5, %v2356_v11  ;;  %3975 = vtanh.f32 %v2245_v58  ;;  %v2247_v62 = vmul.f32 0.7978846, %v2183_v34  ;;  %v2124_v51 = vmul.f32 0.044715, %v2060_v36 }
 0x2b4   : > { %v2061_v19 = vmul.f32 %v1997_v22, %v5275_v9  ;;  %v2000_v5 = vmul.f32 %v5296_v52, %v5296_v52  ;;  %v5317_v31 = vadd.f32 %v5229_v16, %v4913_v13  ;;  %v2480_v21 = vmul.f32 %v2416_v50, %v4978_v61  ;;  %v1847_v50 = vpop.f32.mrf.mxu0 }
 0x2b5   : > { %v5311_v39 = vpop.eup %3961  ;;  %v2484_v1 = vmul.f32 %v2420_v46, %v5007_v18  ;;  %3977 = vtanh.f32 %v2248_v37  ;;  %v2249_v11 = vmul.f32 0.7978846, %v2185_v42  ;;  %v2123_v58 = vmul.f32 0.044715, %v2059_v0  ;;  %v5334_v18 = vpop.f32.mrf.mxu1 }
 0x2b6   : > { %6123 = vst [vmem:[#allocation53_spill] sm:$0xff] %v5317_v31  ;;  %v5322_v34 = vrot.slane %v4904_v10, %v1421_v60  ;;  %v1999_v36 = vmul.f32 %v5304_v48, %v5304_v48  ;;  %v5328_v22 = vadd.f32 %v5245_v25, %v4956_v41  ;;  %v5332_v16 = vadd.f32 %v5161_v32, %v4910_v12 }
 0x2b7   : > { %v2540_v61 = vpack.c.bf16 %v2484_v1, %v2480_v21  ;;  %v2188_v10 = vadd.f32 %v2124_v51, %v5252_v56  ;;  %v2125_v60 = vmul.f32 0.044715, %v2061_v19  ;;  %v5340_v42 = vadd.f32 %v1843_v27, %v4956_v41 }
 0x2b8   : > { %v5336_v37 = vpop.eup %3963  ;;  %v2351_v0 = vadd.f32 1.0, %v5223_v33  ;;  %3979 = vtanh.f32 %v2247_v62  ;;  %v2064_v25 = vmul.f32 %v2000_v5, %v5296_v52  ;;  %v2001_v32 = vmul.f32 %v5317_v31, %v5317_v31 }
 0x2b9   : > { %6124 = vst [vmem:[#allocation54_spill] sm:$0xff] %v5336_v37  ;;  %2870 = vmatprep.mubr.bf16.mxu0 %v2540_v61  ;;  %v2355_v46 = vadd.f32 1.0, %v5242_v2  ;;  %3981 = vtanh.f32 %v2249_v11  ;;  %v2187_v51 = vadd.f32 %v2123_v58, %v5263_v14  ;;  %v5352_v27 = vadd.f32 %v5266_v26, %v4913_v13  ;;  %v5359_v2 = vpop.f32.mrf.mxu0  ;;  %v5361_v61 = vpop.f32.mrf.mxu1 }
 0x2ba   : > { %v5347_v21 = vpop.eup %3965  ;;  %v2415_v19 = vmul.f32 0.5, %v2351_v0  ;;  %v2063_v33 = vmul.f32 %v1999_v36, %v5304_v48  ;;  %v2004_v62 = vmul.f32 %v5328_v22, %v5328_v22  ;;  %v2003_v5 = vmul.f32 %v5332_v16, %v5332_v16 }
 0x2bb   : > { %6125 = vst [vmem:[#allocation55_spill] sm:$0xff] %v5352_v27  ;;  %v2419_v1 = vmul.f32 0.5, %v2355_v46  ;;  %v5363_v11 = vpop.eup %3967  ;;  %v2252_v58 = vmul.f32 0.7978846, %v2188_v10  ;;  %v2189_v26 = vadd.f32 %v2125_v60, %v5275_v9  ;;  %v2008_v0 = vmul.f32 %v5340_v42, %v5340_v42 }
 0x2bc   : > { %v5370_v36 = vadd.f32 %v5204_v53, %v4910_v12  ;;  %v2128_v20 = vmul.f32 0.044715, %v2064_v25  ;;  %v2065_v35 = vmul.f32 %v2001_v32, %v5317_v31  ;;  %v2479_v46 = vmul.f32 %v2415_v19, %v4991_v7 }
 0x2bd   : > { %v2483_v17 = vmul.f32 %v2419_v1, %v5020_v28  ;;  %v5375_v59 = vpop.eup %3969  ;;  %v2251_v43 = vmul.f32 0.7978846, %v2187_v51  ;;  %v2005_v10 = vmul.f32 %v5352_v27, %v5352_v27  ;;  %v5380_v60 = vadd.f32 %v1847_v50, %v4956_v41  ;;  %v1853_v28 = vpop.f32.mrf.mxu0 }
 0x2be   : > { %6126 = vst [vmem:[#allocation56_spill] sm:$0xff] %v5375_v59  ;;  %v2360_v9 = vadd.f32 1.0, %v5277_v3  ;;  %v5383_v53 = vpop.eup %3971  ;;  %v2127_v25 = vmul.f32 0.044715, %v2063_v33  ;;  %v2068_v32 = vmul.f32 %v2004_v62, %v5328_v22  ;;  %v2067_v7 = vmul.f32 %v2003_v5, %v5332_v16  ;;  %v5387_v1 = vpop.f32.mrf.mxu1 }
 0x2bf   : > { %v2539_v19 = vpack.c.bf16 %v2483_v17, %v2479_v46  ;;  %v5389_v51 = vpop.eup %3973  ;;  %3983 = vtanh.f32 %v2252_v58  ;;  %v2072_v59 = vmul.f32 %v2008_v0, %v5340_v42  ;;  %v2007_v50 = vmul.f32 %v5370_v36, %v5370_v36 }
 0x2c0   : > { %v2364_v3 = vadd.f32 1.0, %v5298_v47  ;;  %v5395_v37 = vpop.eup %3975  ;;  %v2253_v33 = vmul.f32 0.7978846, %v2189_v26  ;;  %v2192_v62 = vadd.f32 %v2128_v20, %v5296_v52  ;;  %v2129_v5 = vmul.f32 0.044715, %v2065_v35  ;;  %v5408_v35 = vpop.f32.mrf.mxu0 }
 0x2c1   : > { %6127 = vst [vmem:[#allocation57_spill] sm:$0xff] %v5395_v37  ;;  %2871 = vmatmul.mubr.bf16.gmra.mxu0 %v2539_v19  ;;  %v2424_v17 = vmul.f32 0.5, %v2360_v9  ;;  %v2069_v46 = vmul.f32 %v2005_v10, %v5352_v27  ;;  %v2012_v58 = vmul.f32 %v5380_v60, %v5380_v60  ;;  %v5403_v0 = vadd.f32 %v5247_v55, %v4910_v12  ;;  %v5410_v9 = vpop.f32.mrf.mxu1 }
 0x2c2   : > { %v2428_v54 = vmul.f32 0.5, %v2364_v3  ;;  %v5405_v44 = vpop.eup %3977  ;;  %3985 = vtanh.f32 %v2251_v43  ;;  %v2191_v47 = vadd.f32 %v2127_v25, %v5304_v48  ;;  %v2132_v26 = vmul.f32 0.044715, %v2068_v32  ;;  %6128 = vst [vmem:[#allocation58_spill] sm:$0xff] %v5408_v35 }
 0x2c3   : > { %v2131_v20 = vmul.f32 0.044715, %v2067_v7  ;;  %v2136_v10 = vmul.f32 0.044715, %v2072_v59  ;;  %v2071_v19 = vmul.f32 %v2007_v50, %v5370_v36  ;;  %v2488_v37 = vmul.f32 %v2424_v17, %v5063_v4 }
 0x2c4   : > { %v2492_v55 = vmul.f32 %v2428_v54, %v5091_v49  ;;  %3987 = vtanh.f32 %v2253_v33  ;;  %v2256_v3 = vmul.f32 0.7978846, %v2192_v62  ;;  %v2193_v38 = vadd.f32 %v2129_v5, %v5317_v31  ;;  %v5429_v62 = vpop.f32.mrf.mxu1 }
 0x2c5   : > { %v5417_v43 = vadd.f32 %v1853_v28, %v4956_v41  ;;  %v5419_v25 = vpop.eup %3979  ;;  %v2133_v32 = vmul.f32 0.044715, %v2069_v46  ;;  %v2076_v7 = vmul.f32 %v2012_v58, %v5380_v60  ;;  %v2011_v59 = vmul.f32 %v5403_v0, %v5403_v0  ;;  %v1857_v28 = vpop.f32.mrf.mxu0 }
 0x2c6   : > { %v2544_v50 = vpack.c.bf16 %v2492_v55, %v2488_v37  ;;  %v5424_v35 = vpop.eup %3981  ;;  %v2255_v4 = vmul.f32 0.7978846, %v2191_v47  ;;  %v2196_v49 = vadd.f32 %v2132_v26, %v5328_v22  ;;  %v2359_v54 = vadd.f32 1.0, %v5279_v15 }
 0x2c7   : > { %v2363_v33 = vadd.f32 1.0, %v5311_v39  ;;  %v2195_v5 = vadd.f32 %v2131_v20, %v5332_v16  ;;  %v2200_v17 = vadd.f32 %v2136_v10, %v5340_v42  ;;  %v2135_v46 = vmul.f32 0.044715, %v2071_v19 }
 0x2c8   : > { %2878 = vmatprep.mubr.bf16.mxu0 %v2544_v50  ;;  %v5435_v37 = vadd.f32 %v5287_v57, %v4910_v12  ;;  %3989 = vtanh.f32 %v2256_v3  ;;  %v2016_v58 = vmul.f32 %v5417_v43, %v5417_v43  ;;  %v2423_v15 = vmul.f32 0.5, %v2359_v54  ;;  %v5451_v50 = vpop.f32.mrf.mxu1 }
 0x2c9   : > { %v2427_v47 = vmul.f32 0.5, %v2363_v33  ;;  %v2140_v39 = vmul.f32 0.044715, %v2076_v7  ;;  %v2075_v26 = vmul.f32 %v2011_v59, %v5403_v0  ;;  %v5443_v10 = vadd.f32 %v1857_v28, %v4956_v41 }
 0x2ca   : > { %v2015_v20 = vmul.f32 %v5435_v37, %v5435_v37  ;;  %v2260_v19 = vmul.f32 0.7978846, %v2196_v49  ;;  %v2487_v55 = vmul.f32 %v2423_v15, %v5069_v8  ;;  %v5449_v3 = vadd.f32 %v5334_v18, %v4910_v12 }
 0x2cb   : > { %v2491_v57 = vmul.f32 %v2427_v47, %v5107_v24  ;;  %3991 = vtanh.f32 %v2255_v4  ;;  %v2259_v7 = vmul.f32 0.7978846, %v2195_v5  ;;  %v2264_v59 = vmul.f32 0.7978846, %v2200_v17 }
 0x2cc   : > { %v2199_v54 = vadd.f32 %v2135_v46, %v5370_v36  ;;  %v5454_v33 = vpop.eup %3983  ;;  %v2080_v41 = vmul.f32 %v2016_v58, %v5417_v43  ;;  %v2020_v8 = vmul.f32 %v5443_v10, %v5443_v10  ;;  %v2368_v24 = vadd.f32 1.0, %v5347_v21  ;;  %v5467_v58 = vpop.f32.mrf.mxu1 }
 0x2cd   : > { %v2543_v49 = vpack.c.bf16 %v2491_v57, %v2487_v55  ;;  %v2204_v12 = vadd.f32 %v2140_v39, %v5380_v60  ;;  %v2139_v18 = vmul.f32 0.044715, %v2075_v26  ;;  %v2079_v28 = vmul.f32 %v2015_v20, %v5435_v37 }
 0x2ce   : > { %v2019_v4 = vmul.f32 %v5449_v3, %v5449_v3  ;;  %v5464_v5 = vmul.f32 0.7978846, %v2193_v38  ;;  %3993 = vtanh.f32 %v2260_v19  ;;  %v2372_v17 = vadd.f32 1.0, %v5383_v53 }
 0x2cf   : > { %2879 = vmatmul.mubr.bf16.gmra.mxu0 %v2543_v49  ;;  %v2432_v46 = vmul.f32 0.5, %v2368_v24  ;;  %v5469_v15 = vpop.eup %3985  ;;  %3995 = vtanh.f32 %v2259_v7  ;;  %v2197_v21 = vadd.f32 %v2133_v32, %v5352_v27  ;;  %v2263_v47 = vmul.f32 0.7978846, %v2199_v54 }
 0x2d0   : > { %6129 = vst [vmem:[#allocation59_spill] sm:$0xff] %v5464_v5  ;;  %v5474_v39 = vadd.f32 %v5306_v40, %v4913_v13  ;;  %3997 = vtanh.f32 %v2264_v59  ;;  %v2144_v38 = vmul.f32 0.044715, %v2080_v41  ;;  %v2084_v26 = vmul.f32 %v2020_v8, %v5443_v10  ;;  %v5488_v41 = vpop.f32.mrf.mxu1 }
 0x2d1   : > { %v2436_v20 = vmul.f32 0.5, %v2372_v17  ;;  %v5477_v19 = vpop.eup %3987  ;;  %v2268_v53 = vmul.f32 0.7978846, %v2204_v12  ;;  %v2203_v55 = vadd.f32 %v2139_v18, %v5403_v0  ;;  %v2143_v57 = vmul.f32 0.044715, %v2079_v28 }
 0x2d2   : > { %v2083_v7 = vmul.f32 %v2019_v4, %v5449_v3  ;;  %v2496_v32 = vmul.f32 %v2432_v46, %v5138_v23  ;;  %v5485_v40 = vadd.f32 %v5361_v61, %v5322_v34  ;;  %v2367_v59 = vadd.f32 1.0, %v5363_v11 }
 0x2d3   : > { %v2500_v54 = vmul.f32 %v2436_v20, %v5166_v6  ;;  %v5490_v49 = vmul.f32 0.7978846, %v2197_v21  ;;  %3999 = vtanh.f32 %v2263_v47  ;;  %v5494_v8 = vmul.f32 %v5474_v39, %v5474_v39  ;;  %v1915_v47 = vpop.f32.mrf.mxu1 }
 0x2d4   : > { %v2371_v24 = vadd.f32 1.0, %v5389_v51  ;;  %v2208_v23 = vadd.f32 %v2144_v38, %v5417_v43  ;;  %v2148_v6 = vmul.f32 0.044715, %v2084_v26  ;;  %v1970_v61 = vmul.f32 %v5485_v40, %v5485_v40 }
 0x2d5   : > { %v2548_v12 = vpack.c.bf16 %v2500_v54, %v2496_v32  ;;  %v5500_v18 = vpop.eup %3989  ;;  %4001 = vtanh.f32 %v2268_v53  ;;  %v2267_v11 = vmul.f32 0.7978846, %v2203_v55  ;;  %v2431_v28 = vmul.f32 0.5, %v2367_v59 }
 0x2d6   : > { %v2435_v4 = vmul.f32 0.5, %v2371_v24  ;;  %v2207_v17 = vadd.f32 %v2143_v57, %v5435_v37  ;;  %v2147_v46 = vmul.f32 0.044715, %v2083_v7  ;;  %v5505_v51 = vadd.f32 %v5387_v1, %v5322_v34 }
 0x2d7   : > { %2886 = vmatprep.mubr.bf16.mxu0 %v2548_v12  ;;  %v5509_v21 = vadd.f32 %v5410_v9, %v5322_v34  ;;  %v2034_v38 = vmul.f32 %v1970_v61, %v5485_v40  ;;  %v2495_v26 = vmul.f32 %v2431_v28, %v5146_v63  ;;  %v5516_v53 = vadd.f32 %v5429_v62, %v5322_v34 }
 0x2d8   : > { %v2499_v20 = vmul.f32 %v2435_v4, %v5173_v45  ;;  %v5518_v55 = vpop.eup %3991  ;;  %v2272_v57 = vmul.f32 0.7978846, %v2208_v23  ;;  %v2212_v1 = vadd.f32 %v2148_v6, %v5443_v10  ;;  %v1962_v9 = vmul.f32 %v5505_v51, %v5505_v51  ;;  %v3738_v23 = vpop.f32.mrf.mxu1 }
 0x2d9   : > { %v2376_v7 = vadd.f32 1.0, %v5405_v44  ;;  %4003 = vtanh.f32 %v2267_v11  ;;  %v1974_v63 = vmul.f32 %v5509_v21, %v5509_v21  ;;  %v2380_v45 = vadd.f32 1.0, %v5454_v33 }
 0x2da   : > { %v2547_v32 = vpack.c.bf16 %v2499_v20, %v2495_v26  ;;  %v2271_v54 = vmul.f32 0.7978846, %v2207_v17  ;;  %v2211_v62 = vadd.f32 %v2147_v46, %v5449_v3  ;;  %v1966_v59 = vmul.f32 %v5516_v53, %v5516_v53 }
 0x2db   : > { %v2440_v24 = vmul.f32 0.5, %v2376_v7  ;;  %v3994_v6 = vpop.eup %3993  ;;  %v2098_v12 = vmul.f32 0.044715, %v2034_v38  ;;  %v2444_v61 = vmul.f32 0.5, %v2380_v45  ;;  %v5532_v44 = vadd.f32 %v5451_v50, %v5322_v34 }
 0x2dc   : > { %2887 = vmatmul.mubr.bf16.gmra.mxu0 %v2547_v32  ;;  %v2375_v11 = vadd.f32 1.0, %v5419_v25  ;;  %v3996_v28 = vpop.eup %3995  ;;  %v5537_v33 = vadd.f32 %v5359_v2, %v4913_v13  ;;  %4005 = vtanh.f32 %v2272_v57  ;;  %v2276_v4 = vmul.f32 0.7978846, %v2212_v1  ;;  %v1928_v32 = vpop.f32.mrf.mxu1 }
 0x2dd   : > { %v2026_v17 = vmul.f32 %v1962_v9, %v5505_v51  ;;  %v5540_v46 = vpop.eup %3997  ;;  %v2038_v38 = vmul.f32 %v1974_v63, %v5509_v21  ;;  %v2504_v26 = vmul.f32 %v2440_v24, %v5194_v29  ;;  %v2508_v50 = vmul.f32 %v2444_v61, %v5252_v56 }
 0x2de   : > { %v2379_v20 = vadd.f32 1.0, %v5469_v15  ;;  %4007 = vtanh.f32 %v2271_v54  ;;  %v2275_v25 = vmul.f32 0.7978846, %v2211_v62  ;;  %v2030_v7 = vmul.f32 %v1966_v59, %v5516_v53 }
 0x2df   : > { %v2439_v2 = vmul.f32 0.5, %v2375_v11  ;;  %v2162_v57 = vadd.f32 %v2098_v12, %v5485_v40  ;;  %v2552_v1 = vpack.c.bf16 %v2508_v50, %v2504_v26  ;;  %v1986_v9 = vmul.f32 %v5532_v44, %v5532_v44 }
 0x2e0   : > { %v2443_v45 = vmul.f32 0.5, %v2379_v20  ;;  %v5550_v63 = vpop.eup %3999  ;;  %v5554_v29 = vmul.f32 %v5537_v33, %v5537_v33  ;;  %4009 = vtanh.f32 %v2276_v4  ;;  %v2090_v56 = vmul.f32 0.044715, %v2026_v17  ;;  %v3739_v17 = vpop.f32.mrf.mxu1 }
 0x2e1   : > { %v5558_v15 = vadd.f32 %v5467_v58, %v5322_v34  ;;  %v2102_v54 = vmul.f32 0.044715, %v2038_v38  ;;  %2894 = vmatprep.mubr.bf16.mxu0 %v2552_v1  ;;  %v2503_v62 = vmul.f32 %v2439_v2, %v5211_v30  ;;  %v5564_v24 = vadd.f32 %v5488_v41, %v5322_v34 }
 0x2e2   : > { %v2507_v59 = vmul.f32 %v2443_v45, %v5263_v14  ;;  %v5566_v12 = vpop.eup %4001  ;;  %v2094_v61 = vmul.f32 0.044715, %v2030_v7  ;;  %v5571_v4 = vadd.f32 %v1915_v47, %v5322_v34  ;;  %v2384_v58 = vadd.f32 1.0, %v5500_v18 }
 0x2e3   : > { %v1978_v11 = vmul.f32 %v5558_v15, %v5558_v15  ;;  %4011 = vtanh.f32 %v2275_v25  ;;  %v2226_v30 = vmul.f32 0.7978846, %v2162_v57  ;;  %v2050_v14 = vmul.f32 %v1986_v9, %v5532_v44 }
 0x2e4   : > { %v2551_v38 = vpack.c.bf16 %v2507_v59, %v2503_v62  ;;  %v2154_v41 = vadd.f32 %v2090_v56, %v5505_v51  ;;  %v1982_v50 = vmul.f32 %v5571_v4, %v5571_v4  ;;  %v2388_v20 = vadd.f32 1.0, %v3994_v6  ;;  %v1931_v56 = vpop.f32.mrf.mxu1 }
 0x2e5   : > { %v2042_v26 = vmul.f32 %v1978_v11, %v5558_v15  ;;  %v2166_v7 = vadd.f32 %v2102_v54, %v5509_v21  ;;  %v1990_v18 = vmul.f32 %v5564_v24, %v5564_v24  ;;  %v2448_v47 = vmul.f32 0.5, %v2384_v58 }
 0x2e6   : > { %2895 = vmatmul.mubr.bf16.gmra.mxu0 %v2551_v38  ;;  %v5583_v25 = vadd.f32 %v3738_v23, %v5322_v34  ;;  %v4004_v2 = vpop.eup %4003  ;;  %v2158_v57 = vadd.f32 %v2094_v61, %v5516_v53  ;;  %v2046_v1 = vmul.f32 %v1982_v50, %v5571_v4  ;;  %v2452_v9 = vmul.f32 0.5, %v2388_v20 }
 0x2e7   : > { %v2383_v45 = vadd.f32 1.0, %v5518_v55  ;;  %v2114_v6 = vmul.f32 0.044715, %v2050_v14  ;;  %v2106_v62 = vmul.f32 0.044715, %v2042_v26  ;;  %v2387_v59 = vadd.f32 1.0, %v3996_v28 }
 0x2e8   : > { %v2002_v54 = vmul.f32 %v5583_v25, %v5583_v25  ;;  %v2110_v11 = vmul.f32 0.044715, %v2046_v1  ;;  %v2512_v58 = vmul.f32 %v2448_v47, %v5296_v52  ;;  %v2516_v23 = vmul.f32 %v2452_v9, %v5328_v22  ;;  %v3742_v1 = vpop.f32.mrf.mxu1 }
 0x2e9   : > { %v2447_v38 = vmul.f32 0.5, %v2383_v45  ;;  %v5592_v31 = vpop.eup %4005  ;;  %v2218_v61 = vmul.f32 0.7978846, %v2154_v41  ;;  %v2054_v50 = vmul.f32 %v1990_v18, %v5564_v24  ;;  %v2451_v20 = vmul.f32 0.5, %v2387_v59 }
 0x2ea   : > { %v5596_v55 = vadd.f32 %v1928_v32, %v5322_v34  ;;  %v2230_v14 = vmul.f32 0.7978846, %v2166_v7  ;;  %v2222_v26 = vmul.f32 0.7978846, %v2158_v57  ;;  %v2556_v27 = vpack.c.bf16 %v2516_v23, %v2512_v58 }
 0x2eb   : > { %v2066_v28 = vmul.f32 %v2002_v54, %v5583_v25  ;;  %v5599_v5 = vpop.eup %4007  ;;  %v2174_v52 = vadd.f32 %v2110_v11, %v5571_v4  ;;  %v2511_v22 = vmul.f32 %v2447_v38, %v5304_v48  ;;  %v2515_v41 = vmul.f32 %v2451_v20, %v5332_v16 }
 0x2ec   : > { %v1994_v18 = vmul.f32 %v5596_v55, %v5596_v55  ;;  %4013 = vtanh.f32 %v2226_v30  ;;  %v2170_v32 = vadd.f32 %v2106_v62, %v5558_v15  ;;  %2902 = vmatprep.mubr.bf16.mxu0 %v2556_v27  ;;  %v5608_v7 = vadd.f32 %v3739_v17, %v5322_v34  ;;  %v1944_v27 = vpop.f32.mrf.mxu1 }
 0x2ed   : > { %v5611_v47 = vadd.f32 %v1931_v56, %v5322_v34  ;;  %v4010_v57 = vpop.eup %4009  ;;  %4015 = vtanh.f32 %v2218_v61  ;;  %v2118_v9 = vmul.f32 0.044715, %v2054_v50  ;;  %v2555_v45 = vpack.c.bf16 %v2515_v41, %v2511_v22  ;;  %v1859_v41 = vpop.f32.mrf.mxu0 }
 0x2ee   : > { %v2058_v48 = vmul.f32 %v1994_v18, %v5596_v55  ;;  %4017 = vtanh.f32 %v2222_v26  ;;  %v2130_v16 = vmul.f32 0.044715, %v2066_v28  ;;  %v2392_v62 = vadd.f32 1.0, %v5540_v46  ;;  %v3743_v28 = vpop.f32.mrf.mxu1 }
 0x2ef   : > { %v1998_v30 = vmul.f32 %v5611_v47, %v5611_v47  ;;  %4019 = vtanh.f32 %v2230_v14  ;;  %v2178_v17 = vadd.f32 %v2114_v6, %v5532_v44  ;;  %v2238_v54 = vmul.f32 0.7978846, %v2174_v52  ;;  %2903 = vmatmul.mubr.bf16.gmra.mxu0 %v2555_v45 }
 0x2f0   : > { %v2396_v56 = vadd.f32 1.0, %v5566_v12  ;;  %v4012_v59 = vpop.eup %4011  ;;  %v2234_v11 = vmul.f32 0.7978846, %v2170_v32  ;;  %v2006_v58 = vmul.f32 %v5608_v7, %v5608_v7  ;;  %v2456_v23 = vmul.f32 0.5, %v2392_v62  ;;  %v1947_v62 = vpop.f32.mrf.mxu1 }
 0x2f1   : > { %v2391_v38 = vadd.f32 1.0, %v5550_v63  ;;  %v2182_v61 = vadd.f32 %v2118_v9, %v5564_v24  ;;  %v2122_v50 = vmul.f32 0.044715, %v2058_v48  ;;  %v2062_v46 = vmul.f32 %v1998_v30, %v5611_v47 }
 0x2f2   : > { %v2460_v20 = vmul.f32 0.5, %v2396_v56  ;;  %v5626_v6 = vmul.f32 %v5494_v8, %v5474_v39  ;;  %v2077_v12 = vmul.f32 %v5554_v29, %v5537_v33  ;;  %v2194_v14 = vadd.f32 %v2130_v16, %v5583_v25 }
 0x2f3   : > { %v2395_v26 = vadd.f32 1.0, %v4004_v2  ;;  %4021 = vtanh.f32 %v2238_v54  ;;  %v2520_v63 = vmul.f32 %v2456_v23, %v5340_v42  ;;  %v2455_v22 = vmul.f32 0.5, %v2391_v38  ;;  %v6130_v2 = vld [vmem:[#allocation58_spill] sm:$0xff] }
 0x2f4   : > { %v2524_v52 = vmul.f32 %v2460_v20, %v5380_v60  ;;  %v2242_v18 = vmul.f32 0.7978846, %v2178_v17  ;;  %4023 = vtanh.f32 %v2234_v11  ;;  %v2070_v32 = vmul.f32 %v2006_v58, %v5608_v7 }
 0x2f5   : > { %v2459_v8 = vmul.f32 0.5, %v2395_v26  ;;  %v2246_v9 = vmul.f32 0.7978846, %v2182_v61  ;;  %v2186_v45 = vadd.f32 %v2122_v50, %v5596_v55  ;;  %v2126_v29 = vmul.f32 0.044715, %v2062_v46 }
 0x2f6   : > { %v2560_v48 = vpack.c.bf16 %v2524_v52, %v2520_v63  ;;  %v5635_v16 = vmul.f32 0.044715, %v2077_v12  ;;  %v5639_v30 = vadd.f32 %v6130_v2, %v4913_v13  ;;  %v2519_v42 = vmul.f32 %v2455_v22, %v5370_v36 }
 0x2f7   : > { %v2523_v60 = vmul.f32 %v2459_v8, %v5403_v0  ;;  %v5644_v17 = vadd.f32 %v1859_v41, %v4913_v13  ;;  %v2258_v54 = vmul.f32 0.7978846, %v2194_v14  ;;  %v5647_v56 = vadd.f32 %v3742_v1, %v5322_v34 }
 0x2f8   : > { %2910 = vmatprep.mubr.bf16.mxu0 %v2560_v48  ;;  %v2400_v11 = vadd.f32 1.0, %v5592_v31  ;;  %4025 = vtanh.f32 %v2242_v18  ;;  %v2134_v58 = vmul.f32 0.044715, %v2070_v32  ;;  %v2404_v38 = vadd.f32 1.0, %v4010_v57 }
 0x2f9   : > { %v2559_v23 = vpack.c.bf16 %v2523_v60, %v2519_v42  ;;  %v4014_v61 = vpop.eup %4013  ;;  %4027 = vtanh.f32 %v2246_v9  ;;  %v2250_v36 = vmul.f32 0.7978846, %v2186_v45  ;;  %v2190_v0 = vadd.f32 %v2126_v29, %v5611_v47 }
 0x2fa   : > { %v5652_v50 = vadd.f32 %v1947_v62, %v5322_v34  ;;  %v4016_v13 = vpop.eup %4015  ;;  %v5655_v46 = vadd.f32 %v1944_v27, %v5322_v34  ;;  %v2464_v1 = vmul.f32 0.5, %v2400_v11  ;;  %v2468_v20 = vmul.f32 0.5, %v2404_v38 }
 0x2fb   : > { %2911 = vmatmul.mubr.bf16.gmra.mxu0 %v2559_v23  ;;  %v2399_v31 = vadd.f32 1.0, %v5599_v5  ;;  %v4018_v12 = vpop.eup %4017  ;;  %v5660_v57 = vmul.f32 %v5644_v17, %v5644_v17  ;;  %4029 = vtanh.f32 %v2258_v54  ;;  %v2018_v14 = vmul.f32 %v5647_v56, %v5647_v56 }
 0x2fc   : > { %v2403_v26 = vadd.f32 1.0, %v4012_v59  ;;  %v4020_v63 = vpop.eup %4019  ;;  %v2198_v52 = vadd.f32 %v2134_v58, %v5608_v7  ;;  %v2528_v27 = vmul.f32 %v2464_v1, %v5417_v43  ;;  %v2532_v22 = vmul.f32 %v2468_v20, %v5443_v10 }
 0x2fd   : > { %v2463_v41 = vmul.f32 0.5, %v2399_v31  ;;  %v2254_v18 = vmul.f32 0.7978846, %v2190_v0  ;;  %v2014_v5 = vmul.f32 %v5652_v50, %v5652_v50  ;;  %v2346_v8 = vadd.f32 1.0, %v4016_v13 }
 0x2fe   : > { %v2467_v32 = vmul.f32 0.5, %v2403_v26  ;;  %4031 = vtanh.f32 %v2250_v36  ;;  %v2010_v9 = vmul.f32 %v5655_v46, %v5655_v46  ;;  %v2564_v45 = vpack.c.bf16 %v2532_v22, %v2528_v27  ;;  %v6131_v36 = vld [vmem:[#allocation47_spill] sm:$0xff] }
 0x2ff   : > { %v2350_v59 = vadd.f32 1.0, %v4018_v12  ;;  %v5672_v29 = vadd.f32 %v3743_v28, %v5322_v34  ;;  %v2527_v43 = vmul.f32 %v2463_v41, %v5435_v37  ;;  %v2410_v48 = vmul.f32 0.5, %v2346_v8 }
 0x300   : > { %v2531_v10 = vmul.f32 %v2467_v32, %v5449_v3  ;;  %v4022_v2 = vpop.eup %4021  ;;  %v2262_v42 = vmul.f32 0.7978846, %v2198_v52  ;;  %2918 = vmatprep.mubr.bf16.mxu0 %v2564_v45  ;;  %v2354_v62 = vadd.f32 1.0, %v4014_v61  ;;  %v2358_v54 = vadd.f32 1.0, %v4020_v63  ;;  %v6132_v61 = vld [vmem:[#allocation48_spill] sm:$0xff]  ;;  %v6133_v32 = vld [vmem:[#allocation51_spill] sm:$0xff] }
 0x301   : > { %v2414_v60 = vmul.f32 0.5, %v2350_v59  ;;  %v4024_v11 = vpop.eup %4023  ;;  %4033 = vtanh.f32 %v2254_v18  ;;  %v2078_v58 = vmul.f32 %v2014_v5, %v5652_v50  ;;  %v2474_v38 = vmul.f32 %v2410_v48, %v5505_v51 }
 0x302   : > { %v2563_v23 = vpack.c.bf16 %v2531_v10, %v2527_v43  ;;  %v2418_v28 = vmul.f32 0.5, %v2354_v62  ;;  %v2422_v37 = vmul.f32 0.5, %v2358_v54  ;;  %v2353_v3 = vadd.f32 1.0, %v6131_v36  ;;  %v6136_v43 = vld [vmem:[#allocation37_spill] sm:$0xff] }
 0x303   : > { %v2478_v34 = vmul.f32 %v2414_v60, %v5516_v53  ;;  %v2074_v0 = vmul.f32 %v2010_v9, %v5655_v46  ;;  %v2022_v13 = vmul.f32 %v5672_v29, %v5672_v29  ;;  %v2357_v1 = vadd.f32 1.0, %v6132_v61  ;;  %v6134_v9 = vld [vmem:[#allocation54_spill] sm:$0xff]  ;;  %v6138_v10 = vld [vmem:[#allocation29_spill] sm:$0xff]  ;;  %v6143_v61 = vld [vmem:[#allocation39_spill] sm:$0xff] }
 0x304   : > { %2919 = vmatmul.mubr.bf16.gmra.mxu0 %v2563_v23  ;;  %v2366_v20 = vadd.f32 1.0, %v4022_v2  ;;  %v2482_v12 = vmul.f32 %v2418_v28, %v5485_v40  ;;  %v2486_v51 = vmul.f32 %v2422_v37, %v5509_v21  ;;  %v2362_v26 = vadd.f32 1.0, %v4024_v11  ;;  %v6135_v40 = vld [vmem:[#allocation38_spill] sm:$0xff]  ;;  %v6141_v28 = vld [vmem:[#allocation57_spill] sm:$0xff] }
 0x305   : > { %v2538_v31 = vpack.c.bf16 %v2478_v34, %v2474_v38  ;;  %v4026_v53 = vpop.eup %4025  ;;  %v2082_v63 = vmul.f32 %v2018_v14, %v5647_v56  ;;  %v2142_v52 = vmul.f32 0.044715, %v2078_v58  ;;  %v2417_v27 = vmul.f32 0.5, %v2353_v3  ;;  %v6139_v14 = vld [vmem:[#allocation32_spill] sm:$0xff]  ;;  %v6142_v3 = vld [vmem:[#allocation34_spill] sm:$0xff] }
 0x306   : > { %v2421_v22 = vmul.f32 0.5, %v2357_v1  ;;  %v4028_v41 = vpop.eup %4027  ;;  %v2542_v18 = vpack.c.bf16 %v2486_v51, %v2482_v12  ;;  %v2430_v5 = vmul.f32 0.5, %v2366_v20  ;;  %v2361_v8 = vadd.f32 1.0, %v6133_v32  ;;  %v6140_v38 = vld [vmem:[#allocation56_spill] sm:$0xff] }
 0x307   : > { %2959 = vmatprep.mubr.bf16.mxu1 %v2538_v31  ;;  %v2365_v45 = vadd.f32 1.0, %v6134_v9  ;;  %4035 = vtanh.f32 %v2262_v42  ;;  %v2138_v59 = vmul.f32 0.044715, %v2074_v0  ;;  %v6137_v21 = vpack.c.bf16 %v6135_v40, %v6136_v43  ;;  %v6145_v9 = vld [vmem:[#allocation44_spill] sm:$0xff] }
 0x308   : > { %v2481_v48 = vmul.f32 %v2417_v27, %v6138_v10  ;;  %v2485_v2 = vmul.f32 %v2421_v22, %v6139_v14  ;;  %v5694_v60 = vpop.eup %4029  ;;  %v2086_v62 = vmul.f32 %v2022_v13, %v5672_v29  ;;  %v2426_v54 = vmul.f32 0.5, %v2362_v26  ;;  %v6146_v14 = vld [vmem:[#allocation45_spill] sm:$0xff] }
 0x309   : > { %2960 = vmatmul.mubr.bf16.vlgmr.msra.gmra.mxu1 %v6137_v21  ;;  %v2425_v11 = vmul.f32 0.5, %v2361_v8  ;;  %v2429_v58 = vmul.f32 0.5, %v2365_v45  ;;  %v2206_v23 = vadd.f32 %v2142_v52, %v5652_v50  ;;  %v2369_v34 = vadd.f32 1.0, %v6140_v38  ;;  %v6148_v38 = vld [vmem:[#allocation59_spill] sm:$0xff] }
 0x30a   : > { %2967 = vmatprep.mubr.bf16.mxu1 %v2542_v18  ;;  %v2541_v42 = vpack.c.bf16 %v2485_v2, %v2481_v48  ;;  %v2373_v37 = vadd.f32 1.0, %v6141_v28  ;;  %v2494_v36 = vmul.f32 %v2430_v5, %v5571_v4  ;;  %v2374_v20 = vadd.f32 1.0, %v4028_v41  ;;  %v6144_v5 = vld [vmem:[#allocation42_spill] sm:$0xff] }
 0x30b   : > { %v2489_v0 = vmul.f32 %v2425_v11, %v6142_v3  ;;  %v2493_v1 = vmul.f32 %v2429_v58, %v6143_v61  ;;  %v4032_v31 = vpop.eup %4031  ;;  %v2202_v13 = vadd.f32 %v2138_v59, %v5655_v46  ;;  %v2370_v12 = vadd.f32 1.0, %v4026_v53 }
 0x30c   : > { %v2433_v51 = vmul.f32 0.5, %v2369_v34  ;;  %v2437_v26 = vmul.f32 0.5, %v2373_v37  ;;  %v2490_v52 = vmul.f32 %v2426_v54, %v5558_v15  ;;  %v2377_v22 = vadd.f32 1.0, %v5424_v35 }
 0x30d   : > { %v2545_v27 = vpack.c.bf16 %v2493_v1, %v2489_v0  ;;  %v2381_v18 = vadd.f32 1.0, %v5477_v19  ;;  %v2150_v32 = vmul.f32 0.044715, %v2086_v62  ;;  %v2270_v4 = vmul.f32 0.7978846, %v2206_v23  ;;  %v6147_v62 = vld [vmem:[#allocation50_spill] sm:$0xff] }
 0x30e   : > { %v2497_v8 = vmul.f32 %v2433_v51, %v6144_v5  ;;  %v2501_v45 = vmul.f32 %v2437_v26, %v6145_v9  ;;  %v4034_v41 = vpop.eup %4033  ;;  %v2546_v40 = vpack.c.bf16 %v2494_v36, %v2490_v52  ;;  %v2438_v43 = vmul.f32 0.5, %v2374_v20 }
 0x30f   : > { %v2441_v59 = vmul.f32 0.5, %v2377_v22  ;;  %v2445_v53 = vmul.f32 0.5, %v2381_v18  ;;  %v2137_v21 = vmul.f32 0.044715, %v5626_v6  ;;  %v2017_v15 = vmul.f32 %v5639_v30, %v5639_v30 }
 0x310   : > { %v2146_v10 = vmul.f32 0.044715, %v2082_v63  ;;  %v2549_v35 = vpack.c.bf16 %v2501_v45, %v2497_v8  ;;  %v2266_v19 = vmul.f32 0.7978846, %v2202_v13  ;;  %v2434_v48 = vmul.f32 0.5, %v2370_v12 }
 0x311   : > { %2968 = vmatmul.mubr.bf16.gmra.mxu1 %v2541_v42  ;;  %v5713_v2 = vmul.f32 %v2441_v59, %v6146_v14  ;;  %v2509_v54 = vmul.f32 %v2445_v53, %v6147_v62  ;;  %4037 = vtanh.f32 %v5490_v49  ;;  %v2205_v11 = vadd.f32 %v5635_v16, %v5537_v33  ;;  %v6149_v62 = vld [vmem:[#allocation55_spill] sm:$0xff] }
 0x312   : > { %2975 = vmatprep.mubr.bf16.mxu1 %v2546_v40  ;;  %v2085_v6 = vmul.f32 %v5660_v57, %v5644_v17  ;;  %v2214_v63 = vadd.f32 %v2150_v32, %v5672_v29  ;;  %4039 = vtanh.f32 %v2270_v4  ;;  %v2502_v58 = vmul.f32 %v2438_v43, %v5564_v24 }
 0x313   : > { %v2382_v23 = vadd.f32 1.0, %v4034_v41  ;;  %v2553_v42 = vpack.c.bf16 %v2509_v54, %v5713_v2  ;;  %4041 = vtanh.f32 %v6148_v38  ;;  %v2201_v34 = vadd.f32 %v2137_v21, %v5474_v39 }
 0x314   : > { %v2081_v49 = vmul.f32 %v2017_v15, %v5639_v30  ;;  %v4036_v28 = vpop.eup %4035  ;;  %v2210_v16 = vadd.f32 %v2146_v10, %v5647_v56  ;;  %4043 = vtanh.f32 %v2266_v19  ;;  %v2498_v57 = vmul.f32 %v2434_v48, %v5532_v44 }
 0x315   : > { %v2378_v37 = vadd.f32 1.0, %v4032_v31  ;;  %v2269_v36 = vmul.f32 0.7978846, %v2205_v11  ;;  %v2149_v3 = vmul.f32 0.044715, %v2085_v6  ;;  %v2446_v61 = vmul.f32 0.5, %v2382_v23 }
 0x316   : > { %v2278_v0 = vmul.f32 0.7978846, %v2214_v63  ;;  %v2550_v24 = vpack.c.bf16 %v2502_v58, %v2498_v57  ;;  %v2265_v1 = vmul.f32 0.7978846, %v2201_v34  ;;  %v2145_v20 = vmul.f32 0.044715, %v2081_v49 }
 0x317   : > { %v2274_v13 = vmul.f32 0.7978846, %v2210_v16  ;;  %v2442_v12 = vmul.f32 0.5, %v2378_v37  ;;  %4045 = vtanh.f32 %v2269_v36  ;;  %v2213_v51 = vadd.f32 %v2149_v3, %v5644_v17  ;;  %v6150_v63 = vld [vmem:[#allocation53_spill] sm:$0xff] }
 0x318   : > { %4047 = vtanh.f32 %v2278_v0  ;;  %v2510_v26 = vmul.f32 %v2446_v61, %v5611_v47  ;;  %v2390_v52 = vadd.f32 1.0, %v4036_v28  ;;  %v2209_v44 = vadd.f32 %v2145_v20, %v5639_v30 }
 0x319   : > { %2976 = vmatmul.mubr.bf16.gmra.mxu1 %v2545_v27  ;;  %4049 = vtanh.f32 %v2265_v1  ;;  %v2506_v31 = vmul.f32 %v2442_v12, %v5596_v55  ;;  %v2386_v22 = vadd.f32 1.0, %v5694_v60  ;;  %v2277_v18 = vmul.f32 0.7978846, %v2213_v51 }
 0x31a   : > { %2983 = vmatprep.mubr.bf16.mxu1 %v2550_v24  ;;  %4051 = vtanh.f32 %v2274_v13  ;;  %v2454_v4 = vmul.f32 0.5, %v2390_v52  ;;  %v2273_v8 = vmul.f32 0.7978846, %v2209_v44 }
 0x31b   : > { %v2554_v32 = vpack.c.bf16 %v2510_v26, %v2506_v31  ;;  %v2450_v45 = vmul.f32 0.5, %v2386_v22  ;;  %4053 = vtanh.f32 %v2277_v18 }
 0x31c   : > { %v2518_v40 = vmul.f32 %v2454_v4, %v5608_v7  ;;  %4055 = vtanh.f32 %v2273_v8 }
 0x31d   : > { %v2514_v60 = vmul.f32 %v2450_v45, %v5583_v25 }
 0x31e   : > { %v4038_v27 = vpop.eup %4037 }
 0x31f   : > { %v4040_v5 = vpop.eup %4039  ;;  %v2389_v41 = vadd.f32 1.0, %v4038_v27  ;;  %v2558_v15 = vpack.c.bf16 %v2518_v40, %v2514_v60 }
 0x320   : > { %v4042_v9 = vpop.eup %4041  ;;  %v2398_v43 = vadd.f32 1.0, %v4040_v5 }
 0x321   : > { %2984 = vmatmul.mubr.bf16.gmra.mxu1 %v2549_v35  ;;  %v4044_v47 = vpop.eup %4043  ;;  %v2385_v55 = vadd.f32 1.0, %v4042_v9  ;;  %v2453_v53 = vmul.f32 0.5, %v2389_v41 }
 0x322   : > { %2991 = vmatprep.mubr.bf16.mxu1 %v2554_v32  ;;  %v2394_v59 = vadd.f32 1.0, %v4044_v47  ;;  %v2462_v10 = vmul.f32 0.5, %v2398_v43 }
 0x323   : > { %v2449_v35 = vmul.f32 0.5, %v2385_v55  ;;  %v2517_v54 = vmul.f32 %v2453_v53, %v6149_v62 }
 0x324   : > { %v4046_v21 = vpop.eup %4045  ;;  %v2458_v14 = vmul.f32 0.5, %v2394_v59  ;;  %v2526_v11 = vmul.f32 %v2462_v10, %v5652_v50 }
 0x325   : > { %v4048_v19 = vpop.eup %4047  ;;  %v2397_v7 = vadd.f32 1.0, %v4046_v21  ;;  %v2513_v25 = vmul.f32 %v2449_v35, %v6150_v63 }
 0x326   : > { %v4050_v48 = vpop.eup %4049  ;;  %v2406_v6 = vadd.f32 1.0, %v4048_v19  ;;  %v2522_v23 = vmul.f32 %v2458_v14, %v5655_v46 }
 0x327   : > { %v4052_v2 = vpop.eup %4051  ;;  %v2393_v58 = vadd.f32 1.0, %v4050_v48  ;;  %v2557_v34 = vpack.c.bf16 %v2517_v54, %v2513_v25  ;;  %v2461_v49 = vmul.f32 0.5, %v2397_v7 }
 0x328   : > { %v2402_v38 = vadd.f32 1.0, %v4052_v2  ;;  %v2562_v28 = vpack.c.bf16 %v2526_v11, %v2522_v23  ;;  %v2470_v16 = vmul.f32 0.5, %v2406_v6 }
 0x329   : > { %2992 = vmatmul.mubr.bf16.gmra.mxu1 %v2553_v42  ;;  %v4054_v42 = vpop.eup %4053  ;;  %v2457_v57 = vmul.f32 0.5, %v2393_v58  ;;  %v2525_v3 = vmul.f32 %v2461_v49, %v5537_v33 }
 0x32a   : > { %2999 = vmatprep.mubr.bf16.mxu1 %v2558_v15  ;;  %v4056_v37 = vpop.eup %4055  ;;  %v2466_v36 = vmul.f32 0.5, %v2402_v38  ;;  %v2405_v50 = vadd.f32 1.0, %v4054_v42  ;;  %v2534_v0 = vmul.f32 %v2470_v16, %v5672_v29 }
 0x32b   : > { %v2521_v24 = vmul.f32 %v2457_v57, %v5474_v39  ;;  %v2401_v46 = vadd.f32 1.0, %v4056_v37 }
 0x32c   : > { %v2530_v61 = vmul.f32 %v2466_v36, %v5647_v56  ;;  %v2469_v20 = vmul.f32 0.5, %v2405_v50 }
 0x32d   : > { %v2561_v1 = vpack.c.bf16 %v2525_v3, %v2521_v24  ;;  %v2465_v12 = vmul.f32 0.5, %v2401_v46 }
 0x32e   : > { %v2566_v13 = vpack.c.bf16 %v2534_v0, %v2530_v61  ;;  %v2533_v33 = vmul.f32 %v2469_v20, %v5644_v17  ;;  %v1165_v17 = vld [vmem:[%s653_s16] sm:$0x1] }
 0x32f   : > { %v2529_v29 = vmul.f32 %v2465_v12, %v5639_v30 }
 0x331   : > { %3000 = vmatmul.mubr.bf16.gmra.mxu1 %v2557_v34  ;;  %v2565_v39 = vpack.c.bf16 %v2533_v33, %v2529_v29 }
 0x332   : > { %3007 = vmatprep.mubr.bf16.mxu1 %v2562_v28 }
 0x339   : > { %3008 = vmatmul.mubr.bf16.gmra.mxu1 %v2561_v1 }
 0x33a   : > { %3015 = vmatprep.mubr.bf16.mxu1 %v2566_v13 }
 0x341   : > { %3016 = vmatmul.mubr.bf16.gmra.mxu1 %v2565_v39 }
 0x36e   : > { %v5746_v51 = vpop.f32.mrf.mxu0 }
 0x370   : > { %v5748_v26 = vpop.f32.mrf.mxu0 }
 0x372   : > { %v5750_v56 = vpop.f32.mrf.mxu0 }
 0x374   : > { %v5763_v30 = vpop.f32.mrf.mxu0 }
 0x375   : > { %4127 = shalt.err (!%p4124_p7)
}
 0x376   : > { %s4128_s16 = scalar_lea.hbm %s5759_s18, 2048  ;;  %s4132_s1 = scalar_lea.hbm %s6151_s5, 4096 }
 0x377   : > { %p4129_p1 = scmp.ne.s32.totalorder %s5759_s18, %s4128_s16  ;;  %p4133_p10 = scmp.lt.s32.totalorder %s5759_s18, %s6151_s5 }
 0x378   : > { %p4134_p0 = scmp.lt.s32.totalorder %s4132_s1, %s4128_s16 }
 0x379   : > { %p4130_p2 = pnand %p4129_p1, %p4442_p9 }
 0x37a   : > { %p4135_p8 = por %p4134_p0, %p4133_p10 }
 0x37b   : > { %p4131_p4 = pneg %p4130_p2 }
 0x37d   : > { %p4136_p3 = pnand %p4135_p8, %p4131_p4 }
 0x37f   : > { %4139 = shalt.err (!%p4136_p3)
}
 0x380   : > { %s6065_s0 = smov 128   ;;  %s6066_s26 = smov 8   ;;  %v1166_v52 = vmul.f32 0.13533528, %v1165_v17 }
 0x381   : > { %3749 = dma.vmem_to_hbm [thread:$0]  (%p4442_p9), %s5766_s30, 2048, %s5759_s18, %s5768_s24, %s6065_s0, %s6065_s0, %s6066_s26   ;;  %v5794_v44 = vpop.f32.mrf.mxu0 }
 0x382   : > { %s6152_s17 = sld [smem:[#allocation61_spill]]  ;;  %s3511_s2 = sshll.u32 %s4276_s27, 4 }
 0x383   : > { %s6153_s21 = sld [smem:[#allocation64_spill]]  ;;  %s759_s3 = scalar_lea.vmem [#allocation10], %s4503_s20  ;;  %v5811_v32 = vpop.f32.mrf.mxu0 }
 0x384   : > { %s3120_s5 = sshll.u32 %s759_s3, 4  ;;  %s6154_s0 = sld [smem:[#allocation69_spill]]  ;;  %s5819_s5 = int_to_ptr.vmem [resolvable:$true] %s3120_s5 }
 0x385   : > { %s765_s15 = scalar_lea.vmem [#allocation11], %s4503_s20  ;;  %s3071_s1 = scalar_lea.sflag [#allocation12], %s4503_s20 }
 0x388   : > { %s774_s13 = scalar_lea.vmem %s6152_s17, %s4526_s19  ;;  %s6155_s17 = sld [smem:[#allocation70_spill]] }
 0x389   : > { %s793_s23 = scalar_lea.vmem %s6153_s21, %s4526_s19  ;;  %v825_v31 = vld [vmem:[%s774_s13] sm:$0x1]  ;;  %s4294_s21 = smov [#allocation11]  }
 0x38a   : > { %v1161_v22 = vld [vmem:[%s793_s23] sm:$0x1]  ;;  %v1167_v18 = vadd.f32 %v1166_v52, %v825_v31  ;;  %s5809_s26 = scalar_lea.hbm %s6154_s0, %s3511_s2  ;;  %s3134_s23 = sshll.u32 %s765_s15, 4  ;;  %s3135_s23 = int_to_ptr.vmem [resolvable:$true] %s3134_s23 }
 0x38b   : > { %v1162_v27 = vmul.f32 0.13533528, %v1161_v22  ;;  %s4140_s14 = scalar_lea.vmem %s3135_s23, 16  ;;  %s4144_s18 = sshll.u32 %s4294_s21, 4  ;;  %s4145_s18 = int_to_ptr.vmem [resolvable:$false] %s4144_s18 }
 0x38c   : > { %1168 = vst [vmem:[%s765_s15] sm:$0x1] %v1167_v18  ;;  %p4141_p13 = scmp.ne.s32.totalorder %s3135_s23, %s4140_s14  ;;  %s4146_s30 = scalar_lea.vmem %s4145_s18, 32 }
 0x38d   : > { %v1163_v4 = vadd.f32 %v1162_v27, %v825_v31  ;;  %p4147_p6 = scmp.lt.s32.totalorder %s3135_s23, %s4145_s18  ;;  %p4148_p7 = scmp.lt.s32.totalorder %s4146_s30, %s4140_s14 }
 0x38e   : > { %s5817_s13 = scalar_lea.hbm %s6155_s17, %s3511_s2  ;;  %p4142_p5 = pnand %p4141_p13, %p4442_p9 }
 0x38f   : > { %1164 = vst [vmem:[%s759_s3] sm:$0x1] %v1163_v4  ;;  %p4149_p1 = por %p4148_p7, %p4147_p6 }
 0x390   : > { %p4143_p12 = pneg %p4142_p5 }
 0x392   : > { %p4150_p2 = pnand %p4149_p1, %p4143_p12 }
 0x394   : > { %4153 = shalt.err (!%p4150_p2)
}
 0x395   : > { %s4154_s2 = scalar_lea.hbm %s5817_s13, 16  ;;  %s4158_s16 = scalar_lea.hbm %s6155_s17, 32 }
 0x396   : > { %p4155_p4 = scmp.ne.s32.totalorder %s5817_s13, %s4154_s2  ;;  %p4159_p8 = scmp.lt.s32.totalorder %s5817_s13, %s6155_s17 }
 0x397   : > { %p4160_p3 = scmp.lt.s32.totalorder %s4158_s16, %s4154_s2 }
 0x398   : > { %p4156_p10 = pnand %p4155_p4, %p4442_p9 }
 0x399   : > { %p4161_p13 = por %p4160_p3, %p4159_p8 }
 0x39a   : > { %p4157_p0 = pneg %p4156_p10 }
 0x39c   : > { %p4162_p5 = pnand %p4161_p13, %p4157_p0 }
 0x39e   : > { %4165 = shalt.err (!%p4162_p5)
}
 0x39f   : > { %3751 = dma.vmem_to_hbm [thread:$0]  (%p4442_p9), %s3135_s23, 16, %s5817_s13, %s3071_s1   ;;  %v3577_v5 = vpop.f32.mrf.mxu0 }
 0x3a0   : > { %s4166_s14 = scalar_lea.vmem %s5819_s5, 16  ;;  %s4295_s18 = smov [#allocation10]  }
 0x3a1   : > { %p4167_p12 = scmp.ne.s32.totalorder %s5819_s5, %s4166_s14  ;;  %s4170_s30 = sshll.u32 %s4295_s18, 4  ;;  %s4171_s30 = int_to_ptr.vmem [resolvable:$false] %s4170_s30 }
 0x3a2   : > { %s4172_s2 = scalar_lea.vmem %s4171_s30, 32  ;;  %p4173_p1 = scmp.lt.s32.totalorder %s5819_s5, %s4171_s30 }
 0x3a3   : > { %p4168_p6 = pnand %p4167_p12, %p4442_p9  ;;  %p4174_p2 = scmp.lt.s32.totalorder %s4172_s2, %s4166_s14 }
 0x3a5   : > { %p4169_p7 = pneg %p4168_p6  ;;  %p4175_p4 = por %p4174_p2, %p4173_p1 }
 0x3a7   : > { %p4176_p10 = pnand %p4175_p4, %p4169_p7 }
 0x3a9   : > { %4179 = shalt.err (!%p4176_p10)
}
 0x3aa   : > { %s4180_s13 = scalar_lea.hbm %s5809_s26, 16  ;;  %s4184_s3 = scalar_lea.hbm %s6154_s0, 32 }
 0x3ab   : > { %p4181_p0 = scmp.ne.s32.totalorder %s5809_s26, %s4180_s13  ;;  %p4185_p13 = scmp.lt.s32.totalorder %s5809_s26, %s6154_s0 }
 0x3ac   : > { %p4186_p5 = scmp.lt.s32.totalorder %s4184_s3, %s4180_s13 }
 0x3ad   : > { %p4182_p8 = pnand %p4181_p0, %p4442_p9 }
 0x3ae   : > { %p4187_p12 = por %p4186_p5, %p4185_p13 }
 0x3af   : > { %p4183_p3 = pneg %p4182_p8 }
 0x3b1   : > { %p4188_p6 = pnand %p4187_p12, %p4183_p3 }
 0x3b3   : > { %4191 = shalt.err (!%p4188_p6)
}
 0x3b4   : > { %3750 = dma.vmem_to_hbm [thread:$0]  (%p4442_p9), %s5819_s5, 16, %s5809_s26, %s5768_s24   ;;  %v3578_v8 = vpop.f32.mrf.mxu0  ;;  %v3570_v53 = vadd.f32 %v5748_v26, %v5746_v51  ;;  %v4057_v19 = vld [vmem:[%s6034_s11] sm:$0x1f]  ;;  %v6157_v35 = vld [vmem:[#allocation23_spill] sm:$0xff]  ;;  %v3573_v62 = vadd.f32 %v5763_v30, %v5750_v56  ;;  %v6158_v6 = vld [vmem:[#allocation24_spill] sm:$0xff]  ;;  %v3576_v38 = vadd.f32 %v5811_v32, %v5794_v44 }
 0x3b5   : > { %s6156_s14 = sld [smem:[#allocation66_spill]]  ;;  %v5878_v48 = vrot.slane %v4057_v19, %v6157_v35  ;;  %v6159_v16 = vld [vmem:[#allocation25_spill] sm:$0xff]  ;;  %s5895_s26 = scalar_lea.vmem [#allocation7], %s4512_s4  ;;  %v3579_v50 = vadd.f32 %v3578_v8, %v3577_v5  ;;  %v6160_v1 = vld [vmem:[#allocation26_spill] sm:$0xff]  ;;  %v6161_v17 = vld [vmem:[#allocation27_spill] sm:$0xff] }
 0x3b6   : > { %v3580_v9 = vpop.f32.mrf.mxu0  ;;  %v6162_v5 = vld [vmem:[#allocation28_spill] sm:$0xff]  ;;  %s3085_s4 = sshll.u32 %s5895_s26, 4  ;;  %s6174_s18 = sshll.u32 %s4276_s27, 11  ;;  %s5971_s4 = int_to_ptr.vmem [resolvable:$true] %s3085_s4 }
 0x3b7   : > { %v1671_v63 = vadd.f32 %v6158_v6, %v5878_v48  ;;  %v1675_v57 = vadd.f32 %v6159_v16, %v5878_v48  ;;  %v1681_v20 = vadd.f32 %v6160_v1, %v5878_v48  ;;  %v1685_v30 = vadd.f32 %v6161_v17, %v5878_v48  ;;  %s6175_s13 = sld [smem:[#allocation67_spill]]  ;;  %s3057_s1 = scalar_lea.sflag [#allocation4], %s4503_s20 }
 0x3b8   : > { %v3581_v45 = vpop.f32.mrf.mxu0  ;;  %v1691_v8 = vadd.f32 %v6162_v5, %v5878_v48  ;;  %s4192_s3 = scalar_lea.vmem %s5971_s4, 2048  ;;  %s4296_s15 = smov [#allocation7]  }
 0x3b9   : > { %v3582_v29 = vadd.f32 %v3581_v45, %v3580_v9  ;;  %p4193_p7 = scmp.ne.s32.totalorder %s5971_s4, %s4192_s3  ;;  %s4196_s16 = sshll.u32 %s4296_s15, 4  ;;  %s4197_s16 = int_to_ptr.vmem [resolvable:$false] %s4196_s16 }
 0x3ba   : > { %v3583_v47 = vpop.f32.mrf.mxu0  ;;  %s4198_s27 = scalar_lea.vmem %s4197_s16, 4096  ;;  %p4199_p4 = scmp.lt.s32.totalorder %s5971_s4, %s4197_s16 }
 0x3bb   : > { %v5870_v21 = vld [vmem:[%s6156_s14] ss:$0 sm:$0xff]  ;;  %p4194_p1 = pnand %p4193_p7, %p4442_p9  ;;  %p4200_p10 = scmp.lt.s32.totalorder %s4198_s27, %s4192_s3 }
 0x3bc   : > { %v3584_v41 = vpop.f32.mrf.mxu0  ;;  %v2865_v2 = vadd.f32 %v3570_v53, %v5870_v21  ;;  %v2868_v23 = vadd.f32 %v3573_v62, %v5870_v21  ;;  %v2873_v3 = vadd.f32 %v3576_v38, %v5870_v21  ;;  %v2876_v33 = vadd.f32 %v3579_v50, %v5870_v21 }
 0x3bd   : > { %v2881_v31 = vadd.f32 %v3582_v29, %v5870_v21  ;;  %v3585_v22 = vadd.f32 %v3584_v41, %v3583_v47  ;;  %v6163_v47 = vld [vmem:[#allocation30_spill] sm:$0xff]  ;;  %s5969_s23 = scalar_lea.hbm %s6175_s13, %s6174_s18  ;;  %p4195_p2 = pneg %p4194_p1 }
 0x3be   : > { %v3586_v40 = vpop.f32.mrf.mxu0  ;;  %v1695_v41 = vadd.f32 %v6163_v47, %v5878_v48  ;;  %p4201_p0 = por %p4200_p10, %p4199_p4 }
 0x3bf   : > { %v2884_v53 = vadd.f32 %v3585_v22, %v5870_v21 }
 0x3c0   : > { %v3587_v43 = vpop.f32.mrf.mxu0  ;;  %p4202_p8 = pnand %p4201_p0, %p4195_p2 }
 0x3c2   : > { %v5859_v55 = vpop.f32.mrf.mxu0 }
 0x3c4   : > { %v5861_v60 = vpop.f32.mrf.mxu0 }
 0x3c5   : > { %v3591_v6 = vadd.f32 %v5861_v60, %v5859_v55 }
 0x3c6   : > { %v5863_v59 = vpop.f32.mrf.mxu0 }
 0x3c8   : > { %v5872_v15 = vpop.f32.mrf.mxu0 }
 0x3c9   : > { %v3632_v10 = vpop.f32.mrf.mxu1 }
 0x3ca   : > { %v5883_v7 = vpop.f32.mrf.mxu0 }
 0x3cb   : > { %v3633_v14 = vpop.f32.mrf.mxu1 }
 0x3cc   : > { %v3634_v54 = vadd.f32 %v3633_v14, %v3632_v10  ;;  %v5890_v42 = vpop.f32.mrf.mxu0  ;;  %v3588_v10 = vadd.f32 %v3587_v43, %v3586_v40 }
 0x3cd   : > { %v3635_v11 = vpop.f32.mrf.mxu1 }
 0x3ce   : > { %v2962_v25 = vadd.f32 %v3634_v54, %v2865_v2  ;;  %v5899_v46 = vpop.f32.mrf.mxu0 }
 0x3cf   : > { %v3636_v58 = vpop.f32.mrf.mxu1 }
 0x3d0   : > { %v3024_v34 = vadd.f32 %v2962_v25, %v1671_v63  ;;  %v3637_v49 = vadd.f32 %v3636_v58, %v3635_v11  ;;  %v3599_v26 = vpop.f32.mrf.mxu0  ;;  %v2889_v11 = vadd.f32 %v3588_v10, %v5870_v21  ;;  %v6164_v58 = vld [vmem:[#allocation31_spill] sm:$0xff] }
 0x3d1   : > { %v3638_v28 = vpop.f32.mrf.mxu1 }
 0x3d2   : > { %3040 = vst [vmem:[%s5895_s26] sm:$0xff] %v3024_v34  ;;  %v2965_v37 = vadd.f32 %v3637_v49, %v2868_v23  ;;  %v3601_v32 = vpop.f32.mrf.mxu0  ;;  %v1701_v23 = vadd.f32 %v6164_v58, %v5878_v48  ;;  %v2892_v49 = vadd.f32 %v3591_v6, %v5870_v21 }
 0x3d3   : > { %v3639_v36 = vpop.f32.mrf.mxu1 }
 0x3d4   : > { %v3025_v0 = vadd.f32 %v2965_v37, %v1675_v57  ;;  %v3640_v24 = vadd.f32 %v3639_v36, %v3638_v28  ;;  %v3602_v14 = vpop.f32.mrf.mxu0  ;;  %v3594_v28 = vadd.f32 %v5872_v15, %v5863_v59  ;;  %v6165_v37 = vld [vmem:[#allocation33_spill] sm:$0xff] }
 0x3d5   : > { %v3641_v61 = vpop.f32.mrf.mxu1  ;;  %v1705_v36 = vadd.f32 %v6165_v37, %v5878_v48  ;;  %v3603_v22 = vadd.f32 %v3602_v14, %v3601_v32  ;;  %v6169_v32 = vld [vmem:[#allocation41_spill] sm:$0xff] }
 0x3d6   : > { %3041 = vst [vmem:[%s5895_s26 + $0x8] sm:$0xff] %v3025_v0  ;;  %v2970_v13 = vadd.f32 %v3640_v24, %v2873_v3  ;;  %v3604_v40 = vpop.f32.mrf.mxu0  ;;  %v2897_v0 = vadd.f32 %v3594_v28, %v5870_v21  ;;  %v3597_v24 = vadd.f32 %v5890_v42, %v5883_v7  ;;  %v6167_v42 = vld [vmem:[#allocation36_spill] sm:$0xff]  ;;  %v1725_v14 = vadd.f32 %v6169_v32, %v5878_v48 }
 0x3d7   : > { %v3642_v12 = vpop.f32.mrf.mxu1 }
 0x3d8   : > { %v3026_v39 = vadd.f32 %v2970_v13, %v1681_v20  ;;  %v3643_v51 = vadd.f32 %v3642_v12, %v3641_v61  ;;  %v3605_v55 = vpop.f32.mrf.mxu0  ;;  %v6166_v20 = vld [vmem:[#allocation35_spill] sm:$0xff]  ;;  %v2900_v29 = vadd.f32 %v3597_v24, %v5870_v21 }
 0x3d9   : > { %v3644_v56 = vpop.f32.mrf.mxu1  ;;  %v1711_v13 = vadd.f32 %v6166_v20, %v5878_v48 }
 0x3da   : > { %3042 = vst [vmem:[%s5895_s26 + $0x10] sm:$0xff] %v3026_v39  ;;  %v2973_v52 = vadd.f32 %v3643_v51, %v2876_v33  ;;  %v3607_v59 = vpop.f32.mrf.mxu0  ;;  %v3600_v39 = vadd.f32 %v3599_v26, %v5899_v46  ;;  %v6168_v46 = vld [vmem:[#allocation40_spill] sm:$0xff] }
 0x3db   : > { %v3645_v44 = vpop.f32.mrf.mxu1  ;;  %v1721_v26 = vadd.f32 %v6168_v46, %v5878_v48 }
 0x3dc   : > { %v3027_v18 = vadd.f32 %v2973_v52, %v1685_v30  ;;  %v3646_v27 = vadd.f32 %v3645_v44, %v3644_v56  ;;  %v3608_v17 = vpop.f32.mrf.mxu0  ;;  %v1715_v30 = vadd.f32 %v6167_v42, %v5878_v48 }
 0x3dd   : > { %v3647_v4 = vpop.f32.mrf.mxu1 }
 0x3de   : > { %3043 = vst [vmem:[%s5895_s26 + $0x18] sm:$0xff] %v3027_v18  ;;  %v2978_v9 = vadd.f32 %v3646_v27, %v2881_v31  ;;  %v2905_v31 = vadd.f32 %v3600_v39, %v5870_v21 }
 0x3df   : > { %v3648_v45 = vpop.f32.mrf.mxu1 }
 0x3e0   : > { %v3028_v19 = vadd.f32 %v2978_v9, %v1691_v8  ;;  %v3649_v35 = vadd.f32 %v3648_v45, %v3647_v4  ;;  %v3610_v4 = vpop.f32.mrf.mxu0  ;;  %v2908_v45 = vadd.f32 %v3603_v22, %v5870_v21 }
 0x3e1   : > { %v3650_v2 = vpop.f32.mrf.mxu1 }
 0x3e2   : > { %3044 = vst [vmem:[%s5895_s26 + $0x20] sm:$0xff] %v3028_v19  ;;  %v2981_v62 = vadd.f32 %v3649_v35, %v2884_v53  ;;  %v3606_v53 = vadd.f32 %v3605_v55, %v3604_v40  ;;  %v3611_v35 = vpop.f32.mrf.mxu0  ;;  %v6170_v40 = vld [vmem:[#allocation43_spill] sm:$0xff]  ;;  %v6171_v55 = vld [vmem:[#allocation46_spill] sm:$0xff] }
 0x3e3   : > { %v3651_v54 = vpop.f32.mrf.mxu1 }
 0x3e4   : > { %v3029_v63 = vadd.f32 %v2981_v62, %v1695_v41  ;;  %v3652_v25 = vadd.f32 %v3651_v54, %v3650_v2  ;;  %v2913_v62 = vadd.f32 %v3606_v53, %v5870_v21  ;;  %v3609_v54 = vadd.f32 %v3608_v17, %v3607_v59 }
 0x3e5   : > { %v3653_v43 = vpop.f32.mrf.mxu1 }
 0x3e6   : > { %3045 = vst [vmem:[%s5895_s26 + $0x28] sm:$0xff] %v3029_v63  ;;  %v2986_v38 = vadd.f32 %v3652_v25, %v2889_v11  ;;  %v3613_v63 = vpop.f32.mrf.mxu0 }
 0x3e7   : > { %v3654_v34 = vpop.f32.mrf.mxu1 }
 0x3e8   : > { %v3030_v16 = vadd.f32 %v2986_v38, %v1701_v23  ;;  %v3655_v57 = vadd.f32 %v3654_v34, %v3653_v43  ;;  %v1731_v43 = vadd.f32 %v6170_v40, %v5878_v48  ;;  %v2916_v38 = vadd.f32 %v3609_v54, %v5870_v21 }
 0x3e9   : > { %v3656_v60 = vpop.f32.mrf.mxu1  ;;  %v3612_v34 = vadd.f32 %v3611_v35, %v3610_v4 }
 0x3ea   : > { %3046 = vst [vmem:[%s5895_s26 + $0x30] sm:$0xff] %v3030_v16  ;;  %v2989_v3 = vadd.f32 %v3655_v57, %v2892_v49  ;;  %v3614_v16 = vpop.f32.mrf.mxu0 }
 0x3eb   : > { %v3657_v50 = vpop.f32.mrf.mxu1 }
 0x3ec   : > { %v3031_v61 = vadd.f32 %v2989_v3, %v1705_v36  ;;  %v3658_v1 = vadd.f32 %v3657_v50, %v3656_v60  ;;  %v1735_v60 = vadd.f32 %v6171_v55, %v5878_v48  ;;  %v2921_v3 = vadd.f32 %v3612_v34, %v5870_v21 }
 0x3ed   : > { %v3659_v15 = vpop.f32.mrf.mxu1  ;;  %v3615_v50 = vadd.f32 %v3614_v16, %v3613_v63 }
 0x3ee   : > { %3047 = vst [vmem:[%s5895_s26 + $0x38] sm:$0xff] %v3031_v61  ;;  %v2994_v12 = vadd.f32 %v3658_v1, %v2897_v0  ;;  %v6172_v1 = vld [vmem:[#allocation49_spill] sm:$0xff] }
 0x3ef   : > { %v3660_v33 = vpop.f32.mrf.mxu1  ;;  %v1741_v59 = vadd.f32 %v6172_v1, %v5878_v48 }
 0x3f0   : > { %v3032_v51 = vadd.f32 %v2994_v12, %v1711_v13  ;;  %v3661_v56 = vadd.f32 %v3660_v33, %v3659_v15  ;;  %v2924_v13 = vadd.f32 %v3615_v50, %v5870_v21 }
 0x3f1   : > { %v3662_v7 = vpop.f32.mrf.mxu1 }
 0x3f2   : > { %3048 = vst [vmem:[%s5895_s26 + $0x40] sm:$0xff] %v3032_v51  ;;  %v2997_v52 = vadd.f32 %v3661_v56, %v2900_v29  ;;  %v6173_v29 = vld [vmem:[#allocation52_spill] sm:$0xff] }
 0x3f3   : > { %v3663_v44 = vpop.f32.mrf.mxu1  ;;  %v1745_v39 = vadd.f32 %v6173_v29, %v5878_v48 }
 0x3f4   : > { %v3033_v18 = vadd.f32 %v2997_v52, %v1715_v30  ;;  %v3664_v27 = vadd.f32 %v3663_v44, %v3662_v7 }
 0x3f5   : > { %v3665_v5 = vpop.f32.mrf.mxu1 }
 0x3f6   : > { %3049 = vst [vmem:[%s5895_s26 + $0x48] sm:$0xff] %v3033_v18  ;;  %v3002_v8 = vadd.f32 %v3664_v27, %v2905_v31 }
 0x3f7   : > { %v3666_v9 = vpop.f32.mrf.mxu1 }
 0x3f8   : > { %v3034_v10 = vadd.f32 %v3002_v8, %v1721_v26  ;;  %v3667_v19 = vadd.f32 %v3666_v9, %v3665_v5 }
 0x3f9   : > { %v3668_v2 = vpop.f32.mrf.mxu1 }
 0x3fa   : > { %3050 = vst [vmem:[%s5895_s26 + $0x50] sm:$0xff] %v3034_v10  ;;  %v3005_v47 = vadd.f32 %v3667_v19, %v2908_v45 }
 0x3fb   : > { %v3669_v41 = vpop.f32.mrf.mxu1 }
 0x3fc   : > { %v3035_v11 = vadd.f32 %v3005_v47, %v1725_v14  ;;  %v3670_v6 = vadd.f32 %v3669_v41, %v3668_v2 }
 0x3fd   : > { %v3671_v25 = vpop.f32.mrf.mxu1 }
 0x3fe   : > { %3051 = vst [vmem:[%s5895_s26 + $0x58] sm:$0xff] %v3035_v11  ;;  %v3010_v58 = vadd.f32 %v3670_v6, %v2913_v62 }
 0x3ff   : > { %v3672_v23 = vpop.f32.mrf.mxu1 }
 0x400   : > { %v3036_v49 = vadd.f32 %v3010_v58, %v1731_v43  ;;  %v3673_v28 = vadd.f32 %v3672_v23, %v3671_v25 }
 0x401   : > { %v3674_v57 = vpop.f32.mrf.mxu1 }
 0x402   : > { %3052 = vst [vmem:[%s5895_s26 + $0x60] sm:$0xff] %v3036_v49  ;;  %v3013_v37 = vadd.f32 %v3673_v28, %v2916_v38 }
 0x403   : > { %v3675_v36 = vpop.f32.mrf.mxu1 }
 0x404   : > { %v3037_v0 = vadd.f32 %v3013_v37, %v1735_v60  ;;  %v3676_v24 = vadd.f32 %v3675_v36, %v3674_v57 }
 0x405   : > { %v3677_v61 = vpop.f32.mrf.mxu1 }
 0x406   : > { %3053 = vst [vmem:[%s5895_s26 + $0x68] sm:$0xff] %v3037_v0  ;;  %v3018_v15 = vadd.f32 %v3676_v24, %v2921_v3 }
 0x407   : > { %v3678_v20 = vpop.f32.mrf.mxu1 }
 0x408   : > { %v3038_v12 = vadd.f32 %v3018_v15, %v1741_v59  ;;  %v3679_v33 = vadd.f32 %v3678_v20, %v3677_v61 }
 0x40a   : > { %3054 = vst [vmem:[%s5895_s26 + $0x70] sm:$0xff] %v3038_v12  ;;  %v3021_v51 = vadd.f32 %v3679_v33, %v2924_v13 }
 0x40c   : > { %v3039_v56 = vadd.f32 %v3021_v51, %v1745_v39 }
 0x40e   : > { %3055 = vst [vmem:[%s5895_s26 + $0x78] sm:$0xff] %v3039_v56 }
 0x40f   : > { %4205 = shalt.err (!%p4202_p8)
}
 0x410   : > { %s4206_s19 = scalar_lea.hbm %s5969_s23, 2048  ;;  %s4210_s14 = scalar_lea.hbm %s6175_s13, 4096 }
 0x411   : > { %p4207_p3 = scmp.ne.s32.totalorder %s5969_s23, %s4206_s19  ;;  %p4211_p12 = scmp.lt.s32.totalorder %s5969_s23, %s6175_s13 }
 0x412   : > { %p4212_p6 = scmp.lt.s32.totalorder %s4210_s14, %s4206_s19 }
 0x413   : > { %p4208_p13 = pnand %p4207_p3, %p4442_p9 }
 0x414   : > { %p4213_p7 = por %p4212_p6, %p4211_p12 }
 0x415   : > { %p4209_p5 = pneg %p4208_p13 }
 0x417   : > { %p4214_p1 = pnand %p4213_p7, %p4209_p5 }
 0x419   : > { %4217 = shalt.err (!%p4214_p1)
}
 0x41a   : > { %s6176_s26 = smov 8   ;;  %s6177_s18 = smov 128  }
 0x41b   : > { %3748 = dma.vmem_to_hbm [thread:$0]  (%p4442_p9), %s5971_s4, 2048, %s5969_s23, %s3057_s1, %s6177_s18, %s6177_s18, %s6176_s26  }
 0x41c PF: > { %s6178_s30 = sld [smem:[#allocation18_spill]]  ;;  %p6180_p2 = scmp.ge.s32.totalorder %s4284_s29, 2 }
 0x41e   : > { %p3764_p4 = pnand %p6180_p2, %p4451_p11 }
 0x420   : > { %p3765_p10 = pneg %p3764_p4 }
 0x422   : > { %s3146_s3 = sand.u32 1, %s6178_s30  }
 0x423   : > { %s3147_s15 = scalar_lea.sflag [#allocation4], %s3146_s3 }
 0x424   : > { %4251 = dma.done.wait (%p3765_p10), %s3147_s15, 2048  }
 0x425   : > { %4253 = vsyncadd (%p3765_p10), %s3147_s15, 4294965248  ;;  %s6181_s22 = sadd.s32 4294967294, %s4284_s29  }
 0x426   : > { %s3155_s16 = sand.u32 1, %s6181_s22  }
 0x427   : > { %s3156_s27 = scalar_lea.sflag [#allocation9], %s3155_s16 }
 0x428   : > { %4255 = dma.done.wait (%p3765_p10), %s3156_s27, 2064  }
 0x429   : > { %4257 = vsyncadd (%p3765_p10), %s3156_s27, 4294965232  ;;  %s3173_s19 = scalar_lea.sflag [#allocation12], %s3146_s3 }
 0x42a   : > { %4259 = dma.done.wait (%p3765_p10), %s3173_s19, 16  }
 0x42b   : > { %4261 = vsyncadd (%p3765_p10), %s3173_s19, 4294967280  ;;  %s43_s29 = sadd.s32 1, %s4284_s29   ;;  %s6182_s4 = sld [smem:[#allocation19_spill]] }
 0x42c   : > { %p40_p9 = scmp.ge.s32.totalorder %s43_s29, 4   ;;  %s6183_s26 = sld [smem:[#allocation21_spill]] }
 0x42d   : > { %s6184_s23 = sld [smem:[#allocation20_spill]]  ;;  %s6185_s24 = smov %s4268_s25 }
 0x42e   : > { %s6187_s27 = smov %s4280_s28 }
 0x42f   :  { %42 = sbr.rel (!%p40_p9) target bundleno = 24 (0x18), region = 201 }
 0x431   : > { %s6186_s25 = smov %s6182_s4 }
 0x433   : > { %s6188_s28 = smov %s6184_s23 }
 0x434   :  { %3177 = vsyncpa [#allocation3], 1 }
 0x435   :  { %3179 = vsyncpa [#allocation3 + $0x1], 1 }
 0x436   :  { %3180 = vsyncpa [#allocation6], 1 }
 0x437   :  { %3182 = vsyncpa [#allocation6 + $0x1], 1 }
 0x438   :  { %3183 = vsyncpa [#allocation4], 1 }
 0x439   :  { %3185 = vsyncpa [#allocation4 + $0x1], 1 }
 0x43a   :  { %3186 = vsyncpa [#allocation9], 1 }
 0x43b   :  { %3188 = vsyncpa [#allocation9 + $0x1], 1 }
 0x43c   :  { %3189 = vsyncpa [#allocation12], 1 }
 0x43d   :  { %3191 = vsyncpa [#allocation12 + $0x1], 1 }

</bundles_post_ra>
